<compile_context>
chip_gen: v6e
topology: v6e:2x2x1
jax: 0.10.0
libtpu: 0.0.40
codegen_flags: <defaults>
</compile_context>

<pallas_src>
import jax
import jax.numpy as jnp
from jax import lax
from jax.experimental import pallas as pl
from jax.experimental.pallas import tpu as pltpu

# ---------------- configuration (module hyper-parameters) ----------------
IN_CHANNELS = 8
HIDDEN = 32
OUT_CHANNELS = 1
NUM_LAYERS = 2
USE_NORM_LAYERS = True
NUM_NODE_TYPES = 60      # NodeEncoder modeled as nn.Embedding(60, in_channels)
NUM_EDGE_TYPES = 60      # EdgeEncoder modeled as nn.Embedding(60, in_channels)
LN_EPS = 1e-5
BN_EPS = 1e-5
TILE_M_CANDIDATES = (1024, 512, 256, 128)
# TODO(synk): NodeEncoder/EdgeEncoder are not defined in the reference file; they are
# modeled as single integer-embedding lookups producing in_channels features.


def _round_up(x, m):
    return ((x + m - 1) // m) * m


def _vmem_limit_bytes():
    # Generation-aware scoped-VMEM limit: ~80% of physical VMEM
    # (v5e/v6e: 128 MiB -> ~102 MiB; v7x: 64 MiB -> ~51 MiB).
    try:
        cap = int(getattr(pltpu.get_tpu_info(), "vmem_capacity_bytes", 64 << 20))
    except Exception:
        cap = 64 << 20
    cap = max(cap, 32 << 20)
    return int(min(cap * 0.80, 112 << 20))


# ---------------- Pallas kernel (closure-parameterized over residency / tile) ----------------
def _make_kernel(a_resident, tile_m):
    def kernel(x_ref, a_ref, p_ref,
               w1_ref, b1_ref,
               wg_ref, bg_ref, lng_ref, lnb_ref,
               wf1_ref, bf1_ref, bn1s_ref, bn1b_ref,
               wf2_ref, bf2_ref, bn2s_ref, bn2b_ref,
               wf3_ref, bf3_ref,
               out_ref,
               h_ref, xw0_ref, xw1_ref, pool_ref, *extra):
        f32 = jnp.float32
        bf16 = jnp.bfloat16
        l = pl.program_id(0)              # GNN layer
        i = pl.program_id(1)              # destination-row tile
        last_l = pl.num_programs(0) - 1
        last_i = pl.num_programs(1) - 1
        row0 = pl.multiple_of(i * tile_m, tile_m)
        a_vmem = extra[0] if a_resident else None

        # --- one-time init: A residency copy, h = relu(linear(node_enc)), xw[slot 0] ---
        @pl.when(jnp.logical_and(l == 0, i == 0))
        def _():
            if a_resident:
                pltpu.sync_copy(a_ref, a_vmem)    # A_hat read from HBM exactly once
            h0 = jnp.maximum(
                jnp.dot(x_ref[...], w1_ref[...], preferred_element_type=f32)
                + b1_ref[...], 0.0)
            h_ref[...] = h0
            xw0_ref[...] = jnp.dot(h0, wg_ref[0],
                                   preferred_element_type=f32).astype(bf16)
            pool_ref[...] = jnp.zeros_like(pool_ref)

        def tile_body(xw_cur_ref, xw_next_ref):
            if a_resident:
                a_tile = a_vmem[pl.ds(row0, tile_m), :]       # slice of resident A
            else:
                a_tile = a_ref[...]                           # streamed bf16 row tile
            h_tile = h_ref[pl.ds(row0, tile_m), :]            # f32 residual input

            agg = jnp.dot(a_tile, xw_cur_ref[...],            # bf16 x bf16 -> f32 acc
                          preferred_element_type=f32) + bg_ref[...]
            new_h = jnp.maximum(agg, 0.0) + h_tile            # relu + residual
            if USE_NORM_LAYERS:
                mu = jnp.mean(new_h, axis=-1, keepdims=True)
                var = jnp.mean((new_h - mu) * (new_h - mu), axis=-1, keepdims=True)
                new_h = (new_h - mu) * lax.rsqrt(var + LN_EPS) * lng_ref[...] + lnb_ref[...]
            h_ref[pl.ds(row0, tile_m), :] = new_h

            # incremental hoist of the NEXT layer's xw for this row tile (overlaps
            # with the A DMA stream; no per-layer serialized full-node matmul).
            @pl.when(l < last_l)
            def _():
                l_next = jnp.minimum(l + 1, last_l)
                xw_next_ref[pl.ds(row0, tile_m), :] = jnp.dot(
                    new_h, wg_ref[l_next], preferred_element_type=f32).astype(bf16)

            # global_add_pool accumulation (only the last layer's features feed the head)
            @pl.when(l == last_l)
            def _():
                pool_ref[...] += jnp.dot(p_ref[:, pl.ds(row0, tile_m)], new_h,
                                         preferred_element_type=f32)

        # xw scratch is parity double-buffered: layer l reads slot l%2, writes (l+1)%2.
        @pl.when(l % 2 == 0)
        def _():
            tile_body(xw0_ref, xw1_ref)

        @pl.when(l % 2 == 1)
        def _():
            tile_body(xw1_ref, xw0_ref)

        # --- finalize: MLP head on pooled features at the last grid step ---
        @pl.when(jnp.logical_and(l == last_l, i == last_i))
        def _():
            g = pool_ref[...]
            z = jnp.maximum(jnp.dot(g, wf1_ref[...], preferred_element_type=f32)
                            + bf1_ref[...], 0.0)
            z = z * bn1s_ref[...] + bn1b_ref[...]    # BatchNorm1d (eval, folded)
            z = jnp.maximum(jnp.dot(z, wf2_ref[...], preferred_element_type=f32)
                            + bf2_ref[...], 0.0)
            z = z * bn2s_ref[...] + bn2b_ref[...]
            out_ref[...] = jnp.dot(z, wf3_ref[...], preferred_element_type=f32) + bf3_ref[...]

    return kernel


def gnn_main(x_enc, a_hat, pool, params, tile_m, a_resident, vmem_limit):
    n_pad = a_hat.shape[0]
    G = pool.shape[0]
    n_tiles = n_pad // tile_m
    C, H = IN_CHANNELS, HIDDEN

    def fixed(shape):
        return pl.BlockSpec(shape, lambda l, i, _s=len(shape): (0,) * _s)

    if a_resident:
        # Raw HBM ref; copied once into VMEM scratch at grid step (0,0).
        a_spec = pl.BlockSpec(memory_space=pl.ANY)
    else:
        # Streamed destination-row tiles (double-buffered), re-read once per layer.
        a_spec = pl.BlockSpec((tile_m, n_pad), lambda l, i: (i, 0))

    in_specs = [
        pl.BlockSpec((n_pad, C), lambda l, i: (0, 0)),        # x_enc (fetched once)
        a_spec,                                               # A_hat (bf16)
        pl.BlockSpec((G, n_pad), lambda l, i: (0, 0)),        # pool matrix (fetched once)
        fixed((C, H)), fixed((1, H)),                         # linear W^T, b
        fixed((NUM_LAYERS, H, H)),                            # GCN W^T all layers (8 KiB resident)
        pl.BlockSpec((None, 1, H), lambda l, i: (l, 0, 0)),   # GCN bias[l]
        pl.BlockSpec((None, 1, H), lambda l, i: (l, 0, 0)),   # LN gamma[l]
        pl.BlockSpec((None, 1, H), lambda l, i: (l, 0, 0)),   # LN beta[l]
        fixed((H, 64)), fixed((1, 64)), fixed((1, 64)), fixed((1, 64)),   # fc1 / bn1
        fixed((64, 32)), fixed((1, 32)), fixed((1, 32)), fixed((1, 32)),  # fc2 / bn2
        fixed((32, OUT_CHANNELS)), fixed((1, OUT_CHANNELS)),              # fc3
        # TODO(synk): the ~10 tiny head/BN params could be packed into one array to
        # save a few DMA channels; skipped (negligible bytes, constant-index fetch).
    ]

    inputs = (x_enc, a_hat, pool,
              params["w1_t"], params["b1"],
              params["wg_t"], params["bg"], params["ln_g"], params["ln_b"],
              params["wf1_t"], params["bf1"], params["bn1_s"], params["bn1_b"],
              params["wf2_t"], params["bf2"], params["bn2_s"], params["bn2_b"],
              params["wf3_t"], params["bf3"])

    scratch = [
        pltpu.VMEM((n_pad, H), jnp.float32),    # h (carried node features)
        pltpu.VMEM((n_pad, H), jnp.bfloat16),   # xw parity-0 buffer (MXU input)
        pltpu.VMEM((n_pad, H), jnp.bfloat16),   # xw parity-1 buffer
        pltpu.VMEM((G, H), jnp.float32),        # pooled accumulator
        # TODO(synk): on v7x, an optional bf16 h scratch would halve the carried
        # footprint if VMEM gets tight after the A-resident copy.
    ]
    if a_resident:
        scratch.append(pltpu.VMEM((n_pad, n_pad), jnp.bfloat16))   # resident A_hat

    grid_spec = pltpu.PrefetchScalarGridSpec(
        num_scalar_prefetch=0,
        grid=(NUM_LAYERS, n_tiles),
        in_specs=in_specs,
        out_specs=pl.BlockSpec((G, OUT_CHANNELS), lambda l, i: (0, 0)),
        scratch_shapes=scratch,
    )

    return pl.pallas_call(
        _make_kernel(a_resident, tile_m),
        out_shape=jax.ShapeDtypeStruct((G, OUT_CHANNELS), jnp.float32),
        grid_spec=grid_spec,
        compiler_params=pltpu.CompilerParams(
            # Both axes carry VMEM scratch (h / xw / pool), so they stay sequential.
            # TODO(synk): on v7x, split the row-tile axis across the two TensorCores
            # with pl.core_map + per-core pool partials (rows are disjoint per tile).
            dimension_semantics=("arbitrary", "arbitrary"),
            vmem_limit_bytes=vmem_limit,
        ),
    )(*inputs)


# ---------------- plain-JAX glue: encoders, edge weights, GCN normalization ----------------
def gnn_regressor_forward(params, x, edge_index, edge_attr, batch, num_graphs,
                          *, tile_m_cap=1024, force_streamed=False):
    N = x.shape[0]

    # node_encoder / edge_encoder: embedding gathers (arbitrary-index gather stays in JAX).
    x_enc = jnp.take(params["node_emb"], x.astype(jnp.int32), axis=0)
    enc_attr = jnp.take(params["edge_emb"], edge_attr.astype(jnp.int32), axis=0)

    # temp = sigmoid(edge_linear(enc_attr)) -- tiny (8 MACs/edge), kept in the glue.
    w = jax.nn.sigmoid(enc_attr @ params["we_t"] + params["be"])[:, 0]

    # GCN normalization (add_self_loops=False, matching the module spec).
    row, col = edge_index[0], edge_index[1]
    deg = jnp.zeros((N,), jnp.float32).at[col].add(w)
    dis = jnp.where(deg > 0, lax.rsqrt(jnp.maximum(deg, 1e-30)), 0.0)
    norm = dis[row] * w * dis[col]

    # ---- generation-aware tiling / residency decision ----
    vmem_limit = _vmem_limit_bytes()
    budget = int(vmem_limit * 0.85)

    def fixed_bytes(np_):
        return (np_ * HIDDEN * 4                 # h scratch
                + 2 * np_ * HIDDEN * 2           # xw parity buffers (bf16)
                + num_graphs * HIDDEN * 4        # pool accumulator
                + 2 * np_ * IN_CHANNELS * 4      # x_enc input buffers
                + 2 * num_graphs * np_ * 4       # pool-matrix input buffers
                + (2 << 20))                     # params / pipeline slack

    n_pad = _round_up(N, 128)
    a_resident = (not force_streamed) and (
        n_pad * n_pad * 2 + fixed_bytes(n_pad) <= budget)
    if a_resident:
        tile_m = 128
        for t in TILE_M_CANDIDATES[:-1]:
            if t <= tile_m_cap and t <= n_pad and n_pad % t == 0:
                tile_m = t
                break
    else:
        chosen = None
        for t in TILE_M_CANDIDATES:
            if t > tile_m_cap:
                continue
            np_t = _round_up(N, t)
            if 2 * t * np_t * 2 + fixed_bytes(np_t) <= budget:
                chosen = (t, np_t)
                break
        if chosen is None:
            # TODO(synk): K-tile the A stream (source-column grid axis + f32 agg
            # scratch) for graphs where even a 128-row bf16 stripe of A blows VMEM.
            chosen = (128, _round_up(N, 128))
        tile_m, n_pad = chosen

    # dense normalized adjacency built DIRECTLY in bf16 (no f32 staging buffer + cast).
    # TODO(synk): CSR + scalar-prefetch sparse aggregation would turn the O(N^2) HBM
    # traffic into O(E) for large sparse graphs.
    a_hat = (jnp.zeros((n_pad, n_pad), jnp.bfloat16)
             .at[col, row].add(norm.astype(jnp.bfloat16)))

    x_enc_pad = jnp.zeros((n_pad, IN_CHANNELS), jnp.float32).at[:N].set(x_enc)

    # pooling matrix for global_add_pool; padded nodes map to graph id == num_graphs.
    batch_pad = jnp.full((n_pad,), num_graphs, jnp.int32).at[:N].set(batch.astype(jnp.int32))
    pool = (batch_pad[None, :] ==
            jnp.arange(num_graphs, dtype=jnp.int32)[:, None]).astype(jnp.float32)

    return gnn_main(x_enc_pad, a_hat, pool, params, tile_m, a_resident, vmem_limit)


# ---------------- pure-JAX reference (mirrors the kernel's bf16 casts) ----------------
def reference_forward(params, x, edge_index, edge_attr, batch, num_graphs):
    N = x.shape[0]
    x_enc = params["node_emb"][x.astype(jnp.int32)]
    enc_attr = params["edge_emb"][edge_attr.astype(jnp.int32)]
    w = jax.nn.sigmoid(enc_attr @ params["we_t"] + params["be"])[:, 0]
    row, col = edge_index[0], edge_index[1]
    deg = jnp.zeros((N,), jnp.float32).at[col].add(w)
    dis = jnp.where(deg > 0, lax.rsqrt(jnp.maximum(deg, 1e-30)), 0.0)
    norm = dis[row] * w * dis[col]
    a = (jnp.zeros((N, N), jnp.bfloat16)
         .at[col, row].add(norm.astype(jnp.bfloat16))).astype(jnp.float32)
    h = jnp.maximum(x_enc @ params["w1_t"] + params["b1"], 0.0)
    for i in range(NUM_LAYERS):
        xw = (h @ params["wg_t"][i]).astype(jnp.bfloat16).astype(jnp.float32)
        agg = a @ xw + params["bg"][i]
        h = jnp.maximum(agg, 0.0) + h
        if USE_NORM_LAYERS:
            mu = h.mean(-1, keepdims=True)
            var = ((h - mu) ** 2).mean(-1, keepdims=True)
            h = (h - mu) * lax.rsqrt(var + LN_EPS) * params["ln_g"][i] + params["ln_b"][i]
    pool = (batch[None, :].astype(jnp.int32) ==
            jnp.arange(num_graphs, dtype=jnp.int32)[:, None]).astype(jnp.float32)
    g = pool @ h
    z = jnp.maximum(g @ params["wf1_t"] + params["bf1"], 0.0) * params["bn1_s"] + params["bn1_b"]
    z = jnp.maximum(z @ params["wf2_t"] + params["bf2"], 0.0) * params["bn2_s"] + params["bn2_b"]
    return z @ params["wf3_t"] + params["bf3"]


# ---------------- deterministic synthetic parameter init ----------------
def init_params(key):
    ks = list(jax.random.split(key, 16))

    def kaiming_t(k, in_dim, out_dim):          # returns [in_dim, out_dim]
        bound = (6.0 / in_dim) ** 0.5
        return jax.random.uniform(k, (in_dim, out_dim), jnp.float32, -bound, bound)

    def lin_bias(k, in_dim, out_dim):
        bound = 1.0 / (in_dim ** 0.5)
        return jax.random.uniform(k, (1, out_dim), jnp.float32, -bound, bound)

    C, H = IN_CHANNELS, HIDDEN
    p = {}
    p["node_emb"] = jax.random.normal(ks[0], (NUM_NODE_TYPES, C), jnp.float32)
    p["edge_emb"] = jax.random.normal(ks[1], (NUM_EDGE_TYPES, C), jnp.float32)

    xav = (6.0 / (C + 1)) ** 0.5                      # edge_linear: xavier_uniform
    p["we_t"] = jax.random.uniform(ks[2], (C, 1), jnp.float32, -xav, xav)
    p["be"] = lin_bias(ks[3], C, 1)

    p["w1_t"] = kaiming_t(ks[4], C, H)                # self.linear
    p["b1"] = lin_bias(ks[5], C, H)

    glorot = (6.0 / (H + H)) ** 0.5                   # GCNConv layers
    p["wg_t"] = jax.random.uniform(ks[6], (NUM_LAYERS, H, H), jnp.float32, -glorot, glorot)
    p["bg"] = jnp.zeros((NUM_LAYERS, 1, H), jnp.float32)
    p["ln_g"] = jnp.ones((NUM_LAYERS, 1, H), jnp.float32)
    p["ln_b"] = jnp.zeros((NUM_LAYERS, 1, H), jnp.float32)

    p["wf1_t"] = kaiming_t(ks[7], H, 64)
    p["bf1"] = lin_bias(ks[8], H, 64)
    # BatchNorm1d (eval) folded: running_mean=0, running_var=1, gamma=1, beta=0
    p["bn1_s"] = jnp.full((1, 64), 1.0 / (1.0 + BN_EPS) ** 0.5, jnp.float32)
    p["bn1_b"] = jnp.zeros((1, 64), jnp.float32)

    p["wf2_t"] = kaiming_t(ks[9], 64, 32)
    p["bf2"] = lin_bias(ks[10], 64, 32)
    p["bn2_s"] = jnp.full((1, 32), 1.0 / (1.0 + BN_EPS) ** 0.5, jnp.float32)
    p["bn2_b"] = jnp.zeros((1, 32), jnp.float32)

    p["wf3_t"] = kaiming_t(ks[11], 32, OUT_CHANNELS)
    p["bf3"] = lin_bias(ks[12], 32, OUT_CHANNELS)
    # note: self.linear2 and self.edge_embeddings are unused in forward().
    return p


if __name__ == "__main__":
    key = jax.random.PRNGKey(0)
    pkey, dkey = jax.random.split(key)
    params = init_params(pkey)

    def run_case(case_key, N, E, G, **kw):
        k1, k2, k3, k4 = jax.random.split(case_key, 4)
        x = jax.random.randint(k1, (N,), 0, NUM_NODE_TYPES, dtype=jnp.int32)
        edge_attr = jax.random.randint(k2, (E,), 0, NUM_EDGE_TYPES, dtype=jnp.int32)
        src = jax.random.randint(k3, (E,), 0, N, dtype=jnp.int32)
        dst = jax.random.randint(k4, (E,), 0, N, dtype=jnp.int32)
        edge_index = jnp.stack([src, dst], axis=0)
        sizes = [N // G] * G
        sizes[-1] = N - sum(sizes[:-1])
        batch = jnp.concatenate(
            [jnp.full((s,), g, jnp.int32) for g, s in enumerate(sizes)])

        out = gnn_regressor_forward(params, x, edge_index, edge_attr, batch, G, **kw)
        jax.block_until_ready(out)
        assert out.shape == (G, OUT_CHANNELS)

        ref = reference_forward(params, x, edge_index, edge_attr, batch, G)
        jax.block_until_ready(ref)
        err = float(jnp.max(jnp.abs(out - ref)))
        scale = float(jnp.max(jnp.abs(ref))) + 1.0
        assert err < 0.05 * scale, f"kernel/reference mismatch: max_abs_err={err}, scale={scale}"

    dk1, dk2 = jax.random.split(dkey)
    # Case 1: small graph -> exercises the A-resident fast path (single VMEM copy of A).
    run_case(dk1, N=16, E=32, G=2)
    # Case 2: forces the streamed-A multi-row-tile path (tile_m=128, 2 tiles, 3 graphs).
    run_case(dk2, N=200, E=600, G=3, tile_m_cap=128, force_streamed=True)

    print("KERNEL_OK")
</pallas_src>

<mosaic_0001>
module attributes {stable_mosaic.version = 11 : i64} {
  func.func @kernel(%arg0: i32, %arg1: i32, %arg2: memref<128x8xf32, #tpu.memory_space<vmem>>, %arg3: memref<128x128xbf16, #tpu.memory_space<any>>, %arg4: memref<2x128xf32, #tpu.memory_space<vmem>>, %arg5: memref<8x32xf32, #tpu.memory_space<vmem>>, %arg6: memref<1x32xf32, #tpu.memory_space<vmem>>, %arg7: memref<2x32x32xf32, #tpu.memory_space<vmem>>, %arg8: memref<1x1x32xf32, #tpu.memory_space<vmem>>, %arg9: memref<1x1x32xf32, #tpu.memory_space<vmem>>, %arg10: memref<1x1x32xf32, #tpu.memory_space<vmem>>, %arg11: memref<32x64xf32, #tpu.memory_space<vmem>>, %arg12: memref<1x64xf32, #tpu.memory_space<vmem>>, %arg13: memref<1x64xf32, #tpu.memory_space<vmem>>, %arg14: memref<1x64xf32, #tpu.memory_space<vmem>>, %arg15: memref<64x32xf32, #tpu.memory_space<vmem>>, %arg16: memref<1x32xf32, #tpu.memory_space<vmem>>, %arg17: memref<1x32xf32, #tpu.memory_space<vmem>>, %arg18: memref<1x32xf32, #tpu.memory_space<vmem>>, %arg19: memref<32x1xf32, #tpu.memory_space<vmem>>, %arg20: memref<1x1xf32, #tpu.memory_space<vmem>>, %arg21: memref<2x1xf32, #tpu.memory_space<vmem>>, %arg22: memref<128x32xf32, #tpu.memory_space<vmem>>, %arg23: memref<128x32xbf16, #tpu.memory_space<vmem>>, %arg24: memref<128x32xbf16, #tpu.memory_space<vmem>>, %arg25: memref<2x32xf32, #tpu.memory_space<vmem>>, %arg26: memref<128x128xbf16, #tpu.memory_space<vmem>>) attributes {dimension_semantics = [#tpu.dimension_semantics<arbitrary>, #tpu.dimension_semantics<arbitrary>], iteration_bounds = array<i64: 2, 1>, scalar_prefetch = 0 : i64, scratch_operands = 5 : i64, tpu.core_type = #tpu.core_type<tc>, window_params = [{pipeline_mode = #tpu.pipeline_mode<synchronous>, transform_indices = @transform_0, window_bounds = array<i64: 128, 8>}, {}, {pipeline_mode = #tpu.pipeline_mode<synchronous>, transform_indices = @transform_2, window_bounds = array<i64: 2, 128>}, {pipeline_mode = #tpu.pipeline_mode<synchronous>, transform_indices = @transform_3, window_bounds = array<i64: 8, 32>}, {pipeline_mode = #tpu.pipeline_mode<synchronous>, transform_indices = @transform_4, window_bounds = array<i64: 1, 32>}, {pipeline_mode = #tpu.pipeline_mode<synchronous>, transform_indices = @transform_5, window_bounds = array<i64: 2, 32, 32>}, {transform_indices = @transform_6, window_bounds = array<i64: 1, 1, 32>}, {transform_indices = @transform_7, window_bounds = array<i64: 1, 1, 32>}, {transform_indices = @transform_8, window_bounds = array<i64: 1, 1, 32>}, {pipeline_mode = #tpu.pipeline_mode<synchronous>, transform_indices = @transform_9, window_bounds = array<i64: 32, 64>}, {pipeline_mode = #tpu.pipeline_mode<synchronous>, transform_indices = @transform_10, window_bounds = array<i64: 1, 64>}, {pipeline_mode = #tpu.pipeline_mode<synchronous>, transform_indices = @transform_11, window_bounds = array<i64: 1, 64>}, {pipeline_mode = #tpu.pipeline_mode<synchronous>, transform_indices = @transform_12, window_bounds = array<i64: 1, 64>}, {pipeline_mode = #tpu.pipeline_mode<synchronous>, transform_indices = @transform_13, window_bounds = array<i64: 64, 32>}, {pipeline_mode = #tpu.pipeline_mode<synchronous>, transform_indices = @transform_14, window_bounds = array<i64: 1, 32>}, {pipeline_mode = #tpu.pipeline_mode<synchronous>, transform_indices = @transform_15, window_bounds = array<i64: 1, 32>}, {pipeline_mode = #tpu.pipeline_mode<synchronous>, transform_indices = @transform_16, window_bounds = array<i64: 1, 32>}, {pipeline_mode = #tpu.pipeline_mode<synchronous>, transform_indices = @transform_17, window_bounds = array<i64: 32, 1>}, {pipeline_mode = #tpu.pipeline_mode<synchronous>, transform_indices = @transform_18, window_bounds = array<i64: 1, 1>}, {pipeline_mode = #tpu.pipeline_mode<synchronous>, transform_indices = @transform_19, window_bounds = array<i64: 2, 1>}]} {
    %c128_i32 = arith.constant 128 : i32
    %0 = arith.muli %arg1, %c128_i32 : i32
    %1 = tpu.assume_multiple %0, 128 : i32
    %c0_i32 = arith.constant 0 : i32
    %2 = arith.cmpi eq, %arg0, %c0_i32 : i32
    %c0_i32_0 = arith.constant 0 : i32
    %3 = arith.cmpi eq, %arg1, %c0_i32_0 : i32
    %4 = arith.andi %2, %3 : i1
    %5 = arith.extui %4 : i1 to i32
    %c0_i32_1 = arith.constant 0 : i32
    %6 = arith.cmpi ne, %5, %c0_i32_1 : i32
    scf.if %6 {
      "tpu.region"() ({
        %54 = tpu.sem_alloc : memref<!tpu.dma_semaphore, #tpu.memory_space<semaphore_mem>>
        tpu.enqueue_dma source(%arg3 : memref<128x128xbf16, #tpu.memory_space<any>>) target(%arg26 : memref<128x128xbf16, #tpu.memory_space<vmem>>) target_semaphore(%54 : memref<!tpu.dma_semaphore, #tpu.memory_space<semaphore_mem>>)
        tpu.wait_dma2 semaphore(%54 : memref<!tpu.dma_semaphore, #tpu.memory_space<semaphore_mem>>) src(%arg3 : memref<128x128xbf16, #tpu.memory_space<any>>) dst(%arg26 : memref<128x128xbf16, #tpu.memory_space<vmem>>)
        tpu.yield
      }) : () -> ()
      %c0 = arith.constant 0 : index
      %c0_19 = arith.constant 0 : index
      %38 = vector.load %arg2[%c0, %c0_19] : memref<128x8xf32, #tpu.memory_space<vmem>>, vector<128x8xf32>
      %c0_20 = arith.constant 0 : index
      %c0_21 = arith.constant 0 : index
      %39 = vector.load %arg5[%c0_20, %c0_21] : memref<8x32xf32, #tpu.memory_space<vmem>>, vector<8x32xf32>
      %cst = arith.constant dense<0.000000e+00> : vector<128x32xf32>
      %40 = tpu.matmul %38, %39, %cst {dimension_numbers = #tpu.dot_dimension_numbers<[1], [0], [0], [1], [0, 0, 1, 1], [], []>} : vector<128x8xf32>, vector<8x32xf32>, vector<128x32xf32> -> vector<128x32xf32>
      %c0_22 = arith.constant 0 : index
      %c0_23 = arith.constant 0 : index
      %41 = vector.load %arg6[%c0_22, %c0_23] : memref<1x32xf32, #tpu.memory_space<vmem>>, vector<1x32xf32>
      %42 = vector.broadcast %41 : vector<1x32xf32> to vector<128x32xf32>
      %43 = arith.addf %40, %42 : vector<128x32xf32>
      %cst_24 = arith.constant 0.000000e+00 : f32
      %44 = vector.broadcast %cst_24 : f32 to vector<128x32xf32>
      %45 = arith.maximumf %43, %44 : vector<128x32xf32>
      %c0_25 = arith.constant 0 : index
      %c0_26 = arith.constant 0 : index
      %46 = vector.load %arg22[%c0_25, %c0_26] : memref<128x32xf32, #tpu.memory_space<vmem>>, vector<128x32xf32>
      tpu.vector_store %arg22[%c0_25, %c0_26], %45 {strides = array<i32>} : memref<128x32xf32, #tpu.memory_space<vmem>>, vector<128x32xf32>,
      %c0_27 = arith.constant 0 : index
      %c0_28 = arith.constant 0 : index
      %c0_29 = arith.constant 0 : index
      %47 = vector.load %arg7[%c0_27, %c0_28, %c0_29] : memref<2x32x32xf32, #tpu.memory_space<vmem>>, vector<1x32x32xf32>
      %48 = vector.shape_cast %47 : vector<1x32x32xf32> to vector<32x32xf32>
      %cst_30 = arith.constant dense<0.000000e+00> : vector<128x32xf32>
      %49 = tpu.matmul %45, %48, %cst_30 {dimension_numbers = #tpu.dot_dimension_numbers<[1], [0], [0], [1], [0, 0, 1, 1], [], []>} : vector<128x32xf32>, vector<32x32xf32>, vector<128x32xf32> -> vector<128x32xf32>
      %50 = arith.truncf %49 : vector<128x32xf32> to vector<128x32xbf16>
      %c0_31 = arith.constant 0 : index
      %c0_32 = arith.constant 0 : index
      %51 = vector.load %arg23[%c0_31, %c0_32] : memref<128x32xbf16, #tpu.memory_space<vmem>>, vector<128x32xbf16>
      tpu.vector_store %arg23[%c0_31, %c0_32], %50 {strides = array<i32>} : memref<128x32xbf16, #tpu.memory_space<vmem>>, vector<128x32xbf16>,
      %cst_33 = arith.constant 0.000000e+00 : f32
      %52 = vector.broadcast %cst_33 : f32 to vector<2x32xf32>
      %c0_34 = arith.constant 0 : index
      %c0_35 = arith.constant 0 : index
      %53 = vector.load %arg25[%c0_34, %c0_35] : memref<2x32xf32, #tpu.memory_space<vmem>>, vector<2x32xf32>
      tpu.vector_store %arg25[%c0_34, %c0_35], %52 {strides = array<i32>} : memref<2x32xf32, #tpu.memory_space<vmem>>, vector<2x32xf32>,
    } else {
    }
    %c2_i32 = arith.constant 2 : i32
    %c0_i32_2 = arith.constant 0 : i32
    %7 = arith.cmpi eq, %c2_i32, %c0_i32_2 : i32
    %c1_i32 = arith.constant 1 : i32
    %8 = arith.select %7, %c1_i32, %c2_i32 : i32
    %9 = arith.remsi %arg0, %8 : i32
    %c0_i32_3 = arith.constant 0 : i32
    %10 = arith.cmpi ne, %9, %c0_i32_3 : i32
    %c0_i32_4 = arith.constant 0 : i32
    %11 = arith.cmpi slt, %9, %c0_i32_4 : i32
    %c0_i32_5 = arith.constant 0 : i32
    %12 = arith.cmpi slt, %8, %c0_i32_5 : i32
    %13 = arith.xori %11, %12 : i1
    %14 = arith.andi %13, %10 : i1
    %15 = arith.addi %9, %8 : i32
    %16 = arith.select %14, %15, %9 : i32
    %c0_i32_6 = arith.constant 0 : i32
    %17 = arith.cmpi eq, %16, %c0_i32_6 : i32
    %18 = arith.extui %17 : i1 to i32
    %c0_i32_7 = arith.constant 0 : i32
    %19 = arith.cmpi ne, %18, %c0_i32_7 : i32
    scf.if %19 {
      %38 = arith.index_cast %1 : i32 to index
      %c0 = arith.constant 0 : index
      %39 = vector.load %arg26[%38, %c0] : memref<128x128xbf16, #tpu.memory_space<vmem>>, vector<128x128xbf16>
      %40 = arith.index_cast %1 : i32 to index
      %c0_19 = arith.constant 0 : index
      %41 = vector.load %arg22[%40, %c0_19] : memref<128x32xf32, #tpu.memory_space<vmem>>, vector<128x32xf32>
      %c0_20 = arith.constant 0 : index
      %c0_21 = arith.constant 0 : index
      %42 = vector.load %arg23[%c0_20, %c0_21] : memref<128x32xbf16, #tpu.memory_space<vmem>>, vector<128x32xbf16>
      %cst = arith.constant dense<0.000000e+00> : vector<128x32xf32>
      %43 = tpu.matmul %39, %42, %cst {dimension_numbers = #tpu.dot_dimension_numbers<[1], [0], [0], [1], [0, 0, 1, 1], [], []>} : vector<128x128xbf16>, vector<128x32xbf16>, vector<128x32xf32> -> vector<128x32xf32>
      %c0_22 = arith.constant 0 : index
      %c0_23 = arith.constant 0 : index
      %c0_24 = arith.constant 0 : index
      %44 = vector.load %arg8[%c0_22, %c0_23, %c0_24] : memref<1x1x32xf32, #tpu.memory_space<vmem>>, vector<1x1x32xf32>
      %45 = vector.shape_cast %44 : vector<1x1x32xf32> to vector<1x32xf32>
      %46 = vector.broadcast %45 : vector<1x32xf32> to vector<128x32xf32>
      %47 = arith.addf %43, %46 : vector<128x32xf32>
      %cst_25 = arith.constant 0.000000e+00 : f32
      %48 = vector.broadcast %cst_25 : f32 to vector<128x32xf32>
      %49 = arith.maximumf %47, %48 : vector<128x32xf32>
      %50 = arith.addf %49, %41 : vector<128x32xf32>
      %cst_26 = arith.constant dense<0.000000e+00> : vector<128xf32>
      %51 = vector.multi_reduction <add>, %50, %cst_26 [1] : vector<128x32xf32> to vector<128xf32>
      %52 = vector.shape_cast %51 : vector<128xf32> to vector<128x1xf32>
      %cst_27 = arith.constant 3.200000e+01 : f32
      %53 = vector.broadcast %cst_27 : f32 to vector<128x1xf32>
      %54 = arith.divf %52, %53 : vector<128x1xf32>
      %55 = vector.broadcast %54 : vector<128x1xf32> to vector<128x32xf32>
      %56 = arith.subf %50, %55 : vector<128x32xf32>
      %57 = vector.broadcast %54 : vector<128x1xf32> to vector<128x32xf32>
      %58 = arith.subf %50, %57 : vector<128x32xf32>
      %59 = arith.mulf %56, %58 : vector<128x32xf32>
      %cst_28 = arith.constant dense<0.000000e+00> : vector<128xf32>
      %60 = vector.multi_reduction <add>, %59, %cst_28 [1] : vector<128x32xf32> to vector<128xf32>
      %61 = vector.shape_cast %60 : vector<128xf32> to vector<128x1xf32>
      %cst_29 = arith.constant 3.200000e+01 : f32
      %62 = vector.broadcast %cst_29 : f32 to vector<128x1xf32>
      %63 = arith.divf %61, %62 : vector<128x1xf32>
      %64 = vector.broadcast %54 : vector<128x1xf32> to vector<128x32xf32>
      %65 = arith.subf %50, %64 : vector<128x32xf32>
      %cst_30 = arith.constant 9.99999974E-6 : f32
      %66 = vector.broadcast %cst_30 : f32 to vector<128x1xf32>
      %67 = arith.addf %63, %66 : vector<128x1xf32>
      %68 = math.rsqrt %67 : vector<128x1xf32>
      %69 = vector.broadcast %68 : vector<128x1xf32> to vector<128x32xf32>
      %70 = arith.mulf %65, %69 : vector<128x32xf32>
      %c0_31 = arith.constant 0 : index
      %c0_32 = arith.constant 0 : index
      %c0_33 = arith.constant 0 : index
      %71 = vector.load %arg9[%c0_31, %c0_32, %c0_33] : memref<1x1x32xf32, #tpu.memory_space<vmem>>, vector<1x1x32xf32>
      %72 = vector.shape_cast %71 : vector<1x1x32xf32> to vector<1x32xf32>
      %73 = vector.broadcast %72 : vector<1x32xf32> to vector<128x32xf32>
      %74 = arith.mulf %70, %73 : vector<128x32xf32>
      %c0_34 = arith.constant 0 : index
      %c0_35 = arith.constant 0 : index
      %c0_36 = arith.constant 0 : index
      %75 = vector.load %arg10[%c0_34, %c0_35, %c0_36] : memref<1x1x32xf32, #tpu.memory_space<vmem>>, vector<1x1x32xf32>
      %76 = vector.shape_cast %75 : vector<1x1x32xf32> to vector<1x32xf32>
      %77 = vector.broadcast %76 : vector<1x32xf32> to vector<128x32xf32>
      %78 = arith.addf %74, %77 : vector<128x32xf32>
      %79 = arith.index_cast %1 : i32 to index
      %c0_37 = arith.constant 0 : index
      %80 = vector.load %arg22[%79, %c0_37] : memref<128x32xf32, #tpu.memory_space<vmem>>, vector<128x32xf32>
      tpu.vector_store %arg22[%79, %c0_37], %78 {strides = array<i32>} : memref<128x32xf32, #tpu.memory_space<vmem>>, vector<128x32xf32>,
      %c1_i32_38 = arith.constant 1 : i32
      %81 = arith.cmpi slt, %arg0, %c1_i32_38 : i32
      %82 = arith.extui %81 : i1 to i32
      %c0_i32_39 = arith.constant 0 : i32
      %83 = arith.cmpi ne, %82, %c0_i32_39 : i32
      scf.if %83 {
        %c1_i32_42 = arith.constant 1 : i32
        %87 = arith.addi %arg0, %c1_i32_42 : i32
        %c1_i32_43 = arith.constant 1 : i32
        %88 = arith.minsi %87, %c1_i32_43 : i32
        %89 = arith.index_cast %88 : i32 to index
        %c0_44 = arith.constant 0 : index
        %c0_45 = arith.constant 0 : index
        %90 = vector.load %arg7[%89, %c0_44, %c0_45] : memref<2x32x32xf32, #tpu.memory_space<vmem>>, vector<1x32x32xf32>
        %91 = vector.shape_cast %90 : vector<1x32x32xf32> to vector<32x32xf32>
        %cst_46 = arith.constant dense<0.000000e+00> : vector<128x32xf32>
        %92 = tpu.matmul %78, %91, %cst_46 {dimension_numbers = #tpu.dot_dimension_numbers<[1], [0], [0], [1], [0, 0, 1, 1], [], []>} : vector<128x32xf32>, vector<32x32xf32>, vector<128x32xf32> -> vector<128x32xf32>
        %93 = arith.truncf %92 : vector<128x32xf32> to vector<128x32xbf16>
        %94 = arith.index_cast %1 : i32 to index
        %c0_47 = arith.constant 0 : index
        %95 = vector.load %arg24[%94, %c0_47] : memref<128x32xbf16, #tpu.memory_space<vmem>>, vector<128x32xbf16>
        tpu.vector_store %arg24[%94, %c0_47], %93 {strides = array<i32>} : memref<128x32xbf16, #tpu.memory_space<vmem>>, vector<128x32xbf16>,
      } else {
      }
      %c1_i32_40 = arith.constant 1 : i32
      %84 = arith.cmpi eq, %arg0, %c1_i32_40 : i32
      %85 = arith.extui %84 : i1 to i32
      %c0_i32_41 = arith.constant 0 : i32
      %86 = arith.cmpi ne, %85, %c0_i32_41 : i32
      scf.if %86 {
        %c0_42 = arith.constant 0 : index
        %c0_43 = arith.constant 0 : index
        %87 = vector.load %arg25[%c0_42, %c0_43] : memref<2x32xf32, #tpu.memory_space<vmem>>, vector<2x32xf32>
        %c0_44 = arith.constant 0 : index
        %88 = arith.index_cast %1 : i32 to index
        %89 = vector.load %arg4[%c0_44, %88] : memref<2x128xf32, #tpu.memory_space<vmem>>, vector<2x128xf32>
        %cst_45 = arith.constant dense<0.000000e+00> : vector<2x32xf32>
        %90 = tpu.matmul %89, %78, %cst_45 {dimension_numbers = #tpu.dot_dimension_numbers<[1], [0], [0], [1], [0, 0, 1, 1], [], []>} : vector<2x128xf32>, vector<128x32xf32>, vector<2x32xf32> -> vector<2x32xf32>
        %91 = arith.addf %87, %90 : vector<2x32xf32>
        %c0_46 = arith.constant 0 : index
        %c0_47 = arith.constant 0 : index
        %92 = vector.load %arg25[%c0_46, %c0_47] : memref<2x32xf32, #tpu.memory_space<vmem>>, vector<2x32xf32>
        tpu.vector_store %arg25[%c0_46, %c0_47], %91 {strides = array<i32>} : memref<2x32xf32, #tpu.memory_space<vmem>>, vector<2x32xf32>,
      } else {
      }
    } else {
    }
    %c2_i32_8 = arith.constant 2 : i32
    %c0_i32_9 = arith.constant 0 : i32
    %20 = arith.cmpi eq, %c2_i32_8, %c0_i32_9 : i32
    %c1_i32_10 = arith.constant 1 : i32
    %21 = arith.select %20, %c1_i32_10, %c2_i32_8 : i32
    %22 = arith.remsi %arg0, %21 : i32
    %c0_i32_11 = arith.constant 0 : i32
    %23 = arith.cmpi ne, %22, %c0_i32_11 : i32
    %c0_i32_12 = arith.constant 0 : i32
    %24 = arith.cmpi slt, %22, %c0_i32_12 : i32
    %c0_i32_13 = arith.constant 0 : i32
    %25 = arith.cmpi slt, %21, %c0_i32_13 : i32
    %26 = arith.xori %24, %25 : i1
    %27 = arith.andi %26, %23 : i1
    %28 = arith.addi %22, %21 : i32
    %29 = arith.select %27, %28, %22 : i32
    %c1_i32_14 = arith.constant 1 : i32
    %30 = arith.cmpi eq, %29, %c1_i32_14 : i32
    %31 = arith.extui %30 : i1 to i32
    %c0_i32_15 = arith.constant 0 : i32
    %32 = arith.cmpi ne, %31, %c0_i32_15 : i32
    scf.if %32 {
      %38 = arith.index_cast %1 : i32 to index
      %c0 = arith.constant 0 : index
      %39 = vector.load %arg26[%38, %c0] : memref<128x128xbf16, #tpu.memory_space<vmem>>, vector<128x128xbf16>
      %40 = arith.index_cast %1 : i32 to index
      %c0_19 = arith.constant 0 : index
      %41 = vector.load %arg22[%40, %c0_19] : memref<128x32xf32, #tpu.memory_space<vmem>>, vector<128x32xf32>
      %c0_20 = arith.constant 0 : index
      %c0_21 = arith.constant 0 : index
      %42 = vector.load %arg24[%c0_20, %c0_21] : memref<128x32xbf16, #tpu.memory_space<vmem>>, vector<128x32xbf16>
      %cst = arith.constant dense<0.000000e+00> : vector<128x32xf32>
      %43 = tpu.matmul %39, %42, %cst {dimension_numbers = #tpu.dot_dimension_numbers<[1], [0], [0], [1], [0, 0, 1, 1], [], []>} : vector<128x128xbf16>, vector<128x32xbf16>, vector<128x32xf32> -> vector<128x32xf32>
      %c0_22 = arith.constant 0 : index
      %c0_23 = arith.constant 0 : index
      %c0_24 = arith.constant 0 : index
      %44 = vector.load %arg8[%c0_22, %c0_23, %c0_24] : memref<1x1x32xf32, #tpu.memory_space<vmem>>, vector<1x1x32xf32>
      %45 = vector.shape_cast %44 : vector<1x1x32xf32> to vector<1x32xf32>
      %46 = vector.broadcast %45 : vector<1x32xf32> to vector<128x32xf32>
      %47 = arith.addf %43, %46 : vector<128x32xf32>
      %cst_25 = arith.constant 0.000000e+00 : f32
      %48 = vector.broadcast %cst_25 : f32 to vector<128x32xf32>
      %49 = arith.maximumf %47, %48 : vector<128x32xf32>
      %50 = arith.addf %49, %41 : vector<128x32xf32>
      %cst_26 = arith.constant dense<0.000000e+00> : vector<128xf32>
      %51 = vector.multi_reduction <add>, %50, %cst_26 [1] : vector<128x32xf32> to vector<128xf32>
      %52 = vector.shape_cast %51 : vector<128xf32> to vector<128x1xf32>
      %cst_27 = arith.constant 3.200000e+01 : f32
      %53 = vector.broadcast %cst_27 : f32 to vector<128x1xf32>
      %54 = arith.divf %52, %53 : vector<128x1xf32>
      %55 = vector.broadcast %54 : vector<128x1xf32> to vector<128x32xf32>
      %56 = arith.subf %50, %55 : vector<128x32xf32>
      %57 = vector.broadcast %54 : vector<128x1xf32> to vector<128x32xf32>
      %58 = arith.subf %50, %57 : vector<128x32xf32>
      %59 = arith.mulf %56, %58 : vector<128x32xf32>
      %cst_28 = arith.constant dense<0.000000e+00> : vector<128xf32>
      %60 = vector.multi_reduction <add>, %59, %cst_28 [1] : vector<128x32xf32> to vector<128xf32>
      %61 = vector.shape_cast %60 : vector<128xf32> to vector<128x1xf32>
      %cst_29 = arith.constant 3.200000e+01 : f32
      %62 = vector.broadcast %cst_29 : f32 to vector<128x1xf32>
      %63 = arith.divf %61, %62 : vector<128x1xf32>
      %64 = vector.broadcast %54 : vector<128x1xf32> to vector<128x32xf32>
      %65 = arith.subf %50, %64 : vector<128x32xf32>
      %cst_30 = arith.constant 9.99999974E-6 : f32
      %66 = vector.broadcast %cst_30 : f32 to vector<128x1xf32>
      %67 = arith.addf %63, %66 : vector<128x1xf32>
      %68 = math.rsqrt %67 : vector<128x1xf32>
      %69 = vector.broadcast %68 : vector<128x1xf32> to vector<128x32xf32>
      %70 = arith.mulf %65, %69 : vector<128x32xf32>
      %c0_31 = arith.constant 0 : index
      %c0_32 = arith.constant 0 : index
      %c0_33 = arith.constant 0 : index
      %71 = vector.load %arg9[%c0_31, %c0_32, %c0_33] : memref<1x1x32xf32, #tpu.memory_space<vmem>>, vector<1x1x32xf32>
      %72 = vector.shape_cast %71 : vector<1x1x32xf32> to vector<1x32xf32>
      %73 = vector.broadcast %72 : vector<1x32xf32> to vector<128x32xf32>
      %74 = arith.mulf %70, %73 : vector<128x32xf32>
      %c0_34 = arith.constant 0 : index
      %c0_35 = arith.constant 0 : index
      %c0_36 = arith.constant 0 : index
      %75 = vector.load %arg10[%c0_34, %c0_35, %c0_36] : memref<1x1x32xf32, #tpu.memory_space<vmem>>, vector<1x1x32xf32>
      %76 = vector.shape_cast %75 : vector<1x1x32xf32> to vector<1x32xf32>
      %77 = vector.broadcast %76 : vector<1x32xf32> to vector<128x32xf32>
      %78 = arith.addf %74, %77 : vector<128x32xf32>
      %79 = arith.index_cast %1 : i32 to index
      %c0_37 = arith.constant 0 : index
      %80 = vector.load %arg22[%79, %c0_37] : memref<128x32xf32, #tpu.memory_space<vmem>>, vector<128x32xf32>
      tpu.vector_store %arg22[%79, %c0_37], %78 {strides = array<i32>} : memref<128x32xf32, #tpu.memory_space<vmem>>, vector<128x32xf32>,
      %c1_i32_38 = arith.constant 1 : i32
      %81 = arith.cmpi slt, %arg0, %c1_i32_38 : i32
      %82 = arith.extui %81 : i1 to i32
      %c0_i32_39 = arith.constant 0 : i32
      %83 = arith.cmpi ne, %82, %c0_i32_39 : i32
      scf.if %83 {
        %c1_i32_42 = arith.constant 1 : i32
        %87 = arith.addi %arg0, %c1_i32_42 : i32
        %c1_i32_43 = arith.constant 1 : i32
        %88 = arith.minsi %87, %c1_i32_43 : i32
        %89 = arith.index_cast %88 : i32 to index
        %c0_44 = arith.constant 0 : index
        %c0_45 = arith.constant 0 : index
        %90 = vector.load %arg7[%89, %c0_44, %c0_45] : memref<2x32x32xf32, #tpu.memory_space<vmem>>, vector<1x32x32xf32>
        %91 = vector.shape_cast %90 : vector<1x32x32xf32> to vector<32x32xf32>
        %cst_46 = arith.constant dense<0.000000e+00> : vector<128x32xf32>
        %92 = tpu.matmul %78, %91, %cst_46 {dimension_numbers = #tpu.dot_dimension_numbers<[1], [0], [0], [1], [0, 0, 1, 1], [], []>} : vector<128x32xf32>, vector<32x32xf32>, vector<128x32xf32> -> vector<128x32xf32>
        %93 = arith.truncf %92 : vector<128x32xf32> to vector<128x32xbf16>
        %94 = arith.index_cast %1 : i32 to index
        %c0_47 = arith.constant 0 : index
        %95 = vector.load %arg23[%94, %c0_47] : memref<128x32xbf16, #tpu.memory_space<vmem>>, vector<128x32xbf16>
        tpu.vector_store %arg23[%94, %c0_47], %93 {strides = array<i32>} : memref<128x32xbf16, #tpu.memory_space<vmem>>, vector<128x32xbf16>,
      } else {
      }
      %c1_i32_40 = arith.constant 1 : i32
      %84 = arith.cmpi eq, %arg0, %c1_i32_40 : i32
      %85 = arith.extui %84 : i1 to i32
      %c0_i32_41 = arith.constant 0 : i32
      %86 = arith.cmpi ne, %85, %c0_i32_41 : i32
      scf.if %86 {
        %c0_42 = arith.constant 0 : index
        %c0_43 = arith.constant 0 : index
        %87 = vector.load %arg25[%c0_42, %c0_43] : memref<2x32xf32, #tpu.memory_space<vmem>>, vector<2x32xf32>
        %c0_44 = arith.constant 0 : index
        %88 = arith.index_cast %1 : i32 to index
        %89 = vector.load %arg4[%c0_44, %88] : memref<2x128xf32, #tpu.memory_space<vmem>>, vector<2x128xf32>
        %cst_45 = arith.constant dense<0.000000e+00> : vector<2x32xf32>
        %90 = tpu.matmul %89, %78, %cst_45 {dimension_numbers = #tpu.dot_dimension_numbers<[1], [0], [0], [1], [0, 0, 1, 1], [], []>} : vector<2x128xf32>, vector<128x32xf32>, vector<2x32xf32> -> vector<2x32xf32>
        %91 = arith.addf %87, %90 : vector<2x32xf32>
        %c0_46 = arith.constant 0 : index
        %c0_47 = arith.constant 0 : index
        %92 = vector.load %arg25[%c0_46, %c0_47] : memref<2x32xf32, #tpu.memory_space<vmem>>, vector<2x32xf32>
        tpu.vector_store %arg25[%c0_46, %c0_47], %91 {strides = array<i32>} : memref<2x32xf32, #tpu.memory_space<vmem>>, vector<2x32xf32>,
      } else {
      }
    } else {
    }
    %c1_i32_16 = arith.constant 1 : i32
    %33 = arith.cmpi eq, %arg0, %c1_i32_16 : i32
    %c0_i32_17 = arith.constant 0 : i32
    %34 = arith.cmpi eq, %arg1, %c0_i32_17 : i32
    %35 = arith.andi %33, %34 : i1
    %36 = arith.extui %35 : i1 to i32
    %c0_i32_18 = arith.constant 0 : i32
    %37 = arith.cmpi ne, %36, %c0_i32_18 : i32
    scf.if %37 {
      %c0 = arith.constant 0 : index
      %c0_19 = arith.constant 0 : index
      %38 = vector.load %arg25[%c0, %c0_19] : memref<2x32xf32, #tpu.memory_space<vmem>>, vector<2x32xf32>
      %c0_20 = arith.constant 0 : index
      %c0_21 = arith.constant 0 : index
      %39 = vector.load %arg11[%c0_20, %c0_21] : memref<32x64xf32, #tpu.memory_space<vmem>>, vector<32x64xf32>
      %cst = arith.constant dense<0.000000e+00> : vector<2x64xf32>
      %40 = tpu.matmul %38, %39, %cst {dimension_numbers = #tpu.dot_dimension_numbers<[1], [0], [0], [1], [0, 0, 1, 1], [], []>} : vector<2x32xf32>, vector<32x64xf32>, vector<2x64xf32> -> vector<2x64xf32>
      %c0_22 = arith.constant 0 : index
      %c0_23 = arith.constant 0 : index
      %41 = vector.load %arg12[%c0_22, %c0_23] : memref<1x64xf32, #tpu.memory_space<vmem>>, vector<1x64xf32>
      %42 = vector.broadcast %41 : vector<1x64xf32> to vector<2x64xf32>
      %43 = arith.addf %40, %42 : vector<2x64xf32>
      %cst_24 = arith.constant 0.000000e+00 : f32
      %44 = vector.broadcast %cst_24 : f32 to vector<2x64xf32>
      %45 = arith.maximumf %43, %44 : vector<2x64xf32>
      %c0_25 = arith.constant 0 : index
      %c0_26 = arith.constant 0 : index
      %46 = vector.load %arg13[%c0_25, %c0_26] : memref<1x64xf32, #tpu.memory_space<vmem>>, vector<1x64xf32>
      %47 = vector.broadcast %46 : vector<1x64xf32> to vector<2x64xf32>
      %48 = arith.mulf %45, %47 : vector<2x64xf32>
      %c0_27 = arith.constant 0 : index
      %c0_28 = arith.constant 0 : index
      %49 = vector.load %arg14[%c0_27, %c0_28] : memref<1x64xf32, #tpu.memory_space<vmem>>, vector<1x64xf32>
      %50 = vector.broadcast %49 : vector<1x64xf32> to vector<2x64xf32>
      %51 = arith.addf %48, %50 : vector<2x64xf32>
      %c0_29 = arith.constant 0 : index
      %c0_30 = arith.constant 0 : index
      %52 = vector.load %arg15[%c0_29, %c0_30] : memref<64x32xf32, #tpu.memory_space<vmem>>, vector<64x32xf32>
      %cst_31 = arith.constant dense<0.000000e+00> : vector<2x32xf32>
      %53 = tpu.matmul %51, %52, %cst_31 {dimension_numbers = #tpu.dot_dimension_numbers<[1], [0], [0], [1], [0, 0, 1, 1], [], []>} : vector<2x64xf32>, vector<64x32xf32>, vector<2x32xf32> -> vector<2x32xf32>
      %c0_32 = arith.constant 0 : index
      %c0_33 = arith.constant 0 : index
      %54 = vector.load %arg16[%c0_32, %c0_33] : memref<1x32xf32, #tpu.memory_space<vmem>>, vector<1x32xf32>
      %55 = vector.broadcast %54 : vector<1x32xf32> to vector<2x32xf32>
      %56 = arith.addf %53, %55 : vector<2x32xf32>
      %cst_34 = arith.constant 0.000000e+00 : f32
      %57 = vector.broadcast %cst_34 : f32 to vector<2x32xf32>
      %58 = arith.maximumf %56, %57 : vector<2x32xf32>
      %c0_35 = arith.constant 0 : index
      %c0_36 = arith.constant 0 : index
      %59 = vector.load %arg17[%c0_35, %c0_36] : memref<1x32xf32, #tpu.memory_space<vmem>>, vector<1x32xf32>
      %60 = vector.broadcast %59 : vector<1x32xf32> to vector<2x32xf32>
      %61 = arith.mulf %58, %60 : vector<2x32xf32>
      %c0_37 = arith.constant 0 : index
      %c0_38 = arith.constant 0 : index
      %62 = vector.load %arg18[%c0_37, %c0_38] : memref<1x32xf32, #tpu.memory_space<vmem>>, vector<1x32xf32>
      %63 = vector.broadcast %62 : vector<1x32xf32> to vector<2x32xf32>
      %64 = arith.addf %61, %63 : vector<2x32xf32>
      %c0_39 = arith.constant 0 : index
      %c0_40 = arith.constant 0 : index
      %65 = vector.load %arg19[%c0_39, %c0_40] : memref<32x1xf32, #tpu.memory_space<vmem>>, vector<32x1xf32>
      %cst_41 = arith.constant dense<0.000000e+00> : vector<2x1xf32>
      %66 = tpu.matmul %64, %65, %cst_41 {dimension_numbers = #tpu.dot_dimension_numbers<[1], [0], [0], [1], [0, 0, 1, 1], [], []>} : vector<2x32xf32>, vector<32x1xf32>, vector<2x1xf32> -> vector<2x1xf32>
      %c0_42 = arith.constant 0 : index
      %c0_43 = arith.constant 0 : index
      %67 = vector.load %arg20[%c0_42, %c0_43] : memref<1x1xf32, #tpu.memory_space<vmem>>, vector<1x1xf32>
      %68 = vector.broadcast %67 : vector<1x1xf32> to vector<2x1xf32>
      %69 = arith.addf %66, %68 : vector<2x1xf32>
      %c0_44 = arith.constant 0 : index
      %c0_45 = arith.constant 0 : index
      %70 = vector.load %arg21[%c0_44, %c0_45] : memref<2x1xf32, #tpu.memory_space<vmem>>, vector<2x1xf32>
      tpu.vector_store %arg21[%c0_44, %c0_45], %69 {strides = array<i32>} : memref<2x1xf32, #tpu.memory_space<vmem>>, vector<2x1xf32>,
    } else {
    }
    return
  }
  func.func @transform_0(%arg0: i32, %arg1: i32) -> (i32, i32) {
    %c0_i32 = arith.constant 0 : i32
    %c0_i32_0 = arith.constant 0 : i32
    %c0_i32_1 = arith.constant 0 : i32
    return %c0_i32, %c0_i32_0 : i32, i32
  }
  func.func @transform_2(%arg0: i32, %arg1: i32) -> (i32, i32) {
    %c0_i32 = arith.constant 0 : i32
    %c0_i32_0 = arith.constant 0 : i32
    %c0_i32_1 = arith.constant 0 : i32
    return %c0_i32, %c0_i32_0 : i32, i32
  }
  func.func @transform_3(%arg0: i32, %arg1: i32) -> (i32, i32) {
    %c0_i32 = arith.constant 0 : i32
    %c0_i32_0 = arith.constant 0 : i32
    %c0_i32_1 = arith.constant 0 : i32
    return %c0_i32, %c0_i32_0 : i32, i32
  }
  func.func @transform_4(%arg0: i32, %arg1: i32) -> (i32, i32) {
    %c0_i32 = arith.constant 0 : i32
    %c0_i32_0 = arith.constant 0 : i32
    %c0_i32_1 = arith.constant 0 : i32
    return %c0_i32, %c0_i32_0 : i32, i32
  }
  func.func @transform_5(%arg0: i32, %arg1: i32) -> (i32, i32, i32) {
    %c0_i32 = arith.constant 0 : i32
    %c0_i32_0 = arith.constant 0 : i32
    %c0_i32_1 = arith.constant 0 : i32
    %c0_i32_2 = arith.constant 0 : i32
    return %c0_i32, %c0_i32_0, %c0_i32_1 : i32, i32, i32
  }
  func.func @transform_6(%arg0: i32, %arg1: i32) -> (i32, i32, i32) {
    %c0_i32 = arith.constant 0 : i32
    %c0_i32_0 = arith.constant 0 : i32
    %c0_i32_1 = arith.constant 0 : i32
    return %arg0, %c0_i32, %c0_i32_0 : i32, i32, i32
  }
  func.func @transform_7(%arg0: i32, %arg1: i32) -> (i32, i32, i32) {
    %c0_i32 = arith.constant 0 : i32
    %c0_i32_0 = arith.constant 0 : i32
    %c0_i32_1 = arith.constant 0 : i32
    return %arg0, %c0_i32, %c0_i32_0 : i32, i32, i32
  }
  func.func @transform_8(%arg0: i32, %arg1: i32) -> (i32, i32, i32) {
    %c0_i32 = arith.constant 0 : i32
    %c0_i32_0 = arith.constant 0 : i32
    %c0_i32_1 = arith.constant 0 : i32
    return %arg0, %c0_i32, %c0_i32_0 : i32, i32, i32
  }
  func.func @transform_9(%arg0: i32, %arg1: i32) -> (i32, i32) {
    %c0_i32 = arith.constant 0 : i32
    %c0_i32_0 = arith.constant 0 : i32
    %c0_i32_1 = arith.constant 0 : i32
    return %c0_i32, %c0_i32_0 : i32, i32
  }
  func.func @transform_10(%arg0: i32, %arg1: i32) -> (i32, i32) {
    %c0_i32 = arith.constant 0 : i32
    %c0_i32_0 = arith.constant 0 : i32
    %c0_i32_1 = arith.constant 0 : i32
    return %c0_i32, %c0_i32_0 : i32, i32
  }
  func.func @transform_11(%arg0: i32, %arg1: i32) -> (i32, i32) {
    %c0_i32 = arith.constant 0 : i32
    %c0_i32_0 = arith.constant 0 : i32
    %c0_i32_1 = arith.constant 0 : i32
    return %c0_i32, %c0_i32_0 : i32, i32
  }
  func.func @transform_12(%arg0: i32, %arg1: i32) -> (i32, i32) {
    %c0_i32 = arith.constant 0 : i32
    %c0_i32_0 = arith.constant 0 : i32
    %c0_i32_1 = arith.constant 0 : i32
    return %c0_i32, %c0_i32_0 : i32, i32
  }
  func.func @transform_13(%arg0: i32, %arg1: i32) -> (i32, i32) {
    %c0_i32 = arith.constant 0 : i32
    %c0_i32_0 = arith.constant 0 : i32
    %c0_i32_1 = arith.constant 0 : i32
    return %c0_i32, %c0_i32_0 : i32, i32
  }
  func.func @transform_14(%arg0: i32, %arg1: i32) -> (i32, i32) {
    %c0_i32 = arith.constant 0 : i32
    %c0_i32_0 = arith.constant 0 : i32
    %c0_i32_1 = arith.constant 0 : i32
    return %c0_i32, %c0_i32_0 : i32, i32
  }
  func.func @transform_15(%arg0: i32, %arg1: i32) -> (i32, i32) {
    %c0_i32 = arith.constant 0 : i32
    %c0_i32_0 = arith.constant 0 : i32
    %c0_i32_1 = arith.constant 0 : i32
    return %c0_i32, %c0_i32_0 : i32, i32
  }
  func.func @transform_16(%arg0: i32, %arg1: i32) -> (i32, i32) {
    %c0_i32 = arith.constant 0 : i32
    %c0_i32_0 = arith.constant 0 : i32
    %c0_i32_1 = arith.constant 0 : i32
    return %c0_i32, %c0_i32_0 : i32, i32
  }
  func.func @transform_17(%arg0: i32, %arg1: i32) -> (i32, i32) {
    %c0_i32 = arith.constant 0 : i32
    %c0_i32_0 = arith.constant 0 : i32
    %c0_i32_1 = arith.constant 0 : i32
    return %c0_i32, %c0_i32_0 : i32, i32
  }
  func.func @transform_18(%arg0: i32, %arg1: i32) -> (i32, i32) {
    %c0_i32 = arith.constant 0 : i32
    %c0_i32_0 = arith.constant 0 : i32
    %c0_i32_1 = arith.constant 0 : i32
    return %c0_i32, %c0_i32_0 : i32, i32
  }
  func.func @transform_19(%arg0: i32, %arg1: i32) -> (i32, i32) {
    %c0_i32 = arith.constant 0 : i32
    %c0_i32_0 = arith.constant 0 : i32
    %c0_i32_1 = arith.constant 0 : i32
    return %c0_i32, %c0_i32_0 : i32, i32
  }
}

</mosaic_0001>

<bundles_post_ra>
// kernel: tpu_custom_call.1
= control target key start
LH: loop header
LB: loop body
LE: loop exit
PB: predicated region body
PF: predicated region fallthrough
CT: control target
= control target key end

     0   :  { %s4451_s20 = smov 0   ;;  %s4453_s21 = smov 0   ;;  %s5492_s0 = inlined_call_operand.vmem [shape: f32[128,8], index: 0, kind: input, shape index: {}]   ;;  %s5493_s1 = inlined_call_operand.vmem [shape: bf16[128,128], index: 1, kind: input, shape index: {}]   ;;  %s5494_s2 = inlined_call_operand.vmem [shape: f32[2,128], index: 2, kind: input, shape index: {}]   ;;  %s5495_s3 = inlined_call_operand.vmem [shape: f32[8,32], index: 3, kind: input, shape index: {}]   ;;  %s5496_s4 = inlined_call_operand.vmem [shape: f32[1,32], index: 4, kind: input, shape index: {}]   ;;  %s5497_s5 = inlined_call_operand.vmem [shape: f32[2,32,32], index: 5, kind: input, shape index: {}]   ;;  %s5498_s6 = inlined_call_operand.vmem [shape: f32[2,1,32], index: 6, kind: input, shape index: {}]   ;;  %s5499_s7 = inlined_call_operand.vmem [shape: f32[2,1,32], index: 7, kind: input, shape index: {}]   ;;  %s5500_s8 = inlined_call_operand.vmem [shape: f32[2,1,32], index: 8, kind: input, shape index: {}]   ;;  %s5501_s9 = inlined_call_operand.vmem [shape: f32[32,64], index: 9, kind: input, shape index: {}]   ;;  %s5502_s10 = inlined_call_operand.vmem [shape: f32[1,64], index: 10, kind: input, shape index: {}]   ;;  %s5503_s11 = inlined_call_operand.vmem [shape: f32[1,64], index: 11, kind: input, shape index: {}]   ;;  %s5504_s12 = inlined_call_operand.vmem [shape: f32[1,64], index: 12, kind: input, shape index: {}]   ;;  %s5505_s13 = inlined_call_operand.vmem [shape: f32[64,32], index: 13, kind: input, shape index: {}]   ;;  %s5506_s14 = inlined_call_operand.vmem [shape: f32[1,32], index: 14, kind: input, shape index: {}]   ;;  %s5507_s15 = inlined_call_operand.vmem [shape: f32[1,32], index: 15, kind: input, shape index: {}]   ;;  %s5508_s16 = inlined_call_operand.vmem [shape: f32[1,32], index: 16, kind: input, shape index: {}]   ;;  %s5509_s17 = inlined_call_operand.vmem [shape: f32[32,1], index: 17, kind: input, shape index: {}]   ;;  %s5510_s18 = inlined_call_operand.<no memory space> [shape: f32[1,1], index: 18, kind: input, shape index: {}]   ;;  %s5511_s19 = inlined_call_operand.vmem [shape: f32[2,1], index: 19, kind: output, shape index: {}]  }
   0x1   :  { %5516 = sst [smem:[#allocation14_spill]] %s5492_s0  ;;  %v24_v0 = vstv %s5510_s18 }
   0x2   :  { %5517 = sst [smem:[#allocation15_spill]] %s5493_s1  ;;  %25 = vst [vmem:[#allocation7] sm:$0x1] %v24_v0  ;;  %s4455_s1 = smov 0  }
   0x3   :  { %5518 = sst [smem:[#allocation16_spill]] %s5494_s2 }
   0x4   :  { %5519 = sst [smem:[#allocation17_spill]] %s5495_s3 }
   0x5 LB: > { %5520 = sst [smem:[#allocation11_spill]] %s4335_s21  ;;  %s43_s18 = sadd.s32 1, %s4335_s21  ;;  %s4339_s1 = sphi %s4455_s1, %s31_s1   ;;  %s4335_s21 = sphi %s4453_s21, %s5530_s21   ;;  %s4331_s20 = sphi %s4451_s20, %s5529_s20  }
   0x6   : > { %5521 = sst [smem:[#allocation12_spill]] %s4339_s1  ;;  %p3454_p0 = scmp.ge.s32.totalorder %s4339_s1, 1 }
   0x7   : > { %p45_p1 = scmp.ge.s32.totalorder %s43_s18, 2  ;;  %p536_p2 = scmp.lt.s32.totalorder %s4339_s1, 3 }
   0x9   : > { %s5532_s18 = smov (%p45_p1, %s43_s18), 0  ;;  %p537_p3 = pnand %p3454_p0, %p536_p2 }
   0xa   : > { %5522 = sst [smem:[#allocation13_spill]] %s5532_s18  ;;  %p589_p4 = scmp.lt.s32.totalorder (!%p537_p3), %s4331_s20, 1 }
   0xb   : > { %540 = sbr.rel (%p537_p3) target bundleno = 3164 (0xc5c), region = 92  ;;  %p600_p5 = scmp.eq.s32.totalorder (!%p537_p3), %s4331_s20, 0 }
  0x10   : > { %s590_s22 = scalar_select %p589_p4, %s4331_s20, 1 }
  0x11   : > { %605 = sbr.rel (!%p600_p5) target bundleno = 470 (0x1d6), region = 96 }
  0x12   : > { %s4477_s24 = scalar_lea.vmem %s5498_s6, %s590_s22  ;;  %s4482_s26 = scalar_lea.vmem %s5499_s7, %s590_s22 }
  0x13   : > { %s4487_s29 = scalar_lea.vmem %s5500_s8, %s590_s22 }
  0x16   : > { %s5523_s18 = sld [smem:[#allocation15_spill]] }
  0x1c   : > { %v639_v1 = vld [vmem:[%s5523_s18] sm:$0xff]  ;;  %v641_v2 = vld [vmem:[%s5523_s18 + $0x8] sm:$0xff]  ;;  %v643_v3 = vld [vmem:[%s5523_s18 + $0x10] sm:$0xff] }
  0x1d   : > { %640 = vst [vmem:[#allocation6] sm:$0xff] %v639_v1  ;;  %642 = vst [vmem:[#allocation6 + $0x8] sm:$0xff] %v641_v2  ;;  %v645_v4 = vld [vmem:[%s5523_s18 + $0x18] sm:$0xff]  ;;  %v647_v5 = vld [vmem:[%s5523_s18 + $0x20] sm:$0xff] }
  0x1e   : > { %644 = vst [vmem:[#allocation6 + $0x10] sm:$0xff] %v643_v3  ;;  %v649_v6 = vld [vmem:[%s5523_s18 + $0x28] sm:$0xff]  ;;  %646 = vst [vmem:[#allocation6 + $0x18] sm:$0xff] %v645_v4  ;;  %v651_v7 = vld [vmem:[%s5523_s18 + $0x30] sm:$0xff] }
  0x1f   : > { %648 = vst [vmem:[#allocation6 + $0x20] sm:$0xff] %v647_v5  ;;  %650 = vst [vmem:[#allocation6 + $0x28] sm:$0xff] %v649_v6  ;;  %v653_v8 = vld [vmem:[%s5523_s18 + $0x38] sm:$0xff] }
  0x20   : > { %652 = vst [vmem:[#allocation6 + $0x30] sm:$0xff] %v651_v7  ;;  %654 = vst [vmem:[#allocation6 + $0x38] sm:$0xff] %v653_v8 }
  0x21   : > { %662 = vsyncadd [#allocation8], 1024 }
  0x22   : > { %4327 = dma.done.wait [#allocation8], 1024 }
  0x23   : > { %4328 = vsyncadd [#allocation8], 4294966272  ;;  %s5524_s3 = sld [smem:[#allocation17_spill]]  ;;  %vm691_vm0 = vcmask 64512   ;;  %v921_v26 = vld [vmem:[%s5497_s5 + $0x18] sm:$0xff]  ;;  %v920_v27 = vld [vmem:[%s5497_s5 + $0x10] sm:$0xff] }
  0x24   : > { %s5525_s28 = sld [smem:[#allocation14_spill]]  ;;  %3869 = vmatprep.subr.mxu1 %v921_v26  ;;  %v919_v28 = vld [vmem:[%s5497_s5 + $0x8] sm:$0xff]  ;;  %v918_v29 = vld [vmem:[%s5497_s5] sm:$0xff]  ;;  %vm901_vm1 = vcmask 261120   ;;  %vm1196_vm2 = vcmask 254976   ;;  %vm1179_vm3 = vcmask 257024  }
  0x25   : > { %3870 = vmatpush3.msra.mxu1 %v921_v26  ;;  %v4595_v30 = vld [vmem:[%s5496_s4] ss:$0 sm:$0xff] }
  0x26   : > { %3871 = vmatprep.subr.mxu1 %v920_v27 }
  0x27   : > { %3872 = vmatpush3.msra.mxu1 %v920_v27 }
  0x28   : > { %3873 = vmatprep.subr.mxu1 %v919_v28 }
  0x29   : > { %v683_v9 = vld [vmem:[%s5524_s3] sm:$0xff]  ;;  %3874 = vmatpush3.msra.mxu1 %v919_v28 }
  0x2a   : > { %v667_v10 = vld [vmem:[%s5525_s28] sm:$0xff]  ;;  %v668_v11 = vld [vmem:[%s5525_s28 + $0x8] sm:$0xff]  ;;  %3843 = vmatprep.subr.mxu0 %v683_v9  ;;  %v669_v12 = vld [vmem:[%s5525_s28 + $0x10] sm:$0xff]  ;;  %3875 = vmatprep.subr.mxu1 %v918_v29 }
  0x2b   : > { %3845 = vmatprep.mubr.msk.f32.mxu0 %vm691_vm0, %v667_v10  ;;  %3844 = vmatpush3.msra.mxu0 %v683_v9  ;;  %v670_v13 = vld [vmem:[%s5525_s28 + $0x18] sm:$0xff]  ;;  %v671_v14 = vld [vmem:[%s5525_s28 + $0x20] sm:$0xff]  ;;  %v672_v15 = vld [vmem:[%s5525_s28 + $0x28] sm:$0xff] }
  0x2c   : > { %3846 = vmatmul.mubr.msk.f32.vlgmr.msra.gmra.mxu0 %vm691_vm0, %v668_v11  ;;  %v673_v16 = vld [vmem:[%s5525_s28 + $0x30] sm:$0xff]  ;;  %v674_v17 = vld [vmem:[%s5525_s28 + $0x38] sm:$0xff]  ;;  %v675_v18 = vld [vmem:[%s5525_s28 + $0x40] sm:$0xff]  ;;  %3876 = vmatpush3.msra.mxu1 %v918_v29 }
  0x2d   : > { %3848 = vmatprep.mubr.msk.f32.mxu0 %vm691_vm0, %v669_v12  ;;  %v676_v19 = vld [vmem:[%s5525_s28 + $0x48] sm:$0xff]  ;;  %v677_v20 = vld [vmem:[%s5525_s28 + $0x50] sm:$0xff]  ;;  %v678_v21 = vld [vmem:[%s5525_s28 + $0x58] sm:$0xff] }
  0x2e   : > { %v679_v22 = vld [vmem:[%s5525_s28 + $0x60] sm:$0xff]  ;;  %v680_v23 = vld [vmem:[%s5525_s28 + $0x68] sm:$0xff]  ;;  %v681_v24 = vld [vmem:[%s5525_s28 + $0x70] sm:$0xff] }
  0x2f   : > { %v682_v25 = vld [vmem:[%s5525_s28 + $0x78] sm:$0xff] }
  0x30   : > { %3849 = vmatmul.mubr.msk.f32.gmra.mxu0 %vm691_vm0, %v670_v13 }
  0x31   : > { %3851 = vmatprep.mubr.msk.f32.mxu0 %vm691_vm0, %v671_v14 }
  0x34   : > { %3852 = vmatmul.mubr.msk.f32.gmra.mxu0 %vm691_vm0, %v672_v15  ;;  %v4341_v15 = vmov 0.0  }
  0x35   : > { %3854 = vmatprep.mubr.msk.f32.mxu0 %vm691_vm0, %v673_v16  ;;  %1197 = vst.msk [vmem:[#allocation5] sm:$0x3] %vm1196_vm2, %v4341_v15 }
  0x38   : > { %3855 = vmatmul.mubr.msk.f32.gmra.mxu0 %vm691_vm0, %v674_v17 }
  0x39   : > { %3857 = vmatprep.mubr.msk.f32.mxu0 %vm691_vm0, %v675_v18 }
  0x3c   : > { %3858 = vmatmul.mubr.msk.f32.gmra.mxu0 %vm691_vm0, %v676_v19 }
  0x3d   : > { %3860 = vmatprep.mubr.msk.f32.mxu0 %vm691_vm0, %v677_v20 }
  0x40   : > { %3861 = vmatmul.mubr.msk.f32.gmra.mxu0 %vm691_vm0, %v678_v21 }
  0x41   : > { %3863 = vmatprep.mubr.msk.f32.mxu0 %vm691_vm0, %v679_v22 }
  0x44   : > { %3864 = vmatmul.mubr.msk.f32.gmra.mxu0 %vm691_vm0, %v680_v23 }
  0x45   : > { %3866 = vmatprep.mubr.msk.f32.mxu0 %vm691_vm0, %v681_v24 }
  0x48   : > { %3867 = vmatmul.mubr.msk.f32.gmra.mxu0 %vm691_vm0, %v682_v25 }
  0xec   : > { %v3847_v31 = vpop.f32.mrf.mxu0 }
  0xed   : > { %v812_v32 = vadd.f32 %v3847_v31, %v4595_v30 }
  0xee   : > { %v806_v33 = vpop.f32.mrf.mxu0 }
  0xef   : > { %v886_v34 = vmax.f32 %v812_v32, 0.0  ;;  %v807_v35 = vadd.f32 %v4595_v30, %v806_v33 }
  0xf0   : > { %v3850_v36 = vpop.f32.mrf.mxu0 }
  0xf1   : > { %903 = vst.msk [vmem:[#allocation2 + $0x8] sm:$0xff] %vm901_vm1, %v886_v34  ;;  %v885_v37 = vmax.f32 %v807_v35, 0.0  ;;  %v822_v38 = vadd.f32 %v3850_v36, %v4595_v30 }
  0xf2   : > { %v816_v39 = vpop.f32.mrf.mxu0 }
  0xf3   : > { %902 = vst.msk [vmem:[#allocation2] sm:$0xff] %vm901_vm1, %v885_v37  ;;  %v888_v40 = vmax.f32 %v822_v38, 0.0  ;;  %v817_v41 = vadd.f32 %v4595_v30, %v816_v39  ;;  %3877 = vmatprep.mubr.msk.f32.mxu1 %vm901_vm1, %v885_v37 }
  0xf4   : > { %v3853_v42 = vpop.f32.mrf.mxu0  ;;  %3878 = vmatmul.mubr.msk.f32.vlgmr.msra.gmra.mxu1 %vm901_vm1, %v886_v34 }
  0xf5   : > { %905 = vst.msk [vmem:[#allocation2 + $0x18] sm:$0xff] %vm901_vm1, %v888_v40  ;;  %v887_v43 = vmax.f32 %v817_v41, 0.0  ;;  %v832_v44 = vadd.f32 %v3853_v42, %v4595_v30 }
  0xf6   : > { %v826_v45 = vpop.f32.mrf.mxu0 }
  0xf7   : > { %904 = vst.msk [vmem:[#allocation2 + $0x10] sm:$0xff] %vm901_vm1, %v887_v43  ;;  %v890_v46 = vmax.f32 %v832_v44, 0.0  ;;  %v827_v47 = vadd.f32 %v4595_v30, %v826_v45  ;;  %3880 = vmatprep.mubr.msk.f32.mxu1 %vm901_vm1, %v887_v43 }
  0xf8   : > { %v3856_v48 = vpop.f32.mrf.mxu0  ;;  %3881 = vmatmul.mubr.msk.f32.gmra.mxu1 %vm901_vm1, %v888_v40 }
  0xf9   : > { %907 = vst.msk [vmem:[#allocation2 + $0x28] sm:$0xff] %vm901_vm1, %v890_v46  ;;  %v889_v49 = vmax.f32 %v827_v47, 0.0  ;;  %v842_v50 = vadd.f32 %v3856_v48, %v4595_v30 }
  0xfa   : > { %v836_v51 = vpop.f32.mrf.mxu0 }
  0xfb   : > { %906 = vst.msk [vmem:[#allocation2 + $0x20] sm:$0xff] %vm901_vm1, %v889_v49  ;;  %v892_v52 = vmax.f32 %v842_v50, 0.0  ;;  %v837_v53 = vadd.f32 %v4595_v30, %v836_v51  ;;  %3883 = vmatprep.mubr.msk.f32.mxu1 %vm901_vm1, %v889_v49 }
  0xfc   : > { %v3859_v54 = vpop.f32.mrf.mxu0  ;;  %3884 = vmatmul.mubr.msk.f32.gmra.mxu1 %vm901_vm1, %v890_v46 }
  0xfd   : > { %909 = vst.msk [vmem:[#allocation2 + $0x38] sm:$0xff] %vm901_vm1, %v892_v52  ;;  %v891_v55 = vmax.f32 %v837_v53, 0.0  ;;  %v852_v56 = vadd.f32 %v3859_v54, %v4595_v30 }
  0xfe   : > { %v846_v57 = vpop.f32.mrf.mxu0 }
  0xff   : > { %908 = vst.msk [vmem:[#allocation2 + $0x30] sm:$0xff] %vm901_vm1, %v891_v55  ;;  %v894_v58 = vmax.f32 %v852_v56, 0.0  ;;  %v847_v59 = vadd.f32 %v4595_v30, %v846_v57  ;;  %3886 = vmatprep.mubr.msk.f32.mxu1 %vm901_vm1, %v891_v55 }
 0x100   : > { %v3862_v60 = vpop.f32.mrf.mxu0  ;;  %3887 = vmatmul.mubr.msk.f32.gmra.mxu1 %vm901_vm1, %v892_v52 }
 0x101   : > { %911 = vst.msk [vmem:[#allocation2 + $0x48] sm:$0xff] %vm901_vm1, %v894_v58  ;;  %v893_v61 = vmax.f32 %v847_v59, 0.0  ;;  %v862_v62 = vadd.f32 %v3862_v60, %v4595_v30 }
 0x102   : > { %v856_v63 = vpop.f32.mrf.mxu0 }
 0x103   : > { %910 = vst.msk [vmem:[#allocation2 + $0x40] sm:$0xff] %vm901_vm1, %v893_v61  ;;  %v896_v0 = vmax.f32 %v862_v62, 0.0  ;;  %v857_v1 = vadd.f32 %v4595_v30, %v856_v63  ;;  %3889 = vmatprep.mubr.msk.f32.mxu1 %vm901_vm1, %v893_v61 }
 0x104   : > { %v3865_v2 = vpop.f32.mrf.mxu0  ;;  %3890 = vmatmul.mubr.msk.f32.gmra.mxu1 %vm901_vm1, %v894_v58 }
 0x105   : > { %913 = vst.msk [vmem:[#allocation2 + $0x58] sm:$0xff] %vm901_vm1, %v896_v0  ;;  %v895_v3 = vmax.f32 %v857_v1, 0.0  ;;  %v872_v4 = vadd.f32 %v3865_v2, %v4595_v30 }
 0x106   : > { %v866_v5 = vpop.f32.mrf.mxu0 }
 0x107   : > { %912 = vst.msk [vmem:[#allocation2 + $0x50] sm:$0xff] %vm901_vm1, %v895_v3  ;;  %v898_v6 = vmax.f32 %v872_v4, 0.0  ;;  %v867_v7 = vadd.f32 %v4595_v30, %v866_v5  ;;  %3892 = vmatprep.mubr.msk.f32.mxu1 %vm901_vm1, %v895_v3 }
 0x108   : > { %v3868_v8 = vpop.f32.mrf.mxu0  ;;  %3893 = vmatmul.mubr.msk.f32.gmra.mxu1 %vm901_vm1, %v896_v0 }
 0x109   : > { %915 = vst.msk [vmem:[#allocation2 + $0x68] sm:$0xff] %vm901_vm1, %v898_v6  ;;  %v897_v9 = vmax.f32 %v867_v7, 0.0  ;;  %v882_v10 = vadd.f32 %v3868_v8, %v4595_v30 }
 0x10a   : > { %v876_v11 = vpop.f32.mrf.mxu0 }
 0x10b   : > { %914 = vst.msk [vmem:[#allocation2 + $0x60] sm:$0xff] %vm901_vm1, %v897_v9  ;;  %v900_v12 = vmax.f32 %v882_v10, 0.0  ;;  %v877_v13 = vadd.f32 %v4595_v30, %v876_v11  ;;  %3895 = vmatprep.mubr.msk.f32.mxu1 %vm901_vm1, %v897_v9 }
 0x10c   : > { %3896 = vmatmul.mubr.msk.f32.gmra.mxu1 %vm901_vm1, %v898_v6 }
 0x10d   : > { %917 = vst.msk [vmem:[#allocation2 + $0x78] sm:$0xff] %vm901_vm1, %v900_v12  ;;  %v899_v14 = vmax.f32 %v877_v13, 0.0 }
 0x10f   : > { %916 = vst.msk [vmem:[#allocation2 + $0x70] sm:$0xff] %vm901_vm1, %v899_v14  ;;  %3898 = vmatprep.mubr.msk.f32.mxu1 %vm901_vm1, %v899_v14 }
 0x110   : > { %3899 = vmatmul.mubr.msk.f32.gmra.mxu1 %vm901_vm1, %v900_v12 }
 0x1b4   : > { %v3879_v16 = vpop.f32.mrf.mxu1 }
 0x1b5   : > { %v3633_v17 = vpack.c.bf16 %v3879_v16, %v3879_v16 }
 0x1b6   : > { %v1036_v18 = vpop.f32.mrf.mxu1 }
 0x1b7   : > { %1181 = vst.msk [vmem:[#allocation3 + $0x4] sm:$0xf] %vm1179_vm3, %v3633_v17  ;;  %v3632_v19 = vpack.c.bf16 %v1036_v18, %v1036_v18 }
 0x1b8   : > { %v3882_v20 = vpop.f32.mrf.mxu1 }
 0x1b9   : > { %1180 = vst.msk [vmem:[#allocation3] sm:$0xf] %vm1179_vm3, %v3632_v19  ;;  %v3635_v21 = vpack.c.bf16 %v3882_v20, %v3882_v20 }
 0x1ba   : > { %v1046_v22 = vpop.f32.mrf.mxu1 }
 0x1bb   : > { %1183 = vst.msk [vmem:[#allocation3 + $0xc] sm:$0xf] %vm1179_vm3, %v3635_v21  ;;  %v3634_v23 = vpack.c.bf16 %v1046_v22, %v1046_v22 }
 0x1bc   : > { %v3885_v24 = vpop.f32.mrf.mxu1 }
 0x1bd   : > { %1182 = vst.msk [vmem:[#allocation3 + $0x8] sm:$0xf] %vm1179_vm3, %v3634_v23  ;;  %v3637_v25 = vpack.c.bf16 %v3885_v24, %v3885_v24 }
 0x1be   : > { %v1056_v26 = vpop.f32.mrf.mxu1 }
 0x1bf   : > { %1185 = vst.msk [vmem:[#allocation3 + $0x14] sm:$0xf] %vm1179_vm3, %v3637_v25  ;;  %v3636_v27 = vpack.c.bf16 %v1056_v26, %v1056_v26 }
 0x1c0   : > { %v3888_v28 = vpop.f32.mrf.mxu1 }
 0x1c1   : > { %1184 = vst.msk [vmem:[#allocation3 + $0x10] sm:$0xf] %vm1179_vm3, %v3636_v27  ;;  %v3639_v29 = vpack.c.bf16 %v3888_v28, %v3888_v28 }
 0x1c2   : > { %v1066_v30 = vpop.f32.mrf.mxu1 }
 0x1c3   : > { %1187 = vst.msk [vmem:[#allocation3 + $0x1c] sm:$0xf] %vm1179_vm3, %v3639_v29  ;;  %v3638_v31 = vpack.c.bf16 %v1066_v30, %v1066_v30 }
 0x1c4   : > { %v3891_v32 = vpop.f32.mrf.mxu1 }
 0x1c5   : > { %1186 = vst.msk [vmem:[#allocation3 + $0x18] sm:$0xf] %vm1179_vm3, %v3638_v31  ;;  %v3641_v33 = vpack.c.bf16 %v3891_v32, %v3891_v32 }
 0x1c6   : > { %v1076_v34 = vpop.f32.mrf.mxu1 }
 0x1c7   : > { %1189 = vst.msk [vmem:[#allocation3 + $0x24] sm:$0xf] %vm1179_vm3, %v3641_v33  ;;  %v3640_v35 = vpack.c.bf16 %v1076_v34, %v1076_v34 }
 0x1c8   : > { %v3894_v36 = vpop.f32.mrf.mxu1 }
 0x1c9   : > { %1188 = vst.msk [vmem:[#allocation3 + $0x20] sm:$0xf] %vm1179_vm3, %v3640_v35  ;;  %v3643_v37 = vpack.c.bf16 %v3894_v36, %v3894_v36 }
 0x1ca   : > { %v1086_v38 = vpop.f32.mrf.mxu1 }
 0x1cb   : > { %1191 = vst.msk [vmem:[#allocation3 + $0x2c] sm:$0xf] %vm1179_vm3, %v3643_v37  ;;  %v3642_v39 = vpack.c.bf16 %v1086_v38, %v1086_v38 }
 0x1cc   : > { %v3897_v40 = vpop.f32.mrf.mxu1 }
 0x1cd   : > { %1190 = vst.msk [vmem:[#allocation3 + $0x28] sm:$0xf] %vm1179_vm3, %v3642_v39  ;;  %v3645_v41 = vpack.c.bf16 %v3897_v40, %v3897_v40 }
 0x1ce   : > { %v1096_v42 = vpop.f32.mrf.mxu1 }
 0x1cf   : > { %1193 = vst.msk [vmem:[#allocation3 + $0x34] sm:$0xf] %vm1179_vm3, %v3645_v41  ;;  %v3644_v43 = vpack.c.bf16 %v1096_v42, %v1096_v42 }
 0x1d0   : > { %v3900_v44 = vpop.f32.mrf.mxu1 }
 0x1d1   : > { %1192 = vst.msk [vmem:[#allocation3 + $0x30] sm:$0xf] %vm1179_vm3, %v3644_v43  ;;  %v3647_v45 = vpack.c.bf16 %v3900_v44, %v3900_v44 }
 0x1d2   : > { %v1106_v46 = vpop.f32.mrf.mxu1 }
 0x1d3   : > { %1195 = vst.msk [vmem:[#allocation3 + $0x3c] sm:$0xf] %vm1179_vm3, %v3647_v45  ;;  %v3646_v47 = vpack.c.bf16 %v1106_v46, %v1106_v46 }
 0x1d5   : > { %1194 = vst.msk [vmem:[#allocation3 + $0x38] sm:$0xf] %vm1179_vm3, %v3646_v47 }
 0x1d6 PF: > { %p1198_p6 = scmp.lt.s32.totalorder %s4331_s20, 0  ;;  %s1199_s0 = ssub.s32 0, %s4331_s20 }
 0x1d7   : > { %s3505_s21 = smin.u32 %s4331_s20, %s1199_s0 }
 0x1d8   : > { %s1201_s1 = sand.u32 1, %s3505_s21  }
 0x1d9   : > { %s1202_s30 = ssub.s32 0, %s1201_s1 }
 0x1da   : > { %s5534_s30 = smov (!%p1198_p6, %s1202_s30), %s1201_s1 }
 0x1db   : > { %p3507_p7 = scmp.lt.s32.totalorder %s5534_s30, 0  ;;  %s1208_s2 = sadd.s32 2, %s5534_s30 }
 0x1dd   : > { %s5536_s2 = smov (!%p3507_p7, %s1208_s2), %s5534_s30 }
 0x1de   : > { %p3508_p8 = scmp.ne.s32.totalorder %s5536_s2, 0 }
 0x1df   : > { %p3528_p9 = scmp.ge.s32.totalorder (!%p3508_p8), %s4331_s20, 1 }
 0x1e0   : > { %1213 = sbr.rel (%p3508_p8) target bundleno = 1517 (0x5ed), region = 135 }
 0x1e5   : > { %v4219_v48 = vld [vmem:[#allocation3 + $0x38] sm:$0xff]   ;;  %v4220_v49 = vld [vmem:[#allocation3 + $0x30] sm:$0xff]   ;;  %v4221_v50 = vld [vmem:[#allocation3 + $0x28] sm:$0xff]   ;;  %vm1499_vm4 = vcmask 261120   ;;  %s1775_s23 = sadd.s32 (!%p3528_p9), 1, %s4331_s20 }
 0x1e6   : > { %3901 = vmatprep.subr.bf16.mxu0 %v4219_v48  ;;  %4140 = vmatprep.subr.bf16.mxu1 %v4219_v48  ;;  %v4222_v51 = vld [vmem:[#allocation3 + $0x20] sm:$0xff]   ;;  %v4223_v54 = vld [vmem:[#allocation3 + $0x18] sm:$0xff]   ;;  %v4224_v55 = vld [vmem:[#allocation3 + $0x10] sm:$0xff]   ;;  %p1776_p10 = scmp.lt.s32.totalorder (!%p3528_p9), %s1775_s23, 1 }
 0x1e7   : > { %3902 = vmatpush3.bf16.msra.mxu0 %v4219_v48  ;;  %4148 = vmatpush3.bf16.msra.mxu1 %v4219_v48  ;;  %v4227_v52 = vld [vmem:[#allocation6] sm:$0xff]   ;;  %v4229_v58 = vld [vmem:[#allocation6 + $0x8] sm:$0xff]   ;;  %v4231_v60 = vld [vmem:[#allocation6 + $0x10] sm:$0xff]  }
 0x1e8   : > { %3903 = vmatprep.subr.bf16.mxu0 %v4220_v49  ;;  %4141 = vmatprep.subr.bf16.mxu1 %v4220_v49  ;;  %v4228_v53 = vld [vmem:[#allocation6 + $0x20] sm:$0xff]   ;;  %v4230_v59 = vld [vmem:[#allocation6 + $0x28] sm:$0xff]   ;;  %v4233_v61 = vld [vmem:[#allocation6 + $0x30] sm:$0xff]  }
 0x1e9   : > { %3917 = vmatprep.mubr.bf16.mxu0 %v4227_v52  ;;  %3925 = vmatprep.mubr.bf16.mxu1 %v4228_v53  ;;  %v4225_v56 = vld [vmem:[#allocation3 + $0x8] sm:$0xff]   ;;  %v4226_v57 = vld [vmem:[#allocation3] sm:$0xff]   ;;  %v1245_v11 = vld [vmem:[#allocation2 + $0x50] sm:$0xff] }
 0x1ea   : > { %v4232_v62 = vld [vmem:[#allocation6 + $0x18] sm:$0xff]   ;;  %v1237_v12 = vld [vmem:[#allocation2 + $0x10] sm:$0xff] }
 0x1eb   : > { %3904 = vmatpush3.bf16.msra.mxu0 %v4220_v49  ;;  %4149 = vmatpush3.bf16.msra.mxu1 %v4220_v49  ;;  %v4234_v63 = vld [vmem:[#allocation6 + $0x38] sm:$0xff]   ;;  %v1244_v49 = vld [vmem:[#allocation2 + $0x48] sm:$0xff] }
 0x1ec   : > { %3905 = vmatprep.subr.bf16.mxu0 %v4221_v50  ;;  %4142 = vmatprep.subr.bf16.mxu1 %v4221_v50  ;;  %v4668_v0 = vld [vmem:[%s4477_s24] ss:$0 sm:$0xff]  ;;  %v1238_v23 = vld [vmem:[#allocation2 + $0x18] sm:$0xff] }
 0x1ed   : > { %v1235_v18 = vld [vmem:[#allocation2] sm:$0xff]  ;;  %v1246_v36 = vld [vmem:[#allocation2 + $0x58] sm:$0xff] }
 0x1ee   : > { %v1243_v34 = vld [vmem:[#allocation2 + $0x40] sm:$0xff] }
 0x1ef   : > { %3906 = vmatpush3.bf16.msra.mxu0 %v4221_v50  ;;  %4150 = vmatpush3.bf16.msra.mxu1 %v4221_v50  ;;  %v1236_v50 = vld [vmem:[#allocation2 + $0x8] sm:$0xff] }
 0x1f0   : > { %3907 = vmatprep.subr.bf16.mxu0 %v4222_v51  ;;  %4143 = vmatprep.subr.bf16.mxu1 %v4222_v51 }
 0x1f3   : > { %3908 = vmatpush3.bf16.msra.mxu0 %v4222_v51  ;;  %4151 = vmatpush3.bf16.msra.mxu1 %v4222_v51 }
 0x1f4   : > { %3909 = vmatprep.subr.bf16.mxu0 %v4223_v54  ;;  %4144 = vmatprep.subr.bf16.mxu1 %v4223_v54 }
 0x1f7   : > { %3910 = vmatpush3.bf16.msra.mxu0 %v4223_v54  ;;  %4152 = vmatpush3.bf16.msra.mxu1 %v4223_v54 }
 0x1f8   : > { %3911 = vmatprep.subr.bf16.mxu0 %v4224_v55  ;;  %4145 = vmatprep.subr.bf16.mxu1 %v4224_v55 }
 0x1fb   : > { %3912 = vmatpush3.bf16.msra.mxu0 %v4224_v55  ;;  %4153 = vmatpush3.bf16.msra.mxu1 %v4224_v55 }
 0x1fc   : > { %3913 = vmatprep.subr.bf16.mxu0 %v4225_v56  ;;  %4146 = vmatprep.subr.bf16.mxu1 %v4225_v56 }
 0x1ff   : > { %3914 = vmatpush3.bf16.msra.mxu0 %v4225_v56  ;;  %4154 = vmatpush3.bf16.msra.mxu1 %v4225_v56  ;;  %v1242_v56 = vld [vmem:[#allocation2 + $0x38] sm:$0xff] }
 0x200   : > { %3915 = vmatprep.subr.bf16.mxu0 %v4226_v57  ;;  %4147 = vmatprep.subr.bf16.mxu1 %v4226_v57 }
 0x203   : > { %3916 = vmatpush3.bf16.msra.mxu0 %v4226_v57  ;;  %4155 = vmatpush3.bf16.msra.mxu1 %v4226_v57  ;;  %v1241_v57 = vld [vmem:[#allocation2 + $0x30] sm:$0xff] }
 0x206   : > { %3918 = vmatmul.mubr.bf16.vlgmr.msra.gmra.mxu0 %v4229_v58  ;;  %3926 = vmatmul.mubr.bf16.vlgmr.msra.gmra.mxu1 %v4230_v59 }
 0x207   : > { %3921 = vmatprep.mubr.bf16.mxu0 %v4231_v60  ;;  %3929 = vmatprep.mubr.bf16.mxu1 %v4233_v61 }
 0x20e   : > { %3922 = vmatmul.mubr.bf16.gmra.mxu0 %v4232_v62  ;;  %3930 = vmatmul.mubr.bf16.gmra.mxu1 %v4234_v63 }
 0x2c6   : > { %v3919_v1 = vpop.f32.mrf.mxu0  ;;  %v3927_v2 = vpop.f32.mrf.mxu1 }
 0x2c7   : > { %v1413_v3 = vadd.f32 %v3919_v1, %v4668_v0  ;;  %v1445_v4 = vadd.f32 %v3927_v2, %v4668_v0 }
 0x2c8   : > { %v1404_v5 = vpop.f32.mrf.mxu0  ;;  %v1436_v6 = vpop.f32.mrf.mxu1 }
 0x2c9   : > { %v1469_v7 = vmax.f32 %v1413_v3, 0.0  ;;  %v1477_v8 = vmax.f32 %v1445_v4, 0.0  ;;  %v1405_v9 = vadd.f32 %v4668_v0, %v1404_v5  ;;  %v1437_v10 = vadd.f32 %v4668_v0, %v1436_v6 }
 0x2ca   : > { %v3920_v13 = vpop.f32.mrf.mxu0  ;;  %v3928_v14 = vpop.f32.mrf.mxu1 }
 0x2cb   : > { %v1467_v15 = vmax.f32 %v1405_v9, 0.0  ;;  %v1416_v16 = vadd.f32 %v3920_v13, %v4668_v0  ;;  %v1448_v17 = vadd.f32 %v3928_v14, %v4668_v0  ;;  %v4676_v21 = vadd.f32 %v1477_v8, %v1245_v11  ;;  %v1240_v8 = vld [vmem:[#allocation2 + $0x28] sm:$0xff]  ;;  %v1239_v9 = vld [vmem:[#allocation2 + $0x20] sm:$0xff] }
 0x2cc   : > { %v1407_v19 = vpop.f32.mrf.mxu0  ;;  %v1439_v20 = vpop.f32.mrf.mxu1  ;;  %v4678_v22 = vadd.f32 %v1469_v7, %v1237_v12  ;;  %v1475_v24 = vmax.f32 %v1437_v10, 0.0 }
 0x2cd   : > { %v1470_v25 = vmax.f32 %v1416_v16, 0.0  ;;  %v1478_v26 = vmax.f32 %v1448_v17, 0.0  ;;  %v1408_v27 = vadd.f32 %v4668_v0, %v1407_v19  ;;  %v1440_v28 = vadd.f32 %v4668_v0, %v1439_v20  ;;  %v1247_v19 = vld [vmem:[#allocation2 + $0x60] sm:$0xff] }
 0x2ce   : > { %v1530_v29 = vsel %vm1499_vm4, %v4676_v21, 0.0  ;;  %v1506_v30 = vsel %vm1499_vm4, %v4678_v22, 0.0  ;;  %v3923_v31 = vpop.f32.mrf.mxu0  ;;  %v4686_v32 = vadd.f32 %v1467_v15, %v1235_v18  ;;  %v3931_v33 = vpop.f32.mrf.mxu1  ;;  %v4693_v41 = vadd.f32 %v1475_v24, %v1243_v34  ;;  %v1248_v18 = vld [vmem:[#allocation2 + $0x68] sm:$0xff] }
 0x2cf   : > { %1531 = vadd.xlane.f32.xlu0 %v1530_v29  ;;  %1507 = vadd.xlane.f32.xlu1 %v1506_v30  ;;  %v4688_v35 = vadd.f32 %v1470_v25, %v1238_v23  ;;  %v1429_v37 = vadd.f32 %v3923_v31, %v4668_v0  ;;  %v1468_v42 = vmax.f32 %v1408_v27, 0.0  ;;  %v1476_v43 = vmax.f32 %v1440_v28, 0.0  ;;  %v1250_v27 = vld [vmem:[#allocation2 + $0x78] sm:$0xff]  ;;  %v1249_v28 = vld [vmem:[#allocation2 + $0x70] sm:$0xff] }
 0x2d0   : > { %v1420_v38 = vpop.f32.mrf.mxu0  ;;  %v1452_v39 = vpop.f32.mrf.mxu1  ;;  %v1500_v44 = vsel %vm1499_vm4, %v4686_v32, 0.0  ;;  %v4697_v46 = vadd.f32 %v1478_v26, %v1246_v36  ;;  %v1524_v55 = vsel %vm1499_vm4, %v4693_v41, 0.0  ;;  %v1461_v12 = vadd.f32 %v3931_v33, %v4668_v0 }
 0x2d1   : > { %v1509_v40 = vsel %vm1499_vm4, %v4688_v35, 0.0  ;;  %v1473_v51 = vmax.f32 %v1429_v37, 0.0  ;;  %v1421_v53 = vadd.f32 %v4668_v0, %v1420_v38  ;;  %v4706_v60 = vadd.f32 %v1476_v43, %v1244_v49 }
 0x2d2   : > { %v3924_v45 = vpop.f32.mrf.mxu0  ;;  %v3932_v48 = vpop.f32.mrf.mxu1  ;;  %v1533_v58 = vsel %vm1499_vm4, %v4697_v46, 0.0  ;;  %v4708_v61 = vadd.f32 %v1468_v42, %v1236_v50  ;;  %v1453_v3 = vadd.f32 %v4668_v0, %v1452_v39  ;;  %v1481_v20 = vmax.f32 %v1461_v12, 0.0 }
 0x2d3   : > { %1510 = vadd.xlane.f32.xlu1 %v1509_v40  ;;  %1501 = vadd.xlane.f32.xlu0 %v1500_v44  ;;  %v1432_v47 = vadd.f32 %v3924_v45, %v4668_v0  ;;  %v4712_v1 = vadd.f32 %v1473_v51, %v1241_v57  ;;  %v1471_v2 = vmax.f32 %v1421_v53, 0.0  ;;  %v1527_v5 = vsel %vm1499_vm4, %v4706_v60, 0.0 }
 0x2d4   : > { %v1423_v52 = vpop.f32.mrf.mxu0  ;;  %v1455_v62 = vpop.f32.mrf.mxu1  ;;  %v1503_v6 = vsel %vm1499_vm4, %v4708_v61, 0.0  ;;  %v1464_v13 = vadd.f32 %v3932_v48, %v4668_v0  ;;  %v1479_v14 = vmax.f32 %v1453_v3, 0.0  ;;  %v4744_v33 = vadd.f32 %v1481_v20, %v1249_v28 }
 0x2d5   : > { %v1474_v54 = vmax.f32 %v1432_v47, 0.0  ;;  %v1424_v59 = vadd.f32 %v4668_v0, %v1423_v52  ;;  %v1456_v7 = vadd.f32 %v4668_v0, %v1455_v62  ;;  %v1518_v11 = vsel %vm1499_vm4, %v4712_v1, 0.0 }
 0x2d6   : > { %v4728_v17 = vadd.f32 %v1471_v2, %v1239_v9  ;;  %v1482_v23 = vmax.f32 %v1464_v13, 0.0  ;;  %v4736_v0 = vadd.f32 %v1479_v14, %v1247_v19  ;;  %v1542_v36 = vsel %vm1499_vm4, %v4744_v33, 0.0 }
 0x2d7   : > { %1534 = vadd.xlane.f32.xlu1 %v1533_v58  ;;  %1525 = vadd.xlane.f32.xlu0 %v1524_v55  ;;  %v4710_v63 = vadd.f32 %v1474_v54, %v1242_v56  ;;  %v1472_v4 = vmax.f32 %v1424_v59, 0.0  ;;  %v1480_v15 = vmax.f32 %v1456_v7, 0.0 }
 0x2d8   : > { %v1512_v25 = vsel %vm1499_vm4, %v4728_v17, 0.0  ;;  %v1536_v30 = vsel %vm1499_vm4, %v4736_v0, 0.0  ;;  %v4742_v31 = vadd.f32 %v1482_v23, %v1250_v27 }
 0x2d9   : > { %v1521_v10 = vsel %vm1499_vm4, %v4710_v63, 0.0  ;;  %v4726_v16 = vadd.f32 %v1472_v4, %v1240_v8  ;;  %v4734_v26 = vadd.f32 %v1480_v15, %v1248_v18 }
 0x2da   : > { %v1545_v34 = vsel %vm1499_vm4, %v4742_v31, 0.0 }
 0x2db   : > { %1528 = vadd.xlane.f32.xlu1 %v1527_v5  ;;  %1504 = vadd.xlane.f32.xlu0 %v1503_v6  ;;  %v1515_v24 = vsel %vm1499_vm4, %v4726_v16, 0.0  ;;  %v1539_v29 = vsel %vm1499_vm4, %v4734_v26, 0.0 }
 0x2df   : > { %1522 = vadd.xlane.f32.xlu1 %v1521_v10  ;;  %1519 = vadd.xlane.f32.xlu0 %v1518_v11 }
 0x2e3   : > { %1516 = vadd.xlane.f32.xlu1 %v1515_v24  ;;  %1513 = vadd.xlane.f32.xlu0 %v1512_v25 }
 0x2e7   : > { %1540 = vadd.xlane.f32.xlu1 %v1539_v29  ;;  %1537 = vadd.xlane.f32.xlu0 %v1536_v30 }
 0x2eb   : > { %1546 = vadd.xlane.f32.xlu1 %v1545_v34  ;;  %1543 = vadd.xlane.f32.xlu0 %v1542_v36 }
 0x358   : > { %v1532_v37 = vpop.xlane.xlu0 %1531  ;;  %v1508_v38 = vpop.xlane.xlu1 %1507 }
 0x359   : > { %v1559_v39 = vmul.f32 0.03125, %v1532_v37  ;;  %v1551_v40 = vmul.f32 0.03125, %v1508_v38 }
 0x35b   : > { %v4751_v42 = vsub.f32 %v4676_v21, %v1559_v39  ;;  %v4754_v43 = vsub.f32 %v4678_v22, %v1551_v40 }
 0x35c   : > { %v1511_v44 = vpop.xlane.xlu1 %1510  ;;  %v1502_v45 = vpop.xlane.xlu0 %1501 }
 0x35d   : > { %v1552_v47 = vmul.f32 0.03125, %v1511_v44  ;;  %v1549_v48 = vmul.f32 0.03125, %v1502_v45  ;;  %v1583_v49 = vmul.f32 %v4754_v43, %v4754_v43  ;;  %v1591_v21 = vmul.f32 %v4751_v42, %v4751_v42 }
 0x35f   : > { %v4759_v50 = vsub.f32 %v4688_v35, %v1552_v47  ;;  %v4762_v51 = vsub.f32 %v4686_v32, %v1549_v48  ;;  %v1603_v52 = vsel %vm1499_vm4, %v1583_v49, 0.0  ;;  %v1627_v59 = vsel %vm1499_vm4, %v1591_v21, 0.0 }
 0x360   : > { %v1535_v22 = vpop.xlane.xlu1 %1534  ;;  %1604 = vadd.xlane.f32.xlu0 %v1603_v52  ;;  %v1526_v53 = vpop.xlane.xlu0 %1525 }
 0x361   : > { %v1560_v54 = vmul.f32 0.03125, %v1535_v22  ;;  %v1557_v55 = vmul.f32 0.03125, %v1526_v53  ;;  %v1584_v56 = vmul.f32 %v4759_v50, %v4759_v50  ;;  %v1581_v35 = vmul.f32 %v4762_v51, %v4762_v51 }
 0x363   : > { %v4772_v57 = vsub.f32 %v4697_v46, %v1560_v54  ;;  %v4775_v32 = vsub.f32 %v4693_v41, %v1557_v55  ;;  %v1606_v58 = vsel %vm1499_vm4, %v1584_v56, 0.0  ;;  %v1597_v6 = vsel %vm1499_vm4, %v1581_v35, 0.0 }
 0x364   : > { %v1529_v62 = vpop.xlane.xlu1 %1528  ;;  %1607 = vadd.xlane.f32.xlu1 %v1606_v58  ;;  %1628 = vadd.xlane.f32.xlu0 %v1627_v59  ;;  %v1505_v2 = vpop.xlane.xlu0 %1504 }
 0x365   : > { %v1558_v3 = vmul.f32 0.03125, %v1529_v62  ;;  %v1550_v4 = vmul.f32 0.03125, %v1505_v2  ;;  %v1592_v5 = vmul.f32 %v4772_v57, %v4772_v57  ;;  %v1589_v8 = vmul.f32 %v4775_v32, %v4775_v32 }
 0x367   : > { %v4783_v46 = vsub.f32 %v4706_v60, %v1558_v3  ;;  %v4786_v41 = vsub.f32 %v4708_v61, %v1550_v4  ;;  %v1630_v7 = vsel %vm1499_vm4, %v1592_v5, 0.0  ;;  %v1621_v15 = vsel %vm1499_vm4, %v1589_v8, 0.0 }
 0x368   : > { %v1523_v9 = vpop.xlane.xlu1 %1522  ;;  %1631 = vadd.xlane.f32.xlu1 %v1630_v7  ;;  %1598 = vadd.xlane.f32.xlu0 %v1597_v6  ;;  %v1520_v10 = vpop.xlane.xlu0 %1519 }
 0x369   : > { %v1556_v11 = vmul.f32 0.03125, %v1523_v9  ;;  %v1555_v12 = vmul.f32 0.03125, %v1520_v10  ;;  %v1582_v13 = vmul.f32 %v4786_v41, %v4786_v41  ;;  %v1590_v60 = vmul.f32 %v4783_v46, %v4783_v46 }
 0x36b   : > { %v4796_v61 = vsub.f32 %v4710_v63, %v1556_v11  ;;  %v4799_v14 = vsub.f32 %v4712_v1, %v1555_v12  ;;  %v1600_v18 = vsel %vm1499_vm4, %v1582_v13, 0.0  ;;  %v1624_v27 = vsel %vm1499_vm4, %v1590_v60, 0.0 }
 0x36c   : > { %v1517_v19 = vpop.xlane.xlu1 %1516  ;;  %1622 = vadd.xlane.f32.xlu0 %v1621_v15  ;;  %1601 = vadd.xlane.f32.xlu1 %v1600_v18  ;;  %v1514_v20 = vpop.xlane.xlu0 %1513 }
 0x36d   : > { %v1554_v23 = vmul.f32 0.03125, %v1517_v19  ;;  %v1553_v24 = vmul.f32 0.03125, %v1514_v20  ;;  %v1587_v25 = vmul.f32 %v4799_v14, %v4799_v14  ;;  %v1588_v29 = vmul.f32 %v4796_v61, %v4796_v61 }
 0x36f   : > { %v4807_v63 = vsub.f32 %v4726_v16, %v1554_v23  ;;  %v4810_v1 = vsub.f32 %v4728_v17, %v1553_v24  ;;  %v1615_v28 = vsel %vm1499_vm4, %v1587_v25, 0.0  ;;  %v1618_v40 = vsel %vm1499_vm4, %v1588_v29, 0.0  ;;  %v4847_v29 = vld [vmem:[%s4482_s26] ss:$0 sm:$0xff] }
 0x370   : > { %v1541_v30 = vpop.xlane.xlu1 %1540  ;;  %1625 = vadd.xlane.f32.xlu1 %v1624_v27  ;;  %1616 = vadd.xlane.f32.xlu0 %v1615_v28  ;;  %v1538_v34 = vpop.xlane.xlu0 %1537 }
 0x371   : > { %v1562_v36 = vmul.f32 0.03125, %v1541_v30  ;;  %v1561_v37 = vmul.f32 0.03125, %v1538_v34  ;;  %v1585_v38 = vmul.f32 %v4810_v1, %v4810_v1  ;;  %v1586_v16 = vmul.f32 %v4807_v63, %v4807_v63 }
 0x373   : > { %v4820_v17 = vsub.f32 %v4734_v26, %v1562_v36  ;;  %v4823_v39 = vsub.f32 %v4736_v0, %v1561_v37  ;;  %v1609_v44 = vsel %vm1499_vm4, %v1585_v38, 0.0  ;;  %v1612_v21 = vsel %vm1499_vm4, %v1586_v16, 0.0  ;;  %v4851_v37 = vld [vmem:[%s4487_s29] ss:$0 sm:$0xff] }
 0x374   : > { %v1547_v45 = vpop.xlane.xlu1 %1546  ;;  %1619 = vadd.xlane.f32.xlu1 %v1618_v40  ;;  %1610 = vadd.xlane.f32.xlu0 %v1609_v44  ;;  %v1544_v47 = vpop.xlane.xlu0 %1543 }
 0x375   : > { %v1564_v48 = vmul.f32 0.03125, %v1547_v45  ;;  %v1563_v49 = vmul.f32 0.03125, %v1544_v47  ;;  %v1593_v52 = vmul.f32 %v4823_v39, %v4823_v39  ;;  %v1594_v53 = vmul.f32 %v4820_v17, %v4820_v17 }
 0x377   : > { %v4831_v26 = vsub.f32 %v4742_v31, %v1564_v48  ;;  %v4834_v0 = vsub.f32 %v4744_v33, %v1563_v49  ;;  %v1633_v22 = vsel %vm1499_vm4, %v1593_v52, 0.0  ;;  %v1636_v55 = vsel %vm1499_vm4, %v1594_v53, 0.0 }
 0x378   : > { %1613 = vadd.xlane.f32.xlu1 %v1612_v21  ;;  %1634 = vadd.xlane.f32.xlu0 %v1633_v22 }
 0x379   : > { %v1595_v54 = vmul.f32 %v4834_v0, %v4834_v0  ;;  %v1596_v31 = vmul.f32 %v4831_v26, %v4831_v26 }
 0x37b   : > { %v1639_v56 = vsel %vm1499_vm4, %v1595_v54, 0.0  ;;  %v1642_v33 = vsel %vm1499_vm4, %v1596_v31, 0.0 }
 0x37c   : > { %1637 = vadd.xlane.f32.xlu1 %v1636_v55  ;;  %1640 = vadd.xlane.f32.xlu0 %v1639_v56 }
 0x380   : > { %1643 = vadd.xlane.f32.xlu1 %v1642_v33 }
 0x3e9   : > { %v1605_v35 = vpop.xlane.xlu0 %1604 }
 0x3ea   : > { %v1647_v58 = vmul.f32 0.03125, %v1605_v35 }
 0x3ec   : > { %v1663_v59 = vadd.f32 1e-05, %v1647_v58 }
 0x3ed   : > { %v1608_v62 = vpop.xlane.xlu1 %1607  ;;  %v1629_v2 = vpop.xlane.xlu0 %1628 }
 0x3ee   : > { %4235 = vrsqrt.f32 %v1663_v59  ;;  %v1648_v3 = vmul.f32 0.03125, %v1608_v62  ;;  %v1655_v4 = vmul.f32 0.03125, %v1629_v2 }
 0x3f0   : > { %v1664_v5 = vadd.f32 1e-05, %v1648_v3  ;;  %v1671_v6 = vadd.f32 1e-05, %v1655_v4 }
 0x3f1   : > { %v1632_v7 = vpop.xlane.xlu1 %1631  ;;  %v1599_v8 = vpop.xlane.xlu0 %1598 }
 0x3f2   : > { %4237 = vrsqrt.f32 %v1664_v5  ;;  %v1656_v9 = vmul.f32 0.03125, %v1632_v7  ;;  %v1645_v10 = vmul.f32 0.03125, %v1599_v8 }
 0x3f3   : > { %4239 = vrsqrt.f32 %v1671_v6 }
 0x3f4   : > { %v1672_v11 = vadd.f32 1e-05, %v1656_v9  ;;  %v1661_v12 = vadd.f32 1e-05, %v1645_v10 }
 0x3f5   : > { %v1602_v13 = vpop.xlane.xlu1 %1601  ;;  %v1623_v60 = vpop.xlane.xlu0 %1622 }
 0x3f6   : > { %4241 = vrsqrt.f32 %v1672_v11  ;;  %v1646_v15 = vmul.f32 0.03125, %v1602_v13  ;;  %v1653_v18 = vmul.f32 0.03125, %v1623_v60 }
 0x3f7   : > { %4243 = vrsqrt.f32 %v1661_v12 }
 0x3f8   : > { %v1662_v19 = vadd.f32 1e-05, %v1646_v15  ;;  %v1669_v20 = vadd.f32 1e-05, %v1653_v18 }
 0x3f9   : > { %v1626_v23 = vpop.xlane.xlu1 %1625  ;;  %v1617_v24 = vpop.xlane.xlu0 %1616 }
 0x3fa   : > { %4245 = vrsqrt.f32 %v1662_v19  ;;  %v1654_v25 = vmul.f32 0.03125, %v1626_v23  ;;  %v1651_v27 = vmul.f32 0.03125, %v1617_v24 }
 0x3fb   : > { %v4236_v28 = vpop.eup %4235  ;;  %4247 = vrsqrt.f32 %v1669_v20 }
 0x3fc   : > { %v1695_v30 = vmul.f32 %v4236_v28, %v4754_v43  ;;  %v1670_v34 = vadd.f32 1e-05, %v1654_v25  ;;  %v1667_v36 = vadd.f32 1e-05, %v1651_v27 }
 0x3fd   : > { %v1620_v38 = vpop.xlane.xlu1 %1619  ;;  %v1611_v16 = vpop.xlane.xlu0 %1610 }
 0x3fe   : > { %v1718_v40 = vmul.f32 %v4847_v29, %v1695_v30  ;;  %4249 = vrsqrt.f32 %v1670_v34  ;;  %v1652_v44 = vmul.f32 0.03125, %v1620_v38  ;;  %v1649_v45 = vmul.f32 0.03125, %v1611_v16 }
 0x3ff   : > { %v4238_v47 = vpop.eup %4237  ;;  %4251 = vrsqrt.f32 %v1667_v36 }
 0x400   : > { %v4240_v48 = vpop.eup %4239  ;;  %v4855_v49 = vadd.f32 %v4851_v37, %v1718_v40  ;;  %v1696_v52 = vmul.f32 %v4238_v47, %v4759_v50  ;;  %v1668_v43 = vadd.f32 1e-05, %v1652_v44  ;;  %v1665_v21 = vadd.f32 1e-05, %v1649_v45 }
 0x401   : > { %v1703_v22 = vmul.f32 %v4240_v48, %v4751_v42  ;;  %v1614_v53 = vpop.xlane.xlu1 %1613  ;;  %v1635_v54 = vpop.xlane.xlu0 %1634 }
 0x402   : > { %1757 = vst.msk [vmem:[#allocation2 + $0x10] sm:$0xff] %vm1499_vm4, %v4855_v49  ;;  %v1719_v55 = vmul.f32 %v4847_v29, %v1696_v52  ;;  %4253 = vrsqrt.f32 %v1668_v43  ;;  %v1650_v56 = vmul.f32 0.03125, %v1614_v53  ;;  %v1657_v31 = vmul.f32 0.03125, %v1635_v54 }
 0x403   : > { %v4242_v33 = vpop.eup %4241  ;;  %v1726_v35 = vmul.f32 %v4847_v29, %v1703_v22  ;;  %4255 = vrsqrt.f32 %v1665_v21 }
 0x404   : > { %v4244_v58 = vpop.eup %4243  ;;  %v4864_v50 = vadd.f32 %v4851_v37, %v1719_v55  ;;  %v1704_v42 = vmul.f32 %v4242_v33, %v4772_v57  ;;  %v1666_v59 = vadd.f32 1e-05, %v1650_v56  ;;  %v1673_v62 = vadd.f32 1e-05, %v1657_v31 }
 0x405   : > { %v4868_v2 = vadd.f32 %v4851_v37, %v1726_v35  ;;  %v1693_v3 = vmul.f32 %v4244_v58, %v4762_v51  ;;  %v1638_v4 = vpop.xlane.xlu1 %1637  ;;  %v1641_v5 = vpop.xlane.xlu0 %1640 }
 0x406   : > { %1758 = vst.msk [vmem:[#allocation2 + $0x18] sm:$0xff] %vm1499_vm4, %v4864_v50  ;;  %v1727_v6 = vmul.f32 %v4847_v29, %v1704_v42  ;;  %4257 = vrsqrt.f32 %v1666_v59  ;;  %v1658_v7 = vmul.f32 0.03125, %v1638_v4  ;;  %v1659_v8 = vmul.f32 0.03125, %v1641_v5 }
 0x407   : > { %v4246_v9 = vpop.eup %4245  ;;  %1765 = vst.msk [vmem:[#allocation2 + $0x50] sm:$0xff] %vm1499_vm4, %v4868_v2  ;;  %v1716_v57 = vmul.f32 %v4847_v29, %v1693_v3  ;;  %4259 = vrsqrt.f32 %v1673_v62 }
 0x408   : > { %v4248_v10 = vpop.eup %4247  ;;  %v4878_v51 = vadd.f32 %v4851_v37, %v1727_v6  ;;  %v1694_v11 = vmul.f32 %v4246_v9, %v4786_v41  ;;  %v1674_v12 = vadd.f32 1e-05, %v1658_v7  ;;  %v1675_v13 = vadd.f32 1e-05, %v1659_v8 }
 0x409   : > { %v4882_v60 = vadd.f32 %v4851_v37, %v1716_v57  ;;  %v1701_v15 = vmul.f32 %v4248_v10, %v4775_v32  ;;  %v1644_v18 = vpop.xlane.xlu1 %1643 }
 0x40a   : > { %1766 = vst.msk [vmem:[#allocation2 + $0x58] sm:$0xff] %vm1499_vm4, %v4878_v51  ;;  %v1717_v19 = vmul.f32 %v4847_v29, %v1694_v11  ;;  %4261 = vrsqrt.f32 %v1674_v12  ;;  %v1660_v20 = vmul.f32 0.03125, %v1644_v18 }
 0x40b   : > { %v4250_v23 = vpop.eup %4249  ;;  %1755 = vst.msk [vmem:[#allocation2] sm:$0xff] %vm1499_vm4, %v4882_v60  ;;  %v1724_v41 = vmul.f32 %v4847_v29, %v1701_v15  ;;  %4263 = vrsqrt.f32 %v1675_v13 }
 0x40c   : > { %v4252_v24 = vpop.eup %4251  ;;  %v4892_v25 = vadd.f32 %v4851_v37, %v1717_v19  ;;  %v1702_v32 = vmul.f32 %v4250_v23, %v4783_v46  ;;  %v1676_v27 = vadd.f32 1e-05, %v1660_v20 }
 0x40d   : > { %v4896_v28 = vadd.f32 %v4851_v37, %v1724_v41  ;;  %v1699_v30 = vmul.f32 %v4252_v24, %v4799_v14 }
 0x40e   : > { %1756 = vst.msk [vmem:[#allocation2 + $0x8] sm:$0xff] %vm1499_vm4, %v4892_v25  ;;  %v1725_v34 = vmul.f32 %v4847_v29, %v1702_v32  ;;  %4265 = vrsqrt.f32 %v1676_v27 }
 0x40f   : > { %v4254_v36 = vpop.eup %4253  ;;  %1763 = vst.msk [vmem:[#allocation2 + $0x40] sm:$0xff] %vm1499_vm4, %v4896_v28  ;;  %v1722_v38 = vmul.f32 %v4847_v29, %v1699_v30 }
 0x410   : > { %v4256_v16 = vpop.eup %4255  ;;  %v4906_v46 = vadd.f32 %v4851_v37, %v1725_v34  ;;  %v1700_v40 = vmul.f32 %v4254_v36, %v4796_v61 }
 0x411   : > { %v4910_v14 = vadd.f32 %v4851_v37, %v1722_v38  ;;  %v1697_v44 = vmul.f32 %v4256_v16, %v4810_v1 }
 0x412   : > { %1764 = vst.msk [vmem:[#allocation2 + $0x48] sm:$0xff] %vm1499_vm4, %v4906_v46  ;;  %v1723_v45 = vmul.f32 %v4847_v29, %v1700_v40 }
 0x413   : > { %v4258_v47 = vpop.eup %4257  ;;  %1761 = vst.msk [vmem:[#allocation2 + $0x30] sm:$0xff] %vm1499_vm4, %v4910_v14  ;;  %v1720_v48 = vmul.f32 %v4847_v29, %v1697_v44 }
 0x414   : > { %v4260_v52 = vpop.eup %4259  ;;  %v4920_v43 = vadd.f32 %v4851_v37, %v1723_v45  ;;  %v1698_v61 = vmul.f32 %v4258_v47, %v4807_v63 }
 0x415   : > { %v4924_v21 = vadd.f32 %v4851_v37, %v1720_v48  ;;  %v1705_v1 = vmul.f32 %v4260_v52, %v4823_v39 }
 0x416   : > { %1762 = vst.msk [vmem:[#allocation2 + $0x38] sm:$0xff] %vm1499_vm4, %v4920_v43  ;;  %v1721_v22 = vmul.f32 %v4847_v29, %v1698_v61 }
 0x417   : > { %v4262_v53 = vpop.eup %4261  ;;  %1759 = vst.msk [vmem:[#allocation2 + $0x20] sm:$0xff] %vm1499_vm4, %v4924_v21  ;;  %v1728_v54 = vmul.f32 %v4847_v29, %v1705_v1 }
 0x418   : > { %v4264_v55 = vpop.eup %4263  ;;  %v4934_v56 = vadd.f32 %v4851_v37, %v1721_v22  ;;  %v1706_v63 = vmul.f32 %v4262_v53, %v4820_v17 }
 0x419   : > { %v4938_v31 = vadd.f32 %v4851_v37, %v1728_v54  ;;  %v1707_v39 = vmul.f32 %v4264_v55, %v4834_v0 }
 0x41a   : > { %1760 = vst.msk [vmem:[#allocation2 + $0x28] sm:$0xff] %vm1499_vm4, %v4934_v56  ;;  %v1729_v33 = vmul.f32 %v4847_v29, %v1706_v63 }
 0x41b   : > { %v4266_v35 = vpop.eup %4265  ;;  %1767 = vst.msk [vmem:[#allocation2 + $0x60] sm:$0xff] %vm1499_vm4, %v4938_v31  ;;  %v1730_v58 = vmul.f32 %v4847_v29, %v1707_v39 }
 0x41c   : > { %v4948_v42 = vadd.f32 %v4851_v37, %v1729_v33  ;;  %v1708_v17 = vmul.f32 %v4266_v35, %v4831_v26 }
 0x41d   : > { %v4952_v59 = vadd.f32 %v4851_v37, %v1730_v58 }
 0x41e   : > { %1768 = vst.msk [vmem:[#allocation2 + $0x68] sm:$0xff] %vm1499_vm4, %v4948_v42  ;;  %v1731_v0 = vmul.f32 %v4847_v29, %v1708_v17  ;;  %1774 = sbr.rel (%p3528_p9) target bundleno = 1281 (0x501), region = 139 }
 0x41f   : > { %1769 = vst.msk [vmem:[#allocation2 + $0x70] sm:$0xff] %vm1499_vm4, %v4952_v59 }
 0x420   : > { %v4960_v62 = vadd.f32 %v4851_v37, %v1731_v0 }
 0x422   : > { %1770 = vst.msk [vmem:[#allocation2 + $0x78] sm:$0xff] %vm1499_vm4, %v4960_v62 }
 0x423   : > { %3941 = vmatprep.mubr.msk.f32.mxu0 %vm1499_vm4, %v4882_v60  ;;  %3953 = vmatprep.mubr.msk.f32.mxu1 %vm1499_vm4, %v4896_v28  ;;  %s5538_s23 = smov (!%p1776_p10, %s1775_s23), 1  ;;  %vm2043_vm5 = vcmask 257024  }
 0x424   : > { %s3529_s25 = sshll.u32 %s5538_s23, 5 }
 0x425   : > { %s1779_s27 = scalar_lea.vmem %s5497_s5, %s3529_s25 }
 0x426   : > { %v1783_v26 = vld [vmem:[%s1779_s27 + $0x18] sm:$0xff]  ;;  %v1782_v29 = vld [vmem:[%s1779_s27 + $0x10] sm:$0xff]  ;;  %v1781_v37 = vld [vmem:[%s1779_s27 + $0x8] sm:$0xff] }
 0x427   : > { %3933 = vmatprep.subr.mxu0 %v1783_v26  ;;  %4156 = vmatprep.subr.mxu1 %v1783_v26  ;;  %v1780_v3 = vld [vmem:[%s1779_s27] sm:$0xff] }
 0x428   : > { %3934 = vmatpush3.msra.mxu0 %v1783_v26  ;;  %4160 = vmatpush3.msra.mxu1 %v1783_v26 }
 0x429   : > { %3935 = vmatprep.subr.mxu0 %v1782_v29  ;;  %4157 = vmatprep.subr.mxu1 %v1782_v29 }
 0x42a   : > { %3936 = vmatpush3.msra.mxu0 %v1782_v29  ;;  %4161 = vmatpush3.msra.mxu1 %v1782_v29 }
 0x42b   : > { %3937 = vmatprep.subr.mxu0 %v1781_v37  ;;  %4158 = vmatprep.subr.mxu1 %v1781_v37 }
 0x42c   : > { %3938 = vmatpush3.msra.mxu0 %v1781_v37  ;;  %4162 = vmatpush3.msra.mxu1 %v1781_v37 }
 0x42d   : > { %3939 = vmatprep.subr.mxu0 %v1780_v3  ;;  %4159 = vmatprep.subr.mxu1 %v1780_v3 }
 0x42e   : > { %3940 = vmatpush3.msra.mxu0 %v1780_v3  ;;  %4163 = vmatpush3.msra.mxu1 %v1780_v3 }
 0x42f   : > { %3942 = vmatmul.mubr.msk.f32.vlgmr.msra.gmra.mxu0 %vm1499_vm4, %v4892_v25  ;;  %3954 = vmatmul.mubr.msk.f32.vlgmr.msra.gmra.mxu1 %vm1499_vm4, %v4906_v46 }
 0x430   : > { %3944 = vmatprep.mubr.msk.f32.mxu0 %vm1499_vm4, %v4855_v49  ;;  %3956 = vmatprep.mubr.msk.f32.mxu1 %vm1499_vm4, %v4868_v2 }
 0x433   : > { %3945 = vmatmul.mubr.msk.f32.gmra.mxu0 %vm1499_vm4, %v4864_v50  ;;  %3957 = vmatmul.mubr.msk.f32.gmra.mxu1 %vm1499_vm4, %v4878_v51 }
 0x434   : > { %3947 = vmatprep.mubr.msk.f32.mxu0 %vm1499_vm4, %v4924_v21  ;;  %3959 = vmatprep.mubr.msk.f32.mxu1 %vm1499_vm4, %v4938_v31 }
 0x437   : > { %3948 = vmatmul.mubr.msk.f32.gmra.mxu0 %vm1499_vm4, %v4934_v56  ;;  %3960 = vmatmul.mubr.msk.f32.gmra.mxu1 %vm1499_vm4, %v4948_v42 }
 0x438   : > { %3950 = vmatprep.mubr.msk.f32.mxu0 %vm1499_vm4, %v4910_v14  ;;  %3962 = vmatprep.mubr.msk.f32.mxu1 %vm1499_vm4, %v4952_v59 }
 0x43b   : > { %3951 = vmatmul.mubr.msk.f32.gmra.mxu0 %vm1499_vm4, %v4920_v43  ;;  %3963 = vmatmul.mubr.msk.f32.gmra.mxu1 %vm1499_vm4, %v4960_v62 }
 0x4ef   : > { %v3943_v4 = vpop.f32.mrf.mxu0  ;;  %v3955_v5 = vpop.f32.mrf.mxu1 }
 0x4f0   : > { %v3649_v6 = vpack.c.bf16 %v3943_v4, %v3943_v4  ;;  %v3657_v7 = vpack.c.bf16 %v3955_v5, %v3955_v5 }
 0x4f1   : > { %v1898_v8 = vpop.f32.mrf.mxu0  ;;  %v1938_v9 = vpop.f32.mrf.mxu1 }
 0x4f2   : > { %2045 = vst.msk [vmem:[#allocation4 + $0x4] sm:$0xf] %vm2043_vm5, %v3649_v6  ;;  %2053 = vst.msk [vmem:[#allocation4 + $0x24] sm:$0xf] %vm2043_vm5, %v3657_v7  ;;  %v3648_v57 = vpack.c.bf16 %v1898_v8, %v1898_v8  ;;  %v3656_v10 = vpack.c.bf16 %v1938_v9, %v1938_v9 }
 0x4f3   : > { %v3946_v11 = vpop.f32.mrf.mxu0  ;;  %v3958_v12 = vpop.f32.mrf.mxu1 }
 0x4f4   : > { %2044 = vst.msk [vmem:[#allocation4] sm:$0xf] %vm2043_vm5, %v3648_v57  ;;  %2052 = vst.msk [vmem:[#allocation4 + $0x20] sm:$0xf] %vm2043_vm5, %v3656_v10  ;;  %v3651_v13 = vpack.c.bf16 %v3946_v11, %v3946_v11  ;;  %v3659_v15 = vpack.c.bf16 %v3958_v12, %v3958_v12 }
 0x4f5   : > { %v1908_v18 = vpop.f32.mrf.mxu0  ;;  %v1948_v19 = vpop.f32.mrf.mxu1 }
 0x4f6   : > { %2047 = vst.msk [vmem:[#allocation4 + $0xc] sm:$0xf] %vm2043_vm5, %v3651_v13  ;;  %2055 = vst.msk [vmem:[#allocation4 + $0x2c] sm:$0xf] %vm2043_vm5, %v3659_v15  ;;  %v3650_v20 = vpack.c.bf16 %v1908_v18, %v1908_v18  ;;  %v3658_v23 = vpack.c.bf16 %v1948_v19, %v1948_v19 }
 0x4f7   : > { %v3949_v41 = vpop.f32.mrf.mxu0  ;;  %v3961_v24 = vpop.f32.mrf.mxu1 }
 0x4f8   : > { %2046 = vst.msk [vmem:[#allocation4 + $0x8] sm:$0xf] %vm2043_vm5, %v3650_v20  ;;  %2054 = vst.msk [vmem:[#allocation4 + $0x28] sm:$0xf] %vm2043_vm5, %v3658_v23  ;;  %v3653_v32 = vpack.c.bf16 %v3949_v41, %v3949_v41  ;;  %v3661_v27 = vpack.c.bf16 %v3961_v24, %v3961_v24 }
 0x4f9   : > { %v1918_v30 = vpop.f32.mrf.mxu0  ;;  %v1958_v34 = vpop.f32.mrf.mxu1 }
 0x4fa   : > { %2049 = vst.msk [vmem:[#allocation4 + $0x14] sm:$0xf] %vm2043_vm5, %v3653_v32  ;;  %2057 = vst.msk [vmem:[#allocation4 + $0x34] sm:$0xf] %vm2043_vm5, %v3661_v27  ;;  %v3652_v36 = vpack.c.bf16 %v1918_v30, %v1918_v30  ;;  %v3660_v38 = vpack.c.bf16 %v1958_v34, %v1958_v34 }
 0x4fb   : > { %v3952_v16 = vpop.f32.mrf.mxu0  ;;  %v3964_v40 = vpop.f32.mrf.mxu1 }
 0x4fc   : > { %2048 = vst.msk [vmem:[#allocation4 + $0x10] sm:$0xf] %vm2043_vm5, %v3652_v36  ;;  %2056 = vst.msk [vmem:[#allocation4 + $0x30] sm:$0xf] %vm2043_vm5, %v3660_v38  ;;  %v3655_v44 = vpack.c.bf16 %v3952_v16, %v3952_v16  ;;  %v3663_v45 = vpack.c.bf16 %v3964_v40, %v3964_v40 }
 0x4fd   : > { %v1928_v47 = vpop.f32.mrf.mxu0  ;;  %v1968_v48 = vpop.f32.mrf.mxu1 }
 0x4fe   : > { %2051 = vst.msk [vmem:[#allocation4 + $0x1c] sm:$0xf] %vm2043_vm5, %v3655_v44  ;;  %2059 = vst.msk [vmem:[#allocation4 + $0x3c] sm:$0xf] %vm2043_vm5, %v3663_v45  ;;  %v3654_v52 = vpack.c.bf16 %v1928_v47, %v1928_v47  ;;  %v3662_v61 = vpack.c.bf16 %v1968_v48, %v1968_v48 }
 0x500   : > { %2050 = vst.msk [vmem:[#allocation4 + $0x18] sm:$0xf] %vm2043_vm5, %v3654_v52  ;;  %2058 = vst.msk [vmem:[#allocation4 + $0x38] sm:$0xf] %vm2043_vm5, %v3662_v61 }
 0x501 PF: > { %p3562_p11 = scmp.ne.s32.totalorder %s4331_s20, 1 }
 0x502   : > { %s5526_s1 = sld [smem:[#allocation16_spill]] (!%p3562_p11) }
 0x503   : > { %2063 = sbr.rel (%p3562_p11) target bundleno = 1517 (0x5ed), region = 143 }
 0x508   : > { %v4342_v1 = vmov 0.0   ;;  %vm4343_vm6 = vmmov 0   ;;  %vm2140_vm7 = vcmask 254976  }
 0x509   : > { %3965 = vmatprep.subr.mxu0 %v4342_v1  ;;  %3997 = vmatprep.mubr.msk.f32.mxu0 %vm4343_vm6, %v4342_v1 }
 0x50a   : > { %3966 = vmatpush3.msra.mxu0 %v4960_v62 }
 0x50b   : > { %3967 = vmatprep.subr.mxu0 %v4342_v1 }
 0x50c   : > { %3968 = vmatpush3.msra.mxu0 %v4952_v59 }
 0x50d   : > { %3969 = vmatprep.subr.mxu0 %v4342_v1 }
 0x50e   : > { %3970 = vmatpush3.msra.mxu0 %v4948_v42 }
 0x50f   : > { %3971 = vmatprep.subr.mxu0 %v4342_v1 }
 0x510   : > { %3972 = vmatpush3.msra.mxu0 %v4938_v31 }
 0x511   : > { %3973 = vmatprep.subr.mxu0 %v4342_v1 }
 0x512   : > { %3974 = vmatpush3.msra.mxu0 %v4878_v51  ;;  %v2064_v51 = vld [vmem:[#allocation5] sm:$0x3] }
 0x513   : > { %3975 = vmatprep.subr.mxu0 %v4342_v1 }
 0x514   : > { %3976 = vmatpush3.msra.mxu0 %v4868_v2  ;;  %v2068_v2 = vld [vmem:[%s5526_s1] sm:$0x3] }
 0x515   : > { %3977 = vmatprep.subr.mxu0 %v4342_v1 }
 0x516   : > { %3978 = vmatpush3.msra.mxu0 %v4906_v46 }
 0x517   : > { %3979 = vmatprep.subr.mxu0 %v4342_v1 }
 0x518   : > { %3980 = vmatpush3.msra.mxu0 %v4896_v28 }
 0x519   : > { %3981 = vmatprep.subr.mxu0 %v4342_v1 }
 0x51a   : > { %3982 = vmatpush3.msra.mxu0 %v4920_v43 }
 0x51b   : > { %3983 = vmatprep.subr.mxu0 %v4342_v1 }
 0x51c   : > { %3984 = vmatpush3.msra.mxu0 %v4910_v14 }
 0x51d   : > { %3985 = vmatprep.subr.mxu0 %v4342_v1 }
 0x51e   : > { %3986 = vmatpush3.msra.mxu0 %v4934_v56 }
 0x51f   : > { %3987 = vmatprep.subr.mxu0 %v4342_v1 }
 0x520   : > { %3988 = vmatpush3.msra.mxu0 %v4924_v21 }
 0x521   : > { %3989 = vmatprep.subr.mxu0 %v4342_v1 }
 0x522   : > { %3990 = vmatpush3.msra.mxu0 %v4864_v50 }
 0x523   : > { %3991 = vmatprep.subr.mxu0 %v4342_v1 }
 0x524   : > { %3992 = vmatpush3.msra.mxu0 %v4855_v49 }
 0x525   : > { %3993 = vmatprep.subr.mxu0 %v4342_v1 }
 0x526   : > { %3994 = vmatpush3.msra.mxu0 %v4892_v25 }
 0x527   : > { %3995 = vmatprep.subr.mxu0 %v4342_v1 }
 0x528   : > { %3996 = vmatpush3.msra.mxu0 %v4882_v60 }
 0x529   : > { %3998 = vmatmul.mubr.f32.vlgmr.msra.gmra.mxu0 %v2068_v2 }
 0x5e9   : > { %v2135_v28 = vpop.f32.mrf.mxu0 }
 0x5ea   : > { %v2139_v46 = vadd.f32 %v2135_v28, %v2064_v51 }
 0x5eb   : > { %v3999_v14 = vpop.f32.mrf.mxu0 }
 0x5ec   : > { %2141 = vst.msk [vmem:[#allocation5] sm:$0x3] %vm2140_vm7, %v2139_v46 }
 0x5ed PF: > { %p3563_p12 = scmp.ne.s32.totalorder %s5536_s2, 1 }
 0x5ee   : > { %p3583_p13 = scmp.ge.s32.totalorder (!%p3563_p12), %s4331_s20, 1 }
 0x5ef   : > { %2145 = sbr.rel (%p3563_p12) target bundleno = 2556 (0x9fc), region = 147 }
 0x5f4   : > { %v4267_v49 = vld [vmem:[#allocation4 + $0x38] sm:$0xff]   ;;  %v4268_v50 = vld [vmem:[#allocation4 + $0x30] sm:$0xff]   ;;  %v4269_v60 = vld [vmem:[#allocation4 + $0x28] sm:$0xff]   ;;  %vm2431_vm8 = vcmask 261120  }
 0x5f5   : > { %4000 = vmatprep.subr.bf16.mxu0 %v4267_v49  ;;  %4164 = vmatprep.subr.bf16.mxu1 %v4267_v49  ;;  %v4270_v25 = vld [vmem:[#allocation4 + $0x20] sm:$0xff]   ;;  %v4271_v22 = vld [vmem:[#allocation4 + $0x18] sm:$0xff]   ;;  %v4272_v53 = vld [vmem:[#allocation4 + $0x10] sm:$0xff]  }
 0x5f6   : > { %4001 = vmatpush3.bf16.msra.mxu0 %v4267_v49  ;;  %4172 = vmatpush3.bf16.msra.mxu1 %v4267_v49  ;;  %v4275_v43 = vld [vmem:[#allocation6] sm:$0xff]   ;;  %v4277_v56 = vld [vmem:[#allocation6 + $0x8] sm:$0xff]   ;;  %v4279_v31 = vld [vmem:[#allocation6 + $0x10] sm:$0xff]  }
 0x5f7   : > { %4002 = vmatprep.subr.bf16.mxu0 %v4268_v50  ;;  %4165 = vmatprep.subr.bf16.mxu1 %v4268_v50  ;;  %v4276_v21 = vld [vmem:[#allocation6 + $0x20] sm:$0xff]   ;;  %v4278_v63 = vld [vmem:[#allocation6 + $0x28] sm:$0xff]   ;;  %v4281_v39 = vld [vmem:[#allocation6 + $0x30] sm:$0xff]  }
 0x5f8   : > { %4016 = vmatprep.mubr.bf16.mxu0 %v4275_v43  ;;  %4024 = vmatprep.mubr.bf16.mxu1 %v4276_v21  ;;  %v4273_v54 = vld [vmem:[#allocation4 + $0x8] sm:$0xff]   ;;  %v4274_v55 = vld [vmem:[#allocation4] sm:$0xff]   ;;  %v2177_v5 = vld [vmem:[#allocation2 + $0x50] sm:$0xff] }
 0x5f9   : > { %v4280_v33 = vld [vmem:[#allocation6 + $0x18] sm:$0xff]   ;;  %v2169_v6 = vld [vmem:[#allocation2 + $0x10] sm:$0xff] }
 0x5fa   : > { %4003 = vmatpush3.bf16.msra.mxu0 %v4268_v50  ;;  %4173 = vmatpush3.bf16.msra.mxu1 %v4268_v50  ;;  %v4282_v35 = vld [vmem:[#allocation6 + $0x38] sm:$0xff]   ;;  %v2176_v50 = vld [vmem:[#allocation2 + $0x48] sm:$0xff] }
 0x5fb   : > { %4004 = vmatprep.subr.bf16.mxu0 %v4269_v60  ;;  %4166 = vmatprep.subr.bf16.mxu1 %v4269_v60  ;;  %v5039_v58 = vld [vmem:[%s4477_s24] ss:$0 sm:$0xff]  ;;  %v2170_v19 = vld [vmem:[#allocation2 + $0x18] sm:$0xff]  ;;  %s2707_s24 = sadd.s32 (!%p3583_p13), 1, %s4331_s20 }
 0x5fc   : > { %v2167_v11 = vld [vmem:[#allocation2] sm:$0xff]  ;;  %v2178_v44 = vld [vmem:[#allocation2 + $0x58] sm:$0xff]  ;;  %p2708_p0 = scmp.lt.s32.totalorder (!%p3583_p13), %s2707_s24, 1 }
 0x5fd   : > { %v2175_v16 = vld [vmem:[#allocation2 + $0x40] sm:$0xff] }
 0x5fe   : > { %4005 = vmatpush3.bf16.msra.mxu0 %v4269_v60  ;;  %4174 = vmatpush3.bf16.msra.mxu1 %v4269_v60  ;;  %v2168_v60 = vld [vmem:[#allocation2 + $0x8] sm:$0xff] }
 0x5ff   : > { %4006 = vmatprep.subr.bf16.mxu0 %v4270_v25  ;;  %4167 = vmatprep.subr.bf16.mxu1 %v4270_v25 }
 0x602   : > { %4007 = vmatpush3.bf16.msra.mxu0 %v4270_v25  ;;  %4175 = vmatpush3.bf16.msra.mxu1 %v4270_v25 }
 0x603   : > { %4008 = vmatprep.subr.bf16.mxu0 %v4271_v22  ;;  %4168 = vmatprep.subr.bf16.mxu1 %v4271_v22 }
 0x606   : > { %4009 = vmatpush3.bf16.msra.mxu0 %v4271_v22  ;;  %4176 = vmatpush3.bf16.msra.mxu1 %v4271_v22 }
 0x607   : > { %4010 = vmatprep.subr.bf16.mxu0 %v4272_v53  ;;  %4169 = vmatprep.subr.bf16.mxu1 %v4272_v53 }
 0x60a   : > { %4011 = vmatpush3.bf16.msra.mxu0 %v4272_v53  ;;  %4177 = vmatpush3.bf16.msra.mxu1 %v4272_v53 }
 0x60b   : > { %4012 = vmatprep.subr.bf16.mxu0 %v4273_v54  ;;  %4170 = vmatprep.subr.bf16.mxu1 %v4273_v54 }
 0x60e   : > { %4013 = vmatpush3.bf16.msra.mxu0 %v4273_v54  ;;  %4178 = vmatpush3.bf16.msra.mxu1 %v4273_v54  ;;  %v2174_v54 = vld [vmem:[#allocation2 + $0x38] sm:$0xff] }
 0x60f   : > { %4014 = vmatprep.subr.bf16.mxu0 %v4274_v55  ;;  %4171 = vmatprep.subr.bf16.mxu1 %v4274_v55 }
 0x612   : > { %4015 = vmatpush3.bf16.msra.mxu0 %v4274_v55  ;;  %4179 = vmatpush3.bf16.msra.mxu1 %v4274_v55  ;;  %v2173_v55 = vld [vmem:[#allocation2 + $0x30] sm:$0xff] }
 0x615   : > { %4017 = vmatmul.mubr.bf16.vlgmr.msra.gmra.mxu0 %v4277_v56  ;;  %4025 = vmatmul.mubr.bf16.vlgmr.msra.gmra.mxu1 %v4278_v63 }
 0x616   : > { %4020 = vmatprep.mubr.bf16.mxu0 %v4279_v31  ;;  %4028 = vmatprep.mubr.bf16.mxu1 %v4281_v39 }
 0x61d   : > { %4021 = vmatmul.mubr.bf16.gmra.mxu0 %v4280_v33  ;;  %4029 = vmatmul.mubr.bf16.gmra.mxu1 %v4282_v35 }
 0x6d5   : > { %v4018_v42 = vpop.f32.mrf.mxu0  ;;  %v4026_v17 = vpop.f32.mrf.mxu1 }
 0x6d6   : > { %v2345_v59 = vadd.f32 %v4018_v42, %v5039_v58  ;;  %v2377_v0 = vadd.f32 %v4026_v17, %v5039_v58 }
 0x6d7   : > { %v2336_v62 = vpop.f32.mrf.mxu0  ;;  %v2368_v26 = vpop.f32.mrf.mxu1 }
 0x6d8   : > { %v2401_v29 = vmax.f32 %v2345_v59, 0.0  ;;  %v2409_v37 = vmax.f32 %v2377_v0, 0.0  ;;  %v2337_v3 = vadd.f32 %v5039_v58, %v2336_v62  ;;  %v2369_v4 = vadd.f32 %v5039_v58, %v2368_v26 }
 0x6d9   : > { %v4019_v7 = vpop.f32.mrf.mxu0  ;;  %v4027_v8 = vpop.f32.mrf.mxu1 }
 0x6da   : > { %v2399_v9 = vmax.f32 %v2337_v3, 0.0  ;;  %v2348_v57 = vadd.f32 %v4019_v7, %v5039_v58  ;;  %v2380_v10 = vadd.f32 %v4027_v8, %v5039_v58  ;;  %v5047_v15 = vadd.f32 %v2409_v37, %v2177_v5  ;;  %v2172_v37 = vld [vmem:[#allocation2 + $0x28] sm:$0xff]  ;;  %v2171_v3 = vld [vmem:[#allocation2 + $0x20] sm:$0xff] }
 0x6db   : > { %v2339_v12 = vpop.f32.mrf.mxu0  ;;  %v2371_v13 = vpop.f32.mrf.mxu1  ;;  %v5049_v18 = vadd.f32 %v2401_v29, %v2169_v6  ;;  %v2407_v20 = vmax.f32 %v2369_v4, 0.0 }
 0x6dc   : > { %v2402_v23 = vmax.f32 %v2348_v57, 0.0  ;;  %v2410_v41 = vmax.f32 %v2380_v10, 0.0  ;;  %v2340_v24 = vadd.f32 %v5039_v58, %v2339_v12  ;;  %v2372_v32 = vadd.f32 %v5039_v58, %v2371_v13  ;;  %v2179_v12 = vld [vmem:[#allocation2 + $0x60] sm:$0xff] }
 0x6dd   : > { %v2462_v27 = vsel %vm2431_vm8, %v5047_v15, 0.0  ;;  %v2438_v30 = vsel %vm2431_vm8, %v5049_v18, 0.0  ;;  %v4022_v34 = vpop.f32.mrf.mxu0  ;;  %v5057_v36 = vadd.f32 %v2399_v9, %v2167_v11  ;;  %v4030_v38 = vpop.f32.mrf.mxu1  ;;  %v5064_v61 = vadd.f32 %v2407_v20, %v2175_v16  ;;  %v2180_v11 = vld [vmem:[#allocation2 + $0x68] sm:$0xff] }
 0x6de   : > { %2463 = vadd.xlane.f32.xlu0 %v2462_v27  ;;  %2439 = vadd.xlane.f32.xlu1 %v2438_v30  ;;  %v5059_v40 = vadd.f32 %v2402_v23, %v2170_v19  ;;  %v2361_v45 = vadd.f32 %v4022_v34, %v5039_v58  ;;  %v2400_v1 = vmax.f32 %v2340_v24, 0.0  ;;  %v2408_v2 = vmax.f32 %v2372_v32, 0.0  ;;  %v2182_v24 = vld [vmem:[#allocation2 + $0x78] sm:$0xff]  ;;  %v2181_v32 = vld [vmem:[#allocation2 + $0x70] sm:$0xff] }
 0x6df   : > { %v2352_v47 = vpop.f32.mrf.mxu0  ;;  %v2384_v48 = vpop.f32.mrf.mxu1  ;;  %v2432_v51 = vsel %vm2431_vm8, %v5057_v36, 0.0  ;;  %v5068_v46 = vadd.f32 %v2410_v41, %v2178_v44  ;;  %v2456_v53 = vsel %vm2431_vm8, %v5064_v61, 0.0  ;;  %v2393_v6 = vadd.f32 %v4030_v38, %v5039_v58 }
 0x6e0   : > { %v2441_v52 = vsel %vm2431_vm8, %v5059_v40, 0.0  ;;  %v2405_v25 = vmax.f32 %v2361_v45, 0.0  ;;  %v2353_v21 = vadd.f32 %v5039_v58, %v2352_v47  ;;  %v5077_v31 = vadd.f32 %v2408_v2, %v2176_v50 }
 0x6e1   : > { %v4023_v28 = vpop.f32.mrf.mxu0  ;;  %v4031_v49 = vpop.f32.mrf.mxu1  ;;  %v2465_v56 = vsel %vm2431_vm8, %v5068_v46, 0.0  ;;  %v5079_v39 = vadd.f32 %v2400_v1, %v2168_v60  ;;  %v2385_v59 = vadd.f32 %v5039_v58, %v2384_v48  ;;  %v2413_v13 = vmax.f32 %v2393_v6, 0.0 }
 0x6e2   : > { %2442 = vadd.xlane.f32.xlu1 %v2441_v52  ;;  %2433 = vadd.xlane.f32.xlu0 %v2432_v51  ;;  %v2364_v14 = vadd.f32 %v4023_v28, %v5039_v58  ;;  %v5083_v42 = vadd.f32 %v2405_v25, %v2173_v55  ;;  %v2403_v17 = vmax.f32 %v2353_v21, 0.0  ;;  %v2459_v62 = vsel %vm2431_vm8, %v5077_v31, 0.0 }
 0x6e3   : > { %v2355_v43 = vpop.f32.mrf.mxu0  ;;  %v2387_v33 = vpop.f32.mrf.mxu1  ;;  %v2435_v26 = vsel %vm2431_vm8, %v5079_v39, 0.0  ;;  %v2396_v7 = vadd.f32 %v4031_v49, %v5039_v58  ;;  %v2411_v8 = vmax.f32 %v2385_v59, 0.0  ;;  %v5115_v38 = vadd.f32 %v2413_v13, %v2181_v32 }
 0x6e4   : > { %v2406_v22 = vmax.f32 %v2364_v14, 0.0  ;;  %v2356_v63 = vadd.f32 %v5039_v58, %v2355_v43  ;;  %v2388_v29 = vadd.f32 %v5039_v58, %v2387_v33  ;;  %v2450_v5 = vsel %vm2431_vm8, %v5083_v42, 0.0 }
 0x6e5   : > { %v5099_v10 = vadd.f32 %v2403_v17, %v2171_v3  ;;  %v2414_v19 = vmax.f32 %v2396_v7, 0.0  ;;  %v5107_v58 = vadd.f32 %v2411_v8, %v2179_v12  ;;  %v2474_v44 = vsel %vm2431_vm8, %v5115_v38, 0.0 }
 0x6e6   : > { %2466 = vadd.xlane.f32.xlu1 %v2465_v56  ;;  %2457 = vadd.xlane.f32.xlu0 %v2456_v53  ;;  %v5081_v35 = vadd.f32 %v2406_v22, %v2174_v54  ;;  %v2404_v0 = vmax.f32 %v2356_v63, 0.0  ;;  %v2412_v9 = vmax.f32 %v2388_v29, 0.0 }
 0x6e7   : > { %v2444_v23 = vsel %vm2431_vm8, %v5099_v10, 0.0  ;;  %v2468_v30 = vsel %vm2431_vm8, %v5107_v58, 0.0  ;;  %v5113_v34 = vadd.f32 %v2414_v19, %v2182_v24 }
 0x6e8   : > { %v2453_v4 = vsel %vm2431_vm8, %v5081_v35, 0.0  ;;  %v5097_v57 = vadd.f32 %v2404_v0, %v2172_v37  ;;  %v5105_v41 = vadd.f32 %v2412_v9, %v2180_v11 }
 0x6e9   : > { %v2477_v16 = vsel %vm2431_vm8, %v5113_v34, 0.0 }
 0x6ea   : > { %2460 = vadd.xlane.f32.xlu1 %v2459_v62  ;;  %2436 = vadd.xlane.f32.xlu0 %v2435_v26  ;;  %v2447_v20 = vsel %vm2431_vm8, %v5097_v57, 0.0  ;;  %v2471_v27 = vsel %vm2431_vm8, %v5105_v41, 0.0 }
 0x6ee   : > { %2454 = vadd.xlane.f32.xlu1 %v2453_v4  ;;  %2451 = vadd.xlane.f32.xlu0 %v2450_v5 }
 0x6f2   : > { %2448 = vadd.xlane.f32.xlu1 %v2447_v20  ;;  %2445 = vadd.xlane.f32.xlu0 %v2444_v23 }
 0x6f6   : > { %2472 = vadd.xlane.f32.xlu1 %v2471_v27  ;;  %2469 = vadd.xlane.f32.xlu0 %v2468_v30 }
 0x6fa   : > { %2478 = vadd.xlane.f32.xlu1 %v2477_v16  ;;  %2475 = vadd.xlane.f32.xlu0 %v2474_v44 }
 0x767   : > { %v2464_v45 = vpop.xlane.xlu0 %2463  ;;  %v2440_v47 = vpop.xlane.xlu1 %2439 }
 0x768   : > { %v2491_v48 = vmul.f32 0.03125, %v2464_v45  ;;  %v2483_v52 = vmul.f32 0.03125, %v2440_v47 }
 0x76a   : > { %v5122_v1 = vsub.f32 %v5047_v15, %v2491_v48  ;;  %v5125_v2 = vsub.f32 %v5049_v18, %v2483_v52 }
 0x76b   : > { %v2443_v51 = vpop.xlane.xlu1 %2442  ;;  %v2434_v28 = vpop.xlane.xlu0 %2433 }
 0x76c   : > { %v2484_v14 = vmul.f32 0.03125, %v2443_v51  ;;  %v2481_v49 = vmul.f32 0.03125, %v2434_v28  ;;  %v2515_v50 = vmul.f32 %v5125_v2, %v5125_v2  ;;  %v2523_v15 = vmul.f32 %v5122_v1, %v5122_v1 }
 0x76e   : > { %v5130_v60 = vsub.f32 %v5059_v40, %v2484_v14  ;;  %v5133_v25 = vsub.f32 %v5057_v36, %v2481_v49  ;;  %v2535_v43 = vsel %vm2431_vm8, %v2515_v50, 0.0  ;;  %v2559_v63 = vsel %vm2431_vm8, %v2523_v15, 0.0 }
 0x76f   : > { %v2467_v18 = vpop.xlane.xlu1 %2466  ;;  %2536 = vadd.xlane.f32.xlu0 %v2535_v43  ;;  %v2458_v21 = vpop.xlane.xlu0 %2457 }
 0x770   : > { %v2492_v22 = vmul.f32 0.03125, %v2467_v18  ;;  %v2489_v53 = vmul.f32 0.03125, %v2458_v21  ;;  %v2516_v54 = vmul.f32 %v5130_v60, %v5130_v60  ;;  %v2513_v40 = vmul.f32 %v5133_v25, %v5133_v25 }
 0x772   : > { %v5143_v55 = vsub.f32 %v5068_v46, %v2492_v22  ;;  %v5146_v36 = vsub.f32 %v5064_v61, %v2489_v53  ;;  %v2538_v56 = vsel %vm2431_vm8, %v2516_v54, 0.0  ;;  %v2529_v26 = vsel %vm2431_vm8, %v2513_v40, 0.0 }
 0x773   : > { %v2461_v33 = vpop.xlane.xlu1 %2460  ;;  %2539 = vadd.xlane.f32.xlu1 %v2538_v56  ;;  %2560 = vadd.xlane.f32.xlu0 %v2559_v63  ;;  %v2437_v17 = vpop.xlane.xlu0 %2436 }
 0x774   : > { %v2490_v59 = vmul.f32 0.03125, %v2461_v33  ;;  %v2482_v0 = vmul.f32 0.03125, %v2437_v17  ;;  %v2524_v62 = vmul.f32 %v5143_v55, %v5143_v55  ;;  %v2521_v37 = vmul.f32 %v5146_v36, %v5146_v36 }
 0x776   : > { %v5154_v46 = vsub.f32 %v5077_v31, %v2490_v59  ;;  %v5157_v61 = vsub.f32 %v5079_v39, %v2482_v0  ;;  %v2562_v29 = vsel %vm2431_vm8, %v2524_v62, 0.0  ;;  %v2553_v9 = vsel %vm2431_vm8, %v2521_v37, 0.0 }
 0x777   : > { %v2455_v3 = vpop.xlane.xlu1 %2454  ;;  %2563 = vadd.xlane.f32.xlu1 %v2562_v29  ;;  %2530 = vadd.xlane.f32.xlu0 %v2529_v26  ;;  %v2452_v4 = vpop.xlane.xlu0 %2451 }
 0x778   : > { %v2488_v5 = vmul.f32 0.03125, %v2455_v3  ;;  %v2487_v6 = vmul.f32 0.03125, %v2452_v4  ;;  %v2514_v7 = vmul.f32 %v5157_v61, %v5157_v61  ;;  %v2522_v31 = vmul.f32 %v5154_v46, %v5154_v46 }
 0x77a   : > { %v5167_v39 = vsub.f32 %v5081_v35, %v2488_v5  ;;  %v5170_v8 = vsub.f32 %v5083_v42, %v2487_v6  ;;  %v2532_v11 = vsel %vm2431_vm8, %v2514_v7, 0.0  ;;  %v2556_v24 = vsel %vm2431_vm8, %v2522_v31, 0.0 }
 0x77b   : > { %v2449_v12 = vpop.xlane.xlu1 %2448  ;;  %2554 = vadd.xlane.f32.xlu0 %v2553_v9  ;;  %2533 = vadd.xlane.f32.xlu1 %v2532_v11  ;;  %v2446_v13 = vpop.xlane.xlu0 %2445 }
 0x77c   : > { %v2486_v19 = vmul.f32 0.03125, %v2449_v12  ;;  %v2485_v20 = vmul.f32 0.03125, %v2446_v13  ;;  %v2519_v23 = vmul.f32 %v5170_v8, %v5170_v8  ;;  %v2520_v27 = vmul.f32 %v5167_v39, %v5167_v39 }
 0x77e   : > { %v5178_v35 = vsub.f32 %v5097_v57, %v2486_v19  ;;  %v5181_v42 = vsub.f32 %v5099_v10, %v2485_v20  ;;  %v2547_v32 = vsel %vm2431_vm8, %v2519_v23, 0.0  ;;  %v2550_v52 = vsel %vm2431_vm8, %v2520_v27, 0.0  ;;  %v5218_v27 = vld [vmem:[%s4482_s26] ss:$0 sm:$0xff] }
 0x77f   : > { %v2473_v30 = vpop.xlane.xlu1 %2472  ;;  %2557 = vadd.xlane.f32.xlu1 %v2556_v24  ;;  %2548 = vadd.xlane.f32.xlu0 %v2547_v32  ;;  %v2470_v16 = vpop.xlane.xlu0 %2469 }
 0x780   : > { %v2494_v44 = vmul.f32 0.03125, %v2473_v30  ;;  %v2493_v45 = vmul.f32 0.03125, %v2470_v16  ;;  %v2517_v47 = vmul.f32 %v5181_v42, %v5181_v42  ;;  %v2518_v57 = vmul.f32 %v5178_v35, %v5178_v35 }
 0x782   : > { %v5191_v10 = vsub.f32 %v5105_v41, %v2494_v44  ;;  %v5194_v48 = vsub.f32 %v5107_v58, %v2493_v45  ;;  %v2541_v51 = vsel %vm2431_vm8, %v2517_v47, 0.0  ;;  %v2544_v15 = vsel %vm2431_vm8, %v2518_v57, 0.0  ;;  %v5222_v45 = vld [vmem:[%s4487_s29] ss:$0 sm:$0xff] }
 0x783   : > { %v2479_v28 = vpop.xlane.xlu1 %2478  ;;  %2551 = vadd.xlane.f32.xlu1 %v2550_v52  ;;  %2542 = vadd.xlane.f32.xlu0 %v2541_v51  ;;  %v2476_v14 = vpop.xlane.xlu0 %2475 }
 0x784   : > { %v2496_v49 = vmul.f32 0.03125, %v2479_v28  ;;  %v2495_v50 = vmul.f32 0.03125, %v2476_v14  ;;  %v2525_v43 = vmul.f32 %v5194_v48, %v5194_v48  ;;  %v2526_v21 = vmul.f32 %v5191_v10, %v5191_v10 }
 0x786   : > { %v5202_v41 = vsub.f32 %v5113_v34, %v2496_v49  ;;  %v5205_v58 = vsub.f32 %v5115_v38, %v2495_v50  ;;  %v2565_v18 = vsel %vm2431_vm8, %v2525_v43, 0.0  ;;  %v2568_v53 = vsel %vm2431_vm8, %v2526_v21, 0.0 }
 0x787   : > { %2545 = vadd.xlane.f32.xlu1 %v2544_v15  ;;  %2566 = vadd.xlane.f32.xlu0 %v2565_v18 }
 0x788   : > { %v2527_v22 = vmul.f32 %v5205_v58, %v5205_v58  ;;  %v2528_v34 = vmul.f32 %v5202_v41, %v5202_v41 }
 0x78a   : > { %v2571_v54 = vsel %vm2431_vm8, %v2527_v22, 0.0  ;;  %v2574_v38 = vsel %vm2431_vm8, %v2528_v34, 0.0 }
 0x78b   : > { %2569 = vadd.xlane.f32.xlu1 %v2568_v53  ;;  %2572 = vadd.xlane.f32.xlu0 %v2571_v54 }
 0x78f   : > { %2575 = vadd.xlane.f32.xlu1 %v2574_v38 }
 0x7f8   : > { %v2537_v40 = vpop.xlane.xlu0 %2536 }
 0x7f9   : > { %v2579_v56 = vmul.f32 0.03125, %v2537_v40 }
 0x7fb   : > { %v2595_v63 = vadd.f32 1e-05, %v2579_v56 }
 0x7fc   : > { %v2540_v33 = vpop.xlane.xlu1 %2539  ;;  %v2561_v17 = vpop.xlane.xlu0 %2560 }
 0x7fd   : > { %4283 = vrsqrt.f32 %v2595_v63  ;;  %v2580_v59 = vmul.f32 0.03125, %v2540_v33  ;;  %v2587_v0 = vmul.f32 0.03125, %v2561_v17 }
 0x7ff   : > { %v2596_v62 = vadd.f32 1e-05, %v2580_v59  ;;  %v2603_v26 = vadd.f32 1e-05, %v2587_v0 }
 0x800   : > { %v2564_v29 = vpop.xlane.xlu1 %2563  ;;  %v2531_v37 = vpop.xlane.xlu0 %2530 }
 0x801   : > { %4285 = vrsqrt.f32 %v2596_v62  ;;  %v2588_v3 = vmul.f32 0.03125, %v2564_v29  ;;  %v2577_v4 = vmul.f32 0.03125, %v2531_v37 }
 0x802   : > { %4287 = vrsqrt.f32 %v2603_v26 }
 0x803   : > { %v2604_v5 = vadd.f32 1e-05, %v2588_v3  ;;  %v2593_v6 = vadd.f32 1e-05, %v2577_v4 }
 0x804   : > { %v2534_v7 = vpop.xlane.xlu1 %2533  ;;  %v2555_v31 = vpop.xlane.xlu0 %2554 }
 0x805   : > { %4289 = vrsqrt.f32 %v2604_v5  ;;  %v2578_v9 = vmul.f32 0.03125, %v2534_v7  ;;  %v2585_v11 = vmul.f32 0.03125, %v2555_v31 }
 0x806   : > { %4291 = vrsqrt.f32 %v2593_v6 }
 0x807   : > { %v2594_v12 = vadd.f32 1e-05, %v2578_v9  ;;  %v2601_v13 = vadd.f32 1e-05, %v2585_v11 }
 0x808   : > { %v2558_v19 = vpop.xlane.xlu1 %2557  ;;  %v2549_v20 = vpop.xlane.xlu0 %2548 }
 0x809   : > { %4293 = vrsqrt.f32 %v2594_v12  ;;  %v2586_v23 = vmul.f32 0.03125, %v2558_v19  ;;  %v2583_v24 = vmul.f32 0.03125, %v2549_v20 }
 0x80a   : > { %v4284_v32 = vpop.eup %4283  ;;  %4295 = vrsqrt.f32 %v2601_v13 }
 0x80b   : > { %v2627_v30 = vmul.f32 %v4284_v32, %v5125_v2  ;;  %v2602_v16 = vadd.f32 1e-05, %v2586_v23  ;;  %v2599_v44 = vadd.f32 1e-05, %v2583_v24 }
 0x80c   : > { %v2552_v47 = vpop.xlane.xlu1 %2551  ;;  %v2543_v57 = vpop.xlane.xlu0 %2542 }
 0x80d   : > { %v2650_v52 = vmul.f32 %v5218_v27, %v2627_v30  ;;  %4297 = vrsqrt.f32 %v2602_v16  ;;  %v2584_v51 = vmul.f32 0.03125, %v2552_v47  ;;  %v2581_v28 = vmul.f32 0.03125, %v2543_v57 }
 0x80e   : > { %v4286_v14 = vpop.eup %4285  ;;  %4299 = vrsqrt.f32 %v2599_v44 }
 0x80f   : > { %v4288_v49 = vpop.eup %4287  ;;  %v5226_v50 = vadd.f32 %v5222_v45, %v2650_v52  ;;  %v2628_v43 = vmul.f32 %v4286_v14, %v5130_v60  ;;  %v2600_v2 = vadd.f32 1e-05, %v2584_v51  ;;  %v2597_v15 = vadd.f32 1e-05, %v2581_v28 }
 0x810   : > { %v2635_v18 = vmul.f32 %v4288_v49, %v5122_v1  ;;  %v2546_v21 = vpop.xlane.xlu1 %2545  ;;  %v2567_v22 = vpop.xlane.xlu0 %2566 }
 0x811   : > { %2689 = vst.msk [vmem:[#allocation2 + $0x10] sm:$0xff] %vm2431_vm8, %v5226_v50  ;;  %v2651_v53 = vmul.f32 %v5218_v27, %v2628_v43  ;;  %4301 = vrsqrt.f32 %v2600_v2  ;;  %v2582_v54 = vmul.f32 0.03125, %v2546_v21  ;;  %v2589_v34 = vmul.f32 0.03125, %v2567_v22 }
 0x812   : > { %v4290_v38 = vpop.eup %4289  ;;  %v2658_v40 = vmul.f32 %v5218_v27, %v2635_v18  ;;  %4303 = vrsqrt.f32 %v2597_v15 }
 0x813   : > { %v4292_v56 = vpop.eup %4291  ;;  %v5235_v60 = vadd.f32 %v5222_v45, %v2651_v53  ;;  %v2636_v1 = vmul.f32 %v4290_v38, %v5143_v55  ;;  %v2598_v63 = vadd.f32 1e-05, %v2582_v54  ;;  %v2605_v33 = vadd.f32 1e-05, %v2589_v34 }
 0x814   : > { %v5239_v17 = vadd.f32 %v5222_v45, %v2658_v40  ;;  %v2625_v59 = vmul.f32 %v4292_v56, %v5133_v25  ;;  %v2570_v0 = vpop.xlane.xlu1 %2569  ;;  %v2573_v62 = vpop.xlane.xlu0 %2572 }
 0x815   : > { %2690 = vst.msk [vmem:[#allocation2 + $0x18] sm:$0xff] %vm2431_vm8, %v5235_v60  ;;  %v2659_v26 = vmul.f32 %v5218_v27, %v2636_v1  ;;  %4305 = vrsqrt.f32 %v2598_v63  ;;  %v2590_v29 = vmul.f32 0.03125, %v2570_v0  ;;  %v2591_v37 = vmul.f32 0.03125, %v2573_v62 }
 0x816   : > { %v4294_v3 = vpop.eup %4293  ;;  %2697 = vst.msk [vmem:[#allocation2 + $0x50] sm:$0xff] %vm2431_vm8, %v5239_v17  ;;  %v2648_v55 = vmul.f32 %v5218_v27, %v2625_v59  ;;  %4307 = vrsqrt.f32 %v2605_v33 }
 0x817   : > { %v4296_v4 = vpop.eup %4295  ;;  %v5249_v25 = vadd.f32 %v5222_v45, %v2659_v26  ;;  %v2626_v5 = vmul.f32 %v4294_v3, %v5157_v61  ;;  %v2606_v6 = vadd.f32 1e-05, %v2590_v29  ;;  %v2607_v7 = vadd.f32 1e-05, %v2591_v37 }
 0x818   : > { %v5253_v31 = vadd.f32 %v5222_v45, %v2648_v55  ;;  %v2633_v9 = vmul.f32 %v4296_v4, %v5146_v36  ;;  %v2576_v11 = vpop.xlane.xlu1 %2575 }
 0x819   : > { %2698 = vst.msk [vmem:[#allocation2 + $0x58] sm:$0xff] %vm2431_vm8, %v5249_v25  ;;  %v2649_v12 = vmul.f32 %v5218_v27, %v2626_v5  ;;  %4309 = vrsqrt.f32 %v2606_v6  ;;  %v2592_v13 = vmul.f32 0.03125, %v2576_v11 }
 0x81a   : > { %v4298_v19 = vpop.eup %4297  ;;  %2687 = vst.msk [vmem:[#allocation2] sm:$0xff] %vm2431_vm8, %v5253_v31  ;;  %v2656_v61 = vmul.f32 %v5218_v27, %v2633_v9  ;;  %4311 = vrsqrt.f32 %v2607_v7 }
 0x81b   : > { %v4300_v20 = vpop.eup %4299  ;;  %v5263_v23 = vadd.f32 %v5222_v45, %v2649_v12  ;;  %v2634_v36 = vmul.f32 %v4298_v19, %v5154_v46  ;;  %v2608_v24 = vadd.f32 1e-05, %v2592_v13 }
 0x81c   : > { %v5267_v32 = vadd.f32 %v5222_v45, %v2656_v61  ;;  %v2631_v30 = vmul.f32 %v4300_v20, %v5170_v8 }
 0x81d   : > { %2688 = vst.msk [vmem:[#allocation2 + $0x8] sm:$0xff] %vm2431_vm8, %v5263_v23  ;;  %v2657_v16 = vmul.f32 %v5218_v27, %v2634_v36  ;;  %4313 = vrsqrt.f32 %v2608_v24 }
 0x81e   : > { %v4302_v44 = vpop.eup %4301  ;;  %2695 = vst.msk [vmem:[#allocation2 + $0x40] sm:$0xff] %vm2431_vm8, %v5267_v32  ;;  %v2654_v47 = vmul.f32 %v5218_v27, %v2631_v30 }
 0x81f   : > { %v4304_v57 = vpop.eup %4303  ;;  %v5277_v46 = vadd.f32 %v5222_v45, %v2657_v16  ;;  %v2632_v52 = vmul.f32 %v4302_v44, %v5167_v39 }
 0x820   : > { %v5281_v8 = vadd.f32 %v5222_v45, %v2654_v47  ;;  %v2629_v51 = vmul.f32 %v4304_v57, %v5181_v42 }
 0x821   : > { %2696 = vst.msk [vmem:[#allocation2 + $0x48] sm:$0xff] %vm2431_vm8, %v5277_v46  ;;  %v2655_v28 = vmul.f32 %v5218_v27, %v2632_v52 }
 0x822   : > { %v4306_v14 = vpop.eup %4305  ;;  %2693 = vst.msk [vmem:[#allocation2 + $0x30] sm:$0xff] %vm2431_vm8, %v5281_v8  ;;  %v2652_v49 = vmul.f32 %v5218_v27, %v2629_v51 }
 0x823   : > { %v4308_v43 = vpop.eup %4307  ;;  %v5291_v2 = vadd.f32 %v5222_v45, %v2655_v28  ;;  %v2630_v39 = vmul.f32 %v4306_v14, %v5178_v35 }
 0x824   : > { %v5295_v15 = vadd.f32 %v5222_v45, %v2652_v49  ;;  %v2637_v42 = vmul.f32 %v4308_v43, %v5194_v48 }
 0x825   : > { %2694 = vst.msk [vmem:[#allocation2 + $0x38] sm:$0xff] %vm2431_vm8, %v5291_v2  ;;  %v2653_v18 = vmul.f32 %v5218_v27, %v2630_v39 }
 0x826   : > { %v4310_v21 = vpop.eup %4309  ;;  %2691 = vst.msk [vmem:[#allocation2 + $0x20] sm:$0xff] %vm2431_vm8, %v5295_v15  ;;  %v2660_v22 = vmul.f32 %v5218_v27, %v2637_v42 }
 0x827   : > { %v4312_v53 = vpop.eup %4311  ;;  %v5305_v54 = vadd.f32 %v5222_v45, %v2653_v18  ;;  %v2638_v35 = vmul.f32 %v4310_v21, %v5191_v10 }
 0x828   : > { %v5309_v34 = vadd.f32 %v5222_v45, %v2660_v22  ;;  %v2639_v48 = vmul.f32 %v4312_v53, %v5205_v58 }
 0x829   : > { %2692 = vst.msk [vmem:[#allocation2 + $0x28] sm:$0xff] %vm2431_vm8, %v5305_v54  ;;  %v2661_v38 = vmul.f32 %v5218_v27, %v2638_v35 }
 0x82a   : > { %v4314_v40 = vpop.eup %4313  ;;  %2699 = vst.msk [vmem:[#allocation2 + $0x60] sm:$0xff] %vm2431_vm8, %v5309_v34  ;;  %v2662_v56 = vmul.f32 %v5218_v27, %v2639_v48 }
 0x82b   : > { %v5319_v1 = vadd.f32 %v5222_v45, %v2661_v38  ;;  %v2640_v10 = vmul.f32 %v4314_v40, %v5202_v41 }
 0x82c   : > { %v5323_v63 = vadd.f32 %v5222_v45, %v2662_v56 }
 0x82d   : > { %2700 = vst.msk [vmem:[#allocation2 + $0x68] sm:$0xff] %vm2431_vm8, %v5319_v1  ;;  %v2663_v58 = vmul.f32 %v5218_v27, %v2640_v10  ;;  %2706 = sbr.rel (%p3583_p13) target bundleno = 2320 (0x910), region = 151 }
 0x82e   : > { %2701 = vst.msk [vmem:[#allocation2 + $0x70] sm:$0xff] %vm2431_vm8, %v5323_v63 }
 0x82f   : > { %v5331_v33 = vadd.f32 %v5222_v45, %v2663_v58 }
 0x831   : > { %2702 = vst.msk [vmem:[#allocation2 + $0x78] sm:$0xff] %vm2431_vm8, %v5331_v33 }
 0x832   : > { %4040 = vmatprep.mubr.msk.f32.mxu0 %vm2431_vm8, %v5253_v31  ;;  %4052 = vmatprep.mubr.msk.f32.mxu1 %vm2431_vm8, %v5267_v32  ;;  %s5540_s24 = smov (!%p2708_p0, %s2707_s24), 1  ;;  %vm2975_vm9 = vcmask 257024  }
 0x833   : > { %s3584_s26 = sshll.u32 %s5540_s24, 5 }
 0x834   : > { %s2711_s2 = scalar_lea.vmem %s5497_s5, %s3584_s26 }
 0x835   : > { %v2715_v41 = vld [vmem:[%s2711_s2 + $0x18] sm:$0xff]  ;;  %v2714_v27 = vld [vmem:[%s2711_s2 + $0x10] sm:$0xff]  ;;  %v2713_v45 = vld [vmem:[%s2711_s2 + $0x8] sm:$0xff] }
 0x836   : > { %4032 = vmatprep.subr.mxu0 %v2715_v41  ;;  %4180 = vmatprep.subr.mxu1 %v2715_v41  ;;  %v2712_v59 = vld [vmem:[%s2711_s2] sm:$0xff] }
 0x837   : > { %4033 = vmatpush3.msra.mxu0 %v2715_v41  ;;  %4184 = vmatpush3.msra.mxu1 %v2715_v41 }
 0x838   : > { %4034 = vmatprep.subr.mxu0 %v2714_v27  ;;  %4181 = vmatprep.subr.mxu1 %v2714_v27 }
 0x839   : > { %4035 = vmatpush3.msra.mxu0 %v2714_v27  ;;  %4185 = vmatpush3.msra.mxu1 %v2714_v27 }
 0x83a   : > { %4036 = vmatprep.subr.mxu0 %v2713_v45  ;;  %4182 = vmatprep.subr.mxu1 %v2713_v45 }
 0x83b   : > { %4037 = vmatpush3.msra.mxu0 %v2713_v45  ;;  %4186 = vmatpush3.msra.mxu1 %v2713_v45 }
 0x83c   : > { %4038 = vmatprep.subr.mxu0 %v2712_v59  ;;  %4183 = vmatprep.subr.mxu1 %v2712_v59 }
 0x83d   : > { %4039 = vmatpush3.msra.mxu0 %v2712_v59  ;;  %4187 = vmatpush3.msra.mxu1 %v2712_v59 }
 0x83e   : > { %4041 = vmatmul.mubr.msk.f32.vlgmr.msra.gmra.mxu0 %vm2431_vm8, %v5263_v23  ;;  %4053 = vmatmul.mubr.msk.f32.vlgmr.msra.gmra.mxu1 %vm2431_vm8, %v5277_v46 }
 0x83f   : > { %4043 = vmatprep.mubr.msk.f32.mxu0 %vm2431_vm8, %v5226_v50  ;;  %4055 = vmatprep.mubr.msk.f32.mxu1 %vm2431_vm8, %v5239_v17 }
 0x842   : > { %4044 = vmatmul.mubr.msk.f32.gmra.mxu0 %vm2431_vm8, %v5235_v60  ;;  %4056 = vmatmul.mubr.msk.f32.gmra.mxu1 %vm2431_vm8, %v5249_v25 }
 0x843   : > { %4046 = vmatprep.mubr.msk.f32.mxu0 %vm2431_vm8, %v5295_v15  ;;  %4058 = vmatprep.mubr.msk.f32.mxu1 %vm2431_vm8, %v5309_v34 }
 0x846   : > { %4047 = vmatmul.mubr.msk.f32.gmra.mxu0 %vm2431_vm8, %v5305_v54  ;;  %4059 = vmatmul.mubr.msk.f32.gmra.mxu1 %vm2431_vm8, %v5319_v1 }
 0x847   : > { %4049 = vmatprep.mubr.msk.f32.mxu0 %vm2431_vm8, %v5281_v8  ;;  %4061 = vmatprep.mubr.msk.f32.mxu1 %vm2431_vm8, %v5323_v63 }
 0x84a   : > { %4050 = vmatmul.mubr.msk.f32.gmra.mxu0 %vm2431_vm8, %v5291_v2  ;;  %4062 = vmatmul.mubr.msk.f32.gmra.mxu1 %vm2431_vm8, %v5331_v33 }
 0x8fe   : > { %v4042_v0 = vpop.f32.mrf.mxu0  ;;  %v4054_v62 = vpop.f32.mrf.mxu1 }
 0x8ff   : > { %v3665_v26 = vpack.c.bf16 %v4042_v0, %v4042_v0  ;;  %v3673_v29 = vpack.c.bf16 %v4054_v62, %v4054_v62 }
 0x900   : > { %v2830_v37 = vpop.f32.mrf.mxu0  ;;  %v2870_v3 = vpop.f32.mrf.mxu1 }
 0x901   : > { %2977 = vst.msk [vmem:[#allocation3 + $0x4] sm:$0xf] %vm2975_vm9, %v3665_v26  ;;  %2985 = vst.msk [vmem:[#allocation3 + $0x24] sm:$0xf] %vm2975_vm9, %v3673_v29  ;;  %v3664_v55 = vpack.c.bf16 %v2830_v37, %v2830_v37  ;;  %v3672_v4 = vpack.c.bf16 %v2870_v3, %v2870_v3 }
 0x902   : > { %v4045_v5 = vpop.f32.mrf.mxu0  ;;  %v4057_v6 = vpop.f32.mrf.mxu1 }
 0x903   : > { %2976 = vst.msk [vmem:[#allocation3] sm:$0xf] %vm2975_vm9, %v3664_v55  ;;  %2984 = vst.msk [vmem:[#allocation3 + $0x20] sm:$0xf] %vm2975_vm9, %v3672_v4  ;;  %v3667_v7 = vpack.c.bf16 %v4045_v5, %v4045_v5  ;;  %v3675_v9 = vpack.c.bf16 %v4057_v6, %v4057_v6 }
 0x904   : > { %v2840_v11 = vpop.f32.mrf.mxu0  ;;  %v2880_v12 = vpop.f32.mrf.mxu1 }
 0x905   : > { %2979 = vst.msk [vmem:[#allocation3 + $0xc] sm:$0xf] %vm2975_vm9, %v3667_v7  ;;  %2987 = vst.msk [vmem:[#allocation3 + $0x2c] sm:$0xf] %vm2975_vm9, %v3675_v9  ;;  %v3666_v13 = vpack.c.bf16 %v2840_v11, %v2840_v11  ;;  %v3674_v19 = vpack.c.bf16 %v2880_v12, %v2880_v12 }
 0x906   : > { %v4048_v61 = vpop.f32.mrf.mxu0  ;;  %v4060_v20 = vpop.f32.mrf.mxu1 }
 0x907   : > { %2978 = vst.msk [vmem:[#allocation3 + $0x8] sm:$0xf] %vm2975_vm9, %v3666_v13  ;;  %2986 = vst.msk [vmem:[#allocation3 + $0x28] sm:$0xf] %vm2975_vm9, %v3674_v19  ;;  %v3669_v36 = vpack.c.bf16 %v4048_v61, %v4048_v61  ;;  %v3677_v24 = vpack.c.bf16 %v4060_v20, %v4060_v20 }
 0x908   : > { %v2850_v30 = vpop.f32.mrf.mxu0  ;;  %v2890_v16 = vpop.f32.mrf.mxu1 }
 0x909   : > { %2981 = vst.msk [vmem:[#allocation3 + $0x14] sm:$0xf] %vm2975_vm9, %v3669_v36  ;;  %2989 = vst.msk [vmem:[#allocation3 + $0x34] sm:$0xf] %vm2975_vm9, %v3677_v24  ;;  %v3668_v44 = vpack.c.bf16 %v2850_v30, %v2850_v30  ;;  %v3676_v47 = vpack.c.bf16 %v2890_v16, %v2890_v16 }
 0x90a   : > { %v4051_v57 = vpop.f32.mrf.mxu0  ;;  %v4063_v52 = vpop.f32.mrf.mxu1 }
 0x90b   : > { %2980 = vst.msk [vmem:[#allocation3 + $0x10] sm:$0xf] %vm2975_vm9, %v3668_v44  ;;  %2988 = vst.msk [vmem:[#allocation3 + $0x30] sm:$0xf] %vm2975_vm9, %v3676_v47  ;;  %v3671_v51 = vpack.c.bf16 %v4051_v57, %v4051_v57  ;;  %v3679_v28 = vpack.c.bf16 %v4063_v52, %v4063_v52 }
 0x90c   : > { %v2860_v14 = vpop.f32.mrf.mxu0  ;;  %v2900_v49 = vpop.f32.mrf.mxu1 }
 0x90d   : > { %2983 = vst.msk [vmem:[#allocation3 + $0x1c] sm:$0xf] %vm2975_vm9, %v3671_v51  ;;  %2991 = vst.msk [vmem:[#allocation3 + $0x3c] sm:$0xf] %vm2975_vm9, %v3679_v28  ;;  %v3670_v43 = vpack.c.bf16 %v2860_v14, %v2860_v14  ;;  %v3678_v39 = vpack.c.bf16 %v2900_v49, %v2900_v49 }
 0x90f   : > { %2982 = vst.msk [vmem:[#allocation3 + $0x18] sm:$0xf] %vm2975_vm9, %v3670_v43  ;;  %2990 = vst.msk [vmem:[#allocation3 + $0x38] sm:$0xf] %vm2975_vm9, %v3678_v39 }
 0x910 PF: > { %p3617_p1 = scmp.ne.s32.totalorder %s4331_s20, 1 }
 0x911   : > { %s5527_s3 = sld [smem:[#allocation16_spill]] (!%p3617_p1) }
 0x912   : > { %2995 = sbr.rel (%p3617_p1) target bundleno = 2556 (0x9fc), region = 155 }
 0x917   : > { %v4344_v42 = vmov 0.0   ;;  %vm4345_vm10 = vmmov 0   ;;  %vm3072_vm11 = vcmask 254976  }
 0x918   : > { %4064 = vmatprep.subr.mxu0 %v4344_v42  ;;  %4096 = vmatprep.mubr.msk.f32.mxu0 %vm4345_vm10, %v4344_v42 }
 0x919   : > { %4065 = vmatpush3.msra.mxu0 %v5331_v33 }
 0x91a   : > { %4066 = vmatprep.subr.mxu0 %v4344_v42 }
 0x91b   : > { %4067 = vmatpush3.msra.mxu0 %v5323_v63 }
 0x91c   : > { %4068 = vmatprep.subr.mxu0 %v4344_v42 }
 0x91d   : > { %4069 = vmatpush3.msra.mxu0 %v5319_v1 }
 0x91e   : > { %4070 = vmatprep.subr.mxu0 %v4344_v42 }
 0x91f   : > { %4071 = vmatpush3.msra.mxu0 %v5309_v34 }
 0x920   : > { %4072 = vmatprep.subr.mxu0 %v4344_v42 }
 0x921   : > { %4073 = vmatpush3.msra.mxu0 %v5249_v25  ;;  %v2996_v25 = vld [vmem:[#allocation5] sm:$0x3] }
 0x922   : > { %4074 = vmatprep.subr.mxu0 %v4344_v42 }
 0x923   : > { %4075 = vmatpush3.msra.mxu0 %v5239_v17  ;;  %v3000_v17 = vld [vmem:[%s5527_s3] sm:$0x3] }
 0x924   : > { %4076 = vmatprep.subr.mxu0 %v4344_v42 }
 0x925   : > { %4077 = vmatpush3.msra.mxu0 %v5277_v46 }
 0x926   : > { %4078 = vmatprep.subr.mxu0 %v4344_v42 }
 0x927   : > { %4079 = vmatpush3.msra.mxu0 %v5267_v32 }
 0x928   : > { %4080 = vmatprep.subr.mxu0 %v4344_v42 }
 0x929   : > { %4081 = vmatpush3.msra.mxu0 %v5291_v2 }
 0x92a   : > { %4082 = vmatprep.subr.mxu0 %v4344_v42 }
 0x92b   : > { %4083 = vmatpush3.msra.mxu0 %v5281_v8 }
 0x92c   : > { %4084 = vmatprep.subr.mxu0 %v4344_v42 }
 0x92d   : > { %4085 = vmatpush3.msra.mxu0 %v5305_v54 }
 0x92e   : > { %4086 = vmatprep.subr.mxu0 %v4344_v42 }
 0x92f   : > { %4087 = vmatpush3.msra.mxu0 %v5295_v15 }
 0x930   : > { %4088 = vmatprep.subr.mxu0 %v4344_v42 }
 0x931   : > { %4089 = vmatpush3.msra.mxu0 %v5235_v60 }
 0x932   : > { %4090 = vmatprep.subr.mxu0 %v4344_v42 }
 0x933   : > { %4091 = vmatpush3.msra.mxu0 %v5226_v50 }
 0x934   : > { %4092 = vmatprep.subr.mxu0 %v4344_v42 }
 0x935   : > { %4093 = vmatpush3.msra.mxu0 %v5263_v23 }
 0x936   : > { %4094 = vmatprep.subr.mxu0 %v4344_v42 }
 0x937   : > { %4095 = vmatpush3.msra.mxu0 %v5253_v31 }
 0x938   : > { %4097 = vmatmul.mubr.f32.vlgmr.msra.gmra.mxu0 %v3000_v17 }
 0x9f8   : > { %v3067_v32 = vpop.f32.mrf.mxu0 }
 0x9f9   : > { %v3071_v46 = vadd.f32 %v3067_v32, %v2996_v25 }
 0x9fa   : > { %v4098_v8 = vpop.f32.mrf.mxu0 }
 0x9fb   : > { %3073 = vst.msk [vmem:[#allocation5] sm:$0x3] %vm3072_vm11, %v3071_v46 }
 0x9fc PF: > { %p3074_p2 = scmp.eq.s32.totalorder %s4331_s20, 1 }
 0x9fd   : > { %v3083_v50 = vld [vmem:[%s5501_s9 + $0x18] sm:$0xff] (%p3074_p2)  ;;  %v4346_v60 = vmov (%p3074_p2), 0.0   ;;  %v3082_v31 = vld [vmem:[%s5501_s9 + $0x10] sm:$0xff] (%p3074_p2)  ;;  %vm4347_vm12 = vmmov (%p3074_p2), 0   ;;  %v3081_v15 = vld [vmem:[%s5501_s9 + $0x8] sm:$0xff] (%p3074_p2)  ;;  %vm3091_vm13 = vcmask (%p3074_p2), 261120  }
 0x9fe   : > { %3078 = sbr.rel (!%p3074_p2) target bundleno = 3164 (0xc5c), region = 159  ;;  %4099 = vmatprep.subr.mxu0 (%p3074_p2), %v4346_v60  ;;  %4107 = vmatprep.mubr.msk.f32.mxu0 (%p3074_p2), %vm4347_vm12, %v4346_v60  ;;  %v3189_v23 = vld [vmem:[%s5505_s13 + $0x38] sm:$0xff] (%p3074_p2)  ;;  %v3188_v2 = vld [vmem:[%s5505_s13 + $0x30] sm:$0xff] (%p3074_p2)  ;;  %v3187_v18 = vld [vmem:[%s5505_s13 + $0x28] sm:$0xff] (%p3074_p2)  ;;  %vm3197_vm14 = vcmask (%p3074_p2), 523264   ;;  %vm3372_vm15 = vcmask (%p3074_p2), 1024  }
 0x9ff   : > { %4100 = vmatpush3.msra.mxu0 (%p3074_p2), %v3083_v50  ;;  %4110 = vmatprep.subr.mxu1 (%p3074_p2), %v4346_v60  ;;  %v3080_v21 = vld [vmem:[%s5501_s9] sm:$0xff] (%p3074_p2)  ;;  %v3185_v54 = vld [vmem:[%s5505_s13 + $0x18] sm:$0xff] (%p3074_p2)  ;;  %v3184_v35 = vld [vmem:[%s5505_s13 + $0x10] sm:$0xff] (%p3074_p2) }
 0xa00   : > { %4101 = vmatprep.subr.mxu0 (%p3074_p2), %v4346_v60  ;;  %4111 = vmatpush3.msra.mxu1 (%p3074_p2), %v3189_v23  ;;  %v3186_v53 = vld [vmem:[%s5505_s13 + $0x20] sm:$0xff] (%p3074_p2)  ;;  %v3183_v34 = vld [vmem:[%s5505_s13 + $0x8] sm:$0xff] (%p3074_p2)  ;;  %v3291_v27 = vld [vmem:[%s5509_s17 + $0x18] sm:$0xff] (%p3074_p2) }
 0xa01   : > { %4102 = vmatpush3.msra.mxu0 (%p3074_p2), %v3082_v31  ;;  %4112 = vmatprep.subr.mxu1 (%p3074_p2), %v4346_v60  ;;  %v3182_v48 = vld [vmem:[%s5505_s13] sm:$0xff] (%p3074_p2)  ;;  %v3290_v45 = vld [vmem:[%s5509_s17 + $0x10] sm:$0xff] (%p3074_p2)  ;;  %v3289_v59 = vld [vmem:[%s5509_s17 + $0x8] sm:$0xff] (%p3074_p2) }
 0xa02   : > { %4103 = vmatprep.subr.mxu0 (%p3074_p2), %v4346_v60  ;;  %4113 = vmatpush3.msra.mxu1 (%p3074_p2), %v3188_v2  ;;  %v3079_v22 = vld [vmem:[#allocation5] sm:$0x3] (%p3074_p2)  ;;  %v3627_v7 = vld [vmem:[#allocation7] ss:$0 sm:$0xff] (%p3074_p2) }
 0xa03   : > { %4104 = vmatpush3.msra.mxu0 %v3081_v15  ;;  %4114 = vmatprep.subr.mxu1 %v4346_v60  ;;  %v3619_v38 = vld [vmem:[%s5502_s10] ss:$0 sm:$0xff] }
 0xa04   : > { %4105 = vmatprep.subr.mxu0 %v4346_v60  ;;  %4115 = vmatpush3.msra.mxu1 %v3187_v18  ;;  %v3621_v1 = vld [vmem:[%s5503_s11] ss:$0 sm:$0xff] }
 0xa05   : > { %4106 = vmatpush3.msra.mxu0 %v3080_v21  ;;  %4116 = vmatprep.subr.mxu1 %v4346_v60  ;;  %v3622_v58 = vld [vmem:[%s5504_s12] ss:$0 sm:$0xff] }
 0xa06   : > { %4108 = vmatmul.mubr.msk.f32.vlgmr.msra.gmra.mxu0 %vm3091_vm13, %v3079_v22  ;;  %4126 = vmatprep.mubr.msk.f32.mxu1 %vm4347_vm12, %v4346_v60  ;;  %v3288_v0 = vld [vmem:[%s5509_s17] sm:$0xff] }
 0xa07   : > { %4129 = vmatprep.subr.mxu0 %v4346_v60  ;;  %4137 = vmatprep.mubr.msk.f32.mxu0 %vm4347_vm12, %v4346_v60  ;;  %v3623_v62 = vld [vmem:[%s5506_s14] ss:$0 sm:$0xff] }
 0xa08   : > { %4117 = vmatpush3.msra.mxu1 %v3186_v53  ;;  %4130 = vmatpush3.msra.mxu0 %v3291_v27  ;;  %v3625_v37 = vld [vmem:[%s5507_s15] ss:$0 sm:$0xff] }
 0xa09   : > { %4118 = vmatprep.subr.mxu1 %v4346_v60  ;;  %4131 = vmatprep.subr.mxu0 %v4346_v60  ;;  %v3626_v4 = vld [vmem:[%s5508_s16] ss:$0 sm:$0xff] }
 0xa0a   : > { %4119 = vmatpush3.msra.mxu1 %v3185_v54  ;;  %4132 = vmatpush3.msra.mxu0 %v3290_v45 }
 0xa0b   : > { %4120 = vmatprep.subr.mxu1 %v4346_v60  ;;  %4133 = vmatprep.subr.mxu0 %v4346_v60 }
 0xa0c   : > { %4121 = vmatpush3.msra.mxu1 %v3184_v35  ;;  %4134 = vmatpush3.msra.mxu0 %v3289_v59 }
 0xa0d   : > { %4122 = vmatprep.subr.mxu1 %v4346_v60  ;;  %4135 = vmatprep.subr.mxu0 %v4346_v60 }
 0xa0e   : > { %4123 = vmatpush3.msra.mxu1 %v3183_v34  ;;  %4136 = vmatpush3.msra.mxu0 %v3288_v0 }
 0xa0f   : > { %4124 = vmatprep.subr.mxu1 %v4346_v60 }
 0xa10   : > { %4125 = vmatpush3.msra.mxu1 %v3182_v48 }
 0xac6   : > { %v3161_v40 = vpop.f32.mrf.mxu0 }
 0xac7   : > { %v3162_v56 = vadd.f32 %v3619_v38, %v3161_v40 }
 0xac8   : > { %v4109_v10 = vpop.f32.mrf.mxu0 }
 0xac9   : > { %v3165_v63 = vmax.f32 %v3162_v56, 0.0 }
 0xacb   : > { %v3173_v33 = vmul.f32 %v3621_v1, %v3165_v63 }
 0xacd   : > { %v3181_v41 = vadd.f32 %v3622_v58, %v3173_v33 }
 0xacf   : > { %4127 = vmatmul.mubr.msk.f32.vlgmr.msra.gmra.mxu1 %vm3197_vm14, %v3181_v41 }
 0xb8f   : > { %v3267_v26 = vpop.f32.mrf.mxu1 }
 0xb90   : > { %v3268_v29 = vadd.f32 %v3623_v62, %v3267_v26 }
 0xb91   : > { %v4128_v3 = vpop.f32.mrf.mxu1 }
 0xb92   : > { %v3271_v55 = vmax.f32 %v3268_v29, 0.0 }
 0xb94   : > { %v3279_v5 = vmul.f32 %v3625_v37, %v3271_v55 }
 0xb96   : > { %v3287_v6 = vadd.f32 %v3626_v4, %v3279_v5 }
 0xb98   : > { %4138 = vmatmul.mubr.msk.f32.vlgmr.msra.gmra.mxu0 %vm3091_vm13, %v3287_v6 }
 0xc58   : > { %v3368_v9 = vpop.f32.mrf.mxu0 }
 0xc59   : > { %v3369_v11 = vadd.f32 %v3627_v7, %v3368_v9 }
 0xc5a   : > { %v4139_v12 = vpop.f32.mrf.mxu0 }
 0xc5b   : > { %3373 = vst.msk [vmem:[%s5511_s19] sm:$0x3] %vm3372_vm15, %v3369_v11 }
 0xc5c PF: > { %s5528_s1 = sld [smem:[#allocation12_spill]] }
 0xc5d   : > { %s5529_s20 = sld [smem:[#allocation11_spill]] }
 0xc5e   : > { %s5530_s21 = sld [smem:[#allocation13_spill]] }
 0xc62   : > { %s31_s1 = sadd.s32 1, %s5528_s1  }
 0xc63   : > { %p28_p3 = scmp.ge.s32.totalorder %s31_s1, 4  }
 0xc65   :  { %30 = sbr.rel (!%p28_p3) target bundleno = 5 (0x5), region = 209 }

</bundles_post_ra>
